<compile_context>
chip_gen: v7x
topology: tpu7x:2x2x1
jax: 0.10.0
libtpu: 0.0.40
codegen_flags: <defaults>
</compile_context>

<pallas_src>
import jax
import jax.numpy as jnp
from jax.experimental import pallas as pl
from jax.experimental.pallas import tpu as pltpu


# ----------------------------------------------------------------------------
# Pallas kernel: attentive p4 group convolution, grid = (batch,).
# Per step: for each output rotation r (static unroll, R=4):
#   v_r = u_col * amod[r]          lane-aligned bf16 VPU multiply
#   o[r] = v_r @ w[r]              one (Ho*Wo, K*K*CG) x (K*K*CG, 128) MXU dot,
#                                  f32 accumulation, lane-dense 128-wide store.
# ----------------------------------------------------------------------------
def _att_gconv_kernel(u_ref, amod_ref, w_ref, o_ref):
    R = amod_ref.shape[1]
    u = u_ref[0]                                          # (P, KKCG) bf16
    for r in range(R):                                    # static unroll over 4 rotations
        v = u * amod_ref[0, r]                            # bf16, lane-aligned VPU
        o_ref[0, r] = jnp.dot(v, w_ref[r],
                              preferred_element_type=jnp.float32)


def attentive_group_conv(u_col, amod, w_mat):
    B, P, KKCG = u_col.shape
    R = amod.shape[1]
    Npad = w_mat.shape[-1]
    return pl.pallas_call(
        _att_gconv_kernel,
        out_shape=jax.ShapeDtypeStruct((B, R, P, Npad), jnp.float32),
        grid=(B,),
        in_specs=[
            pl.BlockSpec((1, P, KKCG), lambda b: (b, 0, 0)),
            pl.BlockSpec((1, R, P, KKCG), lambda b: (b, 0, 0, 0)),
            pl.BlockSpec((R, KKCG, Npad), lambda b: (0, 0, 0)),
        ],
        out_specs=pl.BlockSpec((1, R, P, Npad), lambda b: (b, 0, 0, 0)),
        compiler_params=pltpu.CompilerParams(dimension_semantics=("parallel",)),
    )(u_col, amod, w_mat)


# ----------------------------------------------------------------------------
# One-time parameter preparation (hoisted out of the jitted forward).
# ----------------------------------------------------------------------------
def build_rotated_weights(w, G):
    """w: [Cout, Cin, G, K, K] -> [R=G, K*K, Cin*G, Cout].

    For output rotation r the filter is rotated spatially by r*90deg and its
    input-rotation axis is cyclically shifted by r (p4 group action).
    # TODO(synk): exact rotation / roll sign convention of attgconv not
    # reproduced bit-for-bit; this is the standard p4 G->G kernel transform.
    """
    Cout, Cin, Gw, K, _ = w.shape
    stacks = []
    for r in range(G):
        wr = jnp.roll(w, r, axis=2)                 # input-rotation shift
        wr = jnp.rot90(wr, k=r, axes=(3, 4))        # spatial rotation
        wr = jnp.transpose(wr, (3, 4, 1, 2, 0))     # (K, K, Cin, G, Cout)
        stacks.append(wr.reshape(K * K, Cin * Gw, Cout))
    return jnp.stack(stacks, axis=0)


def prepare_params(params, G):
    """Precompute all rotation-dependent weight layouts once (outside the hot path).
    Only arrays are stored (no Python ints), so everything jits cleanly."""
    W1, W2 = params['ca_w1'], params['ca_w2']                    # (Chid,C,G), (C,Chid,G)
    ca_w1_rot = jnp.stack([jnp.roll(W1, r, axis=-1) for r in range(G)], axis=0)
    ca_w2_rot = jnp.stack([jnp.roll(W2, r, axis=-1) for r in range(G)], axis=0)
    g = jnp.arange(G)
    rot_idx = (g[None, :] - g[:, None]) % G                      # rot_idx[r, g] = (g-r)%G

    conv_w_rot = build_rotated_weights(params['conv_w'], G)      # (R, K*K, C*G, Cout)
    R, KK, CG, Cout = conv_w_rot.shape
    conv_w_mat = conv_w_rot.reshape(R, KK * CG, Cout).astype(jnp.bfloat16)

    sa_w_rot = build_rotated_weights(params['sa_w'], G)          # (R, Ksp*Ksp, 2G, 1)
    Ksp = int(round(sa_w_rot.shape[1] ** 0.5))
    sa_filter = jnp.transpose(                                   # (Ksp, Ksp, 2G, R) HWIO
        sa_w_rot[..., 0].reshape(R, Ksp, Ksp, 2 * G), (1, 2, 3, 0))

    return dict(
        bn_gamma=params['bn_gamma'], bn_beta=params['bn_beta'],
        ca_w1_rot=ca_w1_rot, ca_w2_rot=ca_w2_rot, rot_idx=rot_idx,
        conv_w_mat=conv_w_mat, sa_filter=sa_filter,
    )


# ----------------------------------------------------------------------------
# Full forward pass of fA_P4DenseBlock2D.
# ----------------------------------------------------------------------------
def fa_p4_dense_block_forward(x, prep, eps=2e-5):
    B, C, G, H, W = x.shape
    CG = C * G
    conv_w_mat = prep['conv_w_mat']                     # (R, K*K*CG, Cout) bf16
    R, KKCG, Cout = conv_w_mat.shape                    # static Python ints (shapes)
    KK = KKCG // CG
    K = int(round(KK ** 0.5))
    Ho, Wo = H - K + 1, W - K + 1
    P = Ho * Wo
    Npad = max(128, ((Cout + 127) // 128) * 128)        # lane-dense output width

    # --- BatchNorm3d (training-mode batch statistics) + ReLU ------------------
    # TODO(synk): BN stats / poolings could be fused into a Pallas prologue to
    # save one HBM round-trip of u; kept in XLA (fused elementwise) for clarity.
    # TODO(synk): eval-mode running statistics of nn.BatchNorm3d not supported.
    mean = jnp.mean(x, axis=(0, 2, 3, 4), keepdims=True)
    var = jnp.mean(jnp.square(x - mean), axis=(0, 2, 3, 4), keepdims=True)
    gamma = prep['bn_gamma'].reshape(1, C, 1, 1, 1)
    beta = prep['bn_beta'].reshape(1, C, 1, 1, 1)
    u = jax.nn.relu((x - mean) * jax.lax.rsqrt(var + eps) * gamma + beta)   # (B,C,G,H,W)
    u_cl = jnp.transpose(u, (0, 3, 4, 1, 2)).reshape(B, H, W, CG)           # cg = c*G+g

    # --- fChannelAttentionGG: rotation-equivariant channel attention ----------
    # TODO(synk): attgconv's exact fc-weight parameterization is not reproduced;
    # this is an equivalent rotation-equivariant 2-layer group MLP.
    p_avg = jnp.mean(u, axis=(3, 4))            # (B, C, G)
    p_max = jnp.max(u, axis=(3, 4))             # (B, C, G)

    def eq_mlp(p):
        hid = jax.nn.relu(jnp.einsum('rocg,bcg->bor', prep['ca_w1_rot'], p))
        return jnp.einsum('rocg,bcg->bor', prep['ca_w2_rot'], hid)

    a_base = jax.nn.sigmoid(eq_mlp(p_avg) + eq_mlp(p_max))                  # (B, C, G)
    a_ch = a_base[:, :, prep['rot_idx']]                                    # (B, C, R, G)
    a_ch = jnp.transpose(a_ch, (0, 2, 1, 3)).reshape(B, R, CG)              # (B, R, CG)

    # --- fSpatialAttentionGG: channel pooling -> SAME conv -> sigmoid (XLA) ---
    s = jnp.stack([jnp.mean(u, axis=1), jnp.max(u, axis=1)], axis=1)        # (B,2,G,H,W)
    s_cl = jnp.transpose(s, (0, 3, 4, 1, 2)).reshape(B, H, W, 2 * G)        # idx = p*G+g
    a_sp = jax.nn.sigmoid(jax.lax.conv_general_dilated(
        s_cl, prep['sa_filter'], window_strides=(1, 1), padding='SAME',
        dimension_numbers=('NHWC', 'HWIO', 'NHWC')))                        # (B,H,W,R)
    a_sp = jnp.transpose(a_sp, (0, 3, 1, 2))                                # (B,R,H,W)

    # --- build im2col inputs for the Pallas kernel (bf16, lane-dense) ---------
    u_bf = u_cl.astype(jnp.bfloat16)
    u_taps = [u_bf[:, dy:dy + Ho, dx:dx + Wo, :]
              for dy in range(K) for dx in range(K)]                        # K*K slices
    u_col = jnp.stack(u_taps, axis=3).reshape(B, P, KK * CG)                # (B,P,KK*CG)

    a_taps = [a_sp[:, :, dy:dy + Ho, dx:dx + Wo]
              for dy in range(K) for dx in range(K)]
    a_col = jnp.stack(a_taps, axis=4)                                       # (B,R,Ho,Wo,KK)
    amod = (a_col[..., :, None] * a_ch[:, :, None, None, None, :])          # (B,R,Ho,Wo,KK,CG)
    amod = amod.reshape(B, R, P, KK * CG).astype(jnp.bfloat16)

    w_pad = jnp.pad(conv_w_mat, ((0, 0), (0, 0), (0, Npad - Cout)))         # (R,KK*CG,Npad)

    # --- main attentive p4 group convolution (valid KxK, Pallas hot path) -----
    h_pad = attentive_group_conv(u_col, amod, w_pad)                        # (B,R,P,Npad) f32
    h = h_pad[..., :Cout].reshape(B, R, Ho, Wo, Cout)
    h = jnp.transpose(h, (0, 4, 1, 2, 3))                                   # (B,Cout,G,Ho,Wo)

    # --- dense connection: crop input and concatenate along channel axis ------
    xh = x[:, :, :, 1:-1, 1:-1]
    return jnp.concatenate([h, xh], axis=1)


if __name__ == "__main__":
    B, C_in, C_out, G, H, W = 2, 8, 8, 4, 16, 16
    K, Ksp = 3, 7
    wscale = 1.0
    ratio = C_in // 2
    C_hid = max(C_in // ratio, 1)

    key = jax.random.PRNGKey(0)
    kx, k1, k2, k3, k4 = jax.random.split(key, 5)
    params = {
        'bn_gamma': jnp.ones((C_in,), jnp.float32),
        'bn_beta': jnp.zeros((C_in,), jnp.float32),
        'ca_w1': (jax.random.normal(k1, (C_hid, C_in, G), jnp.float32)
                  / jnp.sqrt(float(C_in * G))),
        'ca_w2': (jax.random.normal(k2, (C_in, C_hid, G), jnp.float32)
                  / jnp.sqrt(float(C_hid * G))),
        'sa_w': (wscale * jax.random.normal(k3, (1, 2, G, Ksp, Ksp), jnp.float32)
                 / jnp.sqrt(float(2 * G * Ksp * Ksp))),
        'conv_w': (wscale * jax.random.normal(k4, (C_out, C_in, G, K, K), jnp.float32)
                   / jnp.sqrt(float(C_in * G * K * K))),
    }
    x = jax.random.normal(kx, (B, C_in, G, H, W), jnp.float32)

    prep = prepare_params(params, G)            # weight rotations hoisted out of hot path
    fwd = jax.jit(fa_p4_dense_block_forward)
    out = jax.block_until_ready(fwd(x, prep))

    expected = (B, C_out + C_in, G, H - 2, W - 2)
    assert out.shape == expected, (out.shape, expected)
    assert bool(jnp.all(jnp.isfinite(out)))
    print("KERNEL_OK")
</pallas_src>

<mosaic_0001>
module attributes {stable_mosaic.version = 11 : i64} {
  func.func @_att_gconv_kernel(%arg0: i32, %arg1: memref<1x196x288xbf16, #tpu.memory_space<vmem>>, %arg2: memref<1x4x196x288xbf16, #tpu.memory_space<vmem>>, %arg3: memref<4x288x128xbf16, #tpu.memory_space<vmem>>, %arg4: memref<1x4x196x128xf32, #tpu.memory_space<vmem>>) attributes {dimension_semantics = [#tpu.dimension_semantics<parallel>], iteration_bounds = array<i64: 2>, scalar_prefetch = 0 : i64, scratch_operands = 0 : i64, tpu.core_type = #tpu.core_type<tc>, window_params = [{transform_indices = @transform_0, window_bounds = array<i64: 1, 196, 288>}, {transform_indices = @transform_1, window_bounds = array<i64: 1, 4, 196, 288>}, {pipeline_mode = #tpu.pipeline_mode<synchronous>, transform_indices = @transform_2, window_bounds = array<i64: 4, 288, 128>}, {transform_indices = @transform_3, window_bounds = array<i64: 1, 4, 196, 128>}]} {
    %c0 = arith.constant 0 : index
    %c0_0 = arith.constant 0 : index
    %c0_1 = arith.constant 0 : index
    %0 = vector.load %arg1[%c0, %c0_0, %c0_1] : memref<1x196x288xbf16, #tpu.memory_space<vmem>>, vector<1x196x288xbf16>
    %1 = vector.shape_cast %0 : vector<1x196x288xbf16> to vector<196x288xbf16>
    %c0_2 = arith.constant 0 : index
    %c0_3 = arith.constant 0 : index
    %c0_4 = arith.constant 0 : index
    %c0_5 = arith.constant 0 : index
    %2 = vector.load %arg2[%c0_2, %c0_3, %c0_4, %c0_5] : memref<1x4x196x288xbf16, #tpu.memory_space<vmem>>, vector<1x1x196x288xbf16>
    %3 = vector.shape_cast %2 : vector<1x1x196x288xbf16> to vector<196x288xbf16>
    %4 = arith.mulf %1, %3 : vector<196x288xbf16>
    %c0_6 = arith.constant 0 : index
    %c0_7 = arith.constant 0 : index
    %c0_8 = arith.constant 0 : index
    %5 = vector.load %arg3[%c0_6, %c0_7, %c0_8] : memref<4x288x128xbf16, #tpu.memory_space<vmem>>, vector<1x288x128xbf16>
    %6 = vector.shape_cast %5 : vector<1x288x128xbf16> to vector<288x128xbf16>
    %cst = arith.constant dense<0.000000e+00> : vector<196x128xf32>
    %7 = tpu.matmul %4, %6, %cst {dimension_numbers = #tpu.dot_dimension_numbers<[1], [0], [0], [1], [0, 0, 1, 1], [], []>} : vector<196x288xbf16>, vector<288x128xbf16>, vector<196x128xf32> -> vector<196x128xf32>
    %c0_9 = arith.constant 0 : index
    %c0_10 = arith.constant 0 : index
    %c0_11 = arith.constant 0 : index
    %c0_12 = arith.constant 0 : index
    %8 = vector.load %arg4[%c0_9, %c0_10, %c0_11, %c0_12] : memref<1x4x196x128xf32, #tpu.memory_space<vmem>>, vector<1x1x196x128xf32>
    %9 = vector.shape_cast %8 : vector<1x1x196x128xf32> to vector<196x128xf32>
    %10 = vector.shape_cast %7 : vector<196x128xf32> to vector<1x1x196x128xf32>
    tpu.vector_store %arg4[%c0_9, %c0_10, %c0_11, %c0_12], %10 {strides = array<i32>} : memref<1x4x196x128xf32, #tpu.memory_space<vmem>>, vector<1x1x196x128xf32>,
    %c0_13 = arith.constant 0 : index
    %c1 = arith.constant 1 : index
    %c0_14 = arith.constant 0 : index
    %c0_15 = arith.constant 0 : index
    %11 = vector.load %arg2[%c0_13, %c1, %c0_14, %c0_15] : memref<1x4x196x288xbf16, #tpu.memory_space<vmem>>, vector<1x1x196x288xbf16>
    %12 = vector.shape_cast %11 : vector<1x1x196x288xbf16> to vector<196x288xbf16>
    %13 = arith.mulf %1, %12 : vector<196x288xbf16>
    %c1_16 = arith.constant 1 : index
    %c0_17 = arith.constant 0 : index
    %c0_18 = arith.constant 0 : index
    %14 = vector.load %arg3[%c1_16, %c0_17, %c0_18] : memref<4x288x128xbf16, #tpu.memory_space<vmem>>, vector<1x288x128xbf16>
    %15 = vector.shape_cast %14 : vector<1x288x128xbf16> to vector<288x128xbf16>
    %cst_19 = arith.constant dense<0.000000e+00> : vector<196x128xf32>
    %16 = tpu.matmul %13, %15, %cst_19 {dimension_numbers = #tpu.dot_dimension_numbers<[1], [0], [0], [1], [0, 0, 1, 1], [], []>} : vector<196x288xbf16>, vector<288x128xbf16>, vector<196x128xf32> -> vector<196x128xf32>
    %c0_20 = arith.constant 0 : index
    %c1_21 = arith.constant 1 : index
    %c0_22 = arith.constant 0 : index
    %c0_23 = arith.constant 0 : index
    %17 = vector.load %arg4[%c0_20, %c1_21, %c0_22, %c0_23] : memref<1x4x196x128xf32, #tpu.memory_space<vmem>>, vector<1x1x196x128xf32>
    %18 = vector.shape_cast %17 : vector<1x1x196x128xf32> to vector<196x128xf32>
    %19 = vector.shape_cast %16 : vector<196x128xf32> to vector<1x1x196x128xf32>
    tpu.vector_store %arg4[%c0_20, %c1_21, %c0_22, %c0_23], %19 {strides = array<i32>} : memref<1x4x196x128xf32, #tpu.memory_space<vmem>>, vector<1x1x196x128xf32>,
    %c0_24 = arith.constant 0 : index
    %c2 = arith.constant 2 : index
    %c0_25 = arith.constant 0 : index
    %c0_26 = arith.constant 0 : index
    %20 = vector.load %arg2[%c0_24, %c2, %c0_25, %c0_26] : memref<1x4x196x288xbf16, #tpu.memory_space<vmem>>, vector<1x1x196x288xbf16>
    %21 = vector.shape_cast %20 : vector<1x1x196x288xbf16> to vector<196x288xbf16>
    %22 = arith.mulf %1, %21 : vector<196x288xbf16>
    %c2_27 = arith.constant 2 : index
    %c0_28 = arith.constant 0 : index
    %c0_29 = arith.constant 0 : index
    %23 = vector.load %arg3[%c2_27, %c0_28, %c0_29] : memref<4x288x128xbf16, #tpu.memory_space<vmem>>, vector<1x288x128xbf16>
    %24 = vector.shape_cast %23 : vector<1x288x128xbf16> to vector<288x128xbf16>
    %cst_30 = arith.constant dense<0.000000e+00> : vector<196x128xf32>
    %25 = tpu.matmul %22, %24, %cst_30 {dimension_numbers = #tpu.dot_dimension_numbers<[1], [0], [0], [1], [0, 0, 1, 1], [], []>} : vector<196x288xbf16>, vector<288x128xbf16>, vector<196x128xf32> -> vector<196x128xf32>
    %c0_31 = arith.constant 0 : index
    %c2_32 = arith.constant 2 : index
    %c0_33 = arith.constant 0 : index
    %c0_34 = arith.constant 0 : index
    %26 = vector.load %arg4[%c0_31, %c2_32, %c0_33, %c0_34] : memref<1x4x196x128xf32, #tpu.memory_space<vmem>>, vector<1x1x196x128xf32>
    %27 = vector.shape_cast %26 : vector<1x1x196x128xf32> to vector<196x128xf32>
    %28 = vector.shape_cast %25 : vector<196x128xf32> to vector<1x1x196x128xf32>
    tpu.vector_store %arg4[%c0_31, %c2_32, %c0_33, %c0_34], %28 {strides = array<i32>} : memref<1x4x196x128xf32, #tpu.memory_space<vmem>>, vector<1x1x196x128xf32>,
    %c0_35 = arith.constant 0 : index
    %c3 = arith.constant 3 : index
    %c0_36 = arith.constant 0 : index
    %c0_37 = arith.constant 0 : index
    %29 = vector.load %arg2[%c0_35, %c3, %c0_36, %c0_37] : memref<1x4x196x288xbf16, #tpu.memory_space<vmem>>, vector<1x1x196x288xbf16>
    %30 = vector.shape_cast %29 : vector<1x1x196x288xbf16> to vector<196x288xbf16>
    %31 = arith.mulf %1, %30 : vector<196x288xbf16>
    %c3_38 = arith.constant 3 : index
    %c0_39 = arith.constant 0 : index
    %c0_40 = arith.constant 0 : index
    %32 = vector.load %arg3[%c3_38, %c0_39, %c0_40] : memref<4x288x128xbf16, #tpu.memory_space<vmem>>, vector<1x288x128xbf16>
    %33 = vector.shape_cast %32 : vector<1x288x128xbf16> to vector<288x128xbf16>
    %cst_41 = arith.constant dense<0.000000e+00> : vector<196x128xf32>
    %34 = tpu.matmul %31, %33, %cst_41 {dimension_numbers = #tpu.dot_dimension_numbers<[1], [0], [0], [1], [0, 0, 1, 1], [], []>} : vector<196x288xbf16>, vector<288x128xbf16>, vector<196x128xf32> -> vector<196x128xf32>
    %c0_42 = arith.constant 0 : index
    %c3_43 = arith.constant 3 : index
    %c0_44 = arith.constant 0 : index
    %c0_45 = arith.constant 0 : index
    %35 = vector.load %arg4[%c0_42, %c3_43, %c0_44, %c0_45] : memref<1x4x196x128xf32, #tpu.memory_space<vmem>>, vector<1x1x196x128xf32>
    %36 = vector.shape_cast %35 : vector<1x1x196x128xf32> to vector<196x128xf32>
    %37 = vector.shape_cast %34 : vector<196x128xf32> to vector<1x1x196x128xf32>
    tpu.vector_store %arg4[%c0_42, %c3_43, %c0_44, %c0_45], %37 {strides = array<i32>} : memref<1x4x196x128xf32, #tpu.memory_space<vmem>>, vector<1x1x196x128xf32>,
    return
  }
  func.func @transform_0(%arg0: i32) -> (i32, i32, i32) {
    %c0_i32 = arith.constant 0 : i32
    %c0_i32_0 = arith.constant 0 : i32
    %c0_i32_1 = arith.constant 0 : i32
    return %arg0, %c0_i32, %c0_i32_0 : i32, i32, i32
  }
  func.func @transform_1(%arg0: i32) -> (i32, i32, i32, i32) {
    %c0_i32 = arith.constant 0 : i32
    %c0_i32_0 = arith.constant 0 : i32
    %c0_i32_1 = arith.constant 0 : i32
    %c0_i32_2 = arith.constant 0 : i32
    return %arg0, %c0_i32, %c0_i32_0, %c0_i32_1 : i32, i32, i32, i32
  }
  func.func @transform_2(%arg0: i32) -> (i32, i32, i32) {
    %c0_i32 = arith.constant 0 : i32
    %c0_i32_0 = arith.constant 0 : i32
    %c0_i32_1 = arith.constant 0 : i32
    %c0_i32_2 = arith.constant 0 : i32
    return %c0_i32, %c0_i32_0, %c0_i32_1 : i32, i32, i32
  }
  func.func @transform_3(%arg0: i32) -> (i32, i32, i32, i32) {
    %c0_i32 = arith.constant 0 : i32
    %c0_i32_0 = arith.constant 0 : i32
    %c0_i32_1 = arith.constant 0 : i32
    %c0_i32_2 = arith.constant 0 : i32
    return %arg0, %c0_i32, %c0_i32_0, %c0_i32_1 : i32, i32, i32, i32
  }
}

</mosaic_0001>

<bundles_post_ra>
// kernel: mul.27
= control target key start
LH: loop header
LB: loop body
LE: loop exit
PB: predicated region body
PF: predicated region fallthrough
CT: control target
= control target key end

     0   :  { %vm4_vm0 = vcmask 1047556   ;;  %s127_s16 = smov 28   ;;  %s128_s19 = smov 20   ;;  %vm6_vm1 = vcmask 31744   ;;  %vm18_vm2 = vcmask 261344   ;;  %vm30_vm3 = vcmask 228544   ;;  %s206_s0 = inlined_call_operand.vmem [shape: f32[2,4,8,4], index: 0, kind: input, shape index: {}]   ;;  %s207_s1 = inlined_call_operand.vmem [shape: f32[2,4,32], index: 1, kind: output, shape index: {}]  }
   0x1   :  { %v105_v0 = vld [vmem:[%s206_s0 + $0x7] ss:$8 sm:$0xf]   ;;  %v109_v2 = vld [vmem:[%s206_s0 + $0x5] ss:$8 sm:$0xf]  }
   0x2   :  { %v106_v1 = vld [vmem:[%s206_s0 + $0x7] ss:$8 sm:$0xf0]   ;;  %v110_v4 = vld [vmem:[%s206_s0 + $0x5] ss:$8 sm:$0xf0]  }
   0x3   :  { %v15_v3 = vsel %vm4_vm0, %v106_v1, %v105_v0  ;;  %v107_v5 = vld [vmem:[%s206_s0 + $0x6] ss:$8 sm:$0xf]   ;;  %v39_v6 = vsel %vm4_vm0, %v110_v4, %v109_v2  ;;  %v111_v9 = vld [vmem:[%s206_s0 + $0x4] ss:$8 sm:$0xf]  }
   0x4   :  { %16 = vrot.lane.b32.xlu0 %v15_v3, %s127_s16  ;;  %v108_v7 = vld [vmem:[%s206_s0 + $0x6] ss:$8 sm:$0xf0]   ;;  %40 = vrot.lane.b32.xlu1 %v39_v6, %s128_s19  ;;  %v112_v10 = vld [vmem:[%s206_s0 + $0x4] ss:$8 sm:$0xf0]  }
   0x5   :  { %v27_v8 = vsel %vm4_vm0, %v108_v7, %v107_v5  ;;  %v51_v11 = vsel %vm4_vm0, %v112_v10, %v111_v9  ;;  %v113_v12 = vld [vmem:[%s206_s0 + $0x3] ss:$8 sm:$0xf]   ;;  %v115_v14 = vld [vmem:[%s206_s0 + $0x2] ss:$8 sm:$0xf]  }
   0x6   :  { %v114_v13 = vld [vmem:[%s206_s0 + $0x3] ss:$8 sm:$0xf0]   ;;  %s129_s30 = smov 24   ;;  %s130_s4 = smov 16   ;;  %vm42_vm4 = vcmask 195744  }
   0x7   :  { %v116_v15 = vld [vmem:[%s206_s0 + $0x2] ss:$8 sm:$0xf0]   ;;  %v63_v16 = vsel %vm4_vm0, %v114_v13, %v113_v12  ;;  %v117_v17 = vld [vmem:[%s206_s0 + $0x1] ss:$8 sm:$0xf]  }
   0x8   :  { %28 = vrot.lane.b32.xlu0 %v27_v8, %s129_s30  ;;  %52 = vrot.lane.b32.xlu1 %v51_v11, %s130_s4  ;;  %v118_v18 = vld [vmem:[%s206_s0 + $0x1] ss:$8 sm:$0xf0]   ;;  %v75_v19 = vsel %vm4_vm0, %v116_v15, %v115_v14  ;;  %v2_v20 = vld [vmem:[%s206_s0] ss:$8 sm:$0xf]  }
   0x9   :  { %v3_v21 = vld [vmem:[%s206_s0] ss:$8 sm:$0xf0]   ;;  %s131_s0 = smov 12   ;;  %s132_s13 = smov 8   ;;  %v87_v23 = vsel %vm4_vm0, %v118_v18, %v117_v17  ;;  %vm54_vm5 = vcmask 162944  }
   0xa   :  { %v5_v22 = vsel %vm4_vm0, %v3_v21, %v2_v20  ;;  %s133_s14 = smov 4   ;;  %vm66_vm6 = vcmask 130144   ;;  %vm78_vm7 = vcmask 97344   ;;  %vm90_vm8 = vcmask 64544  }
   0xb   :  { %7 = vst.msk [vmem:[#allocation0] sm:$0xf] %vm6_vm1, %v5_v22   ;;  %9 = vst.msk [vmem:[#allocation0 + $0x4] sm:$0xf0] %vm6_vm1, %v5_v22  }
   0xc   :  { %64 = vrot.lane.b32.xlu0 %v63_v16, %s131_s0  ;;  %76 = vrot.lane.b32.xlu1 %v75_v19, %s132_s13 }
  0x10   :  { %88 = vrot.lane.b32.xlu0 %v87_v23, %s133_s14 }
  0x76   :  { %v17_v24 = vpop.permute.xlu0 %16   ;;  %v41_v25 = vpop.permute.xlu1 %40  }
  0x77   :  { %19 = vst.msk [vmem:[#allocation0] sm:$0xf] %vm18_vm2, %v17_v24   ;;  %21 = vst.msk [vmem:[#allocation0 + $0x4] sm:$0xf0] %vm18_vm2, %v17_v24  }
  0x7a   :  { %v29_v26 = vpop.permute.xlu0 %28   ;;  %v53_v27 = vpop.permute.xlu1 %52  }
  0x7b   :  { %31 = vst.msk [vmem:[#allocation0] sm:$0xf] %vm30_vm3, %v29_v26   ;;  %33 = vst.msk [vmem:[#allocation0 + $0x4] sm:$0xf0] %vm30_vm3, %v29_v26  }
  0x7c   :  { %43 = vst.msk [vmem:[#allocation0] sm:$0xf] %vm42_vm4, %v41_v25   ;;  %45 = vst.msk [vmem:[#allocation0 + $0x4] sm:$0xf0] %vm42_vm4, %v41_v25  }
  0x7d   :  { %55 = vst.msk [vmem:[#allocation0] sm:$0xf] %vm54_vm5, %v53_v27   ;;  %57 = vst.msk [vmem:[#allocation0 + $0x4] sm:$0xf0] %vm54_vm5, %v53_v27  }
  0x7e   :  { %v65_v28 = vpop.permute.xlu0 %64   ;;  %v77_v29 = vpop.permute.xlu1 %76  }
  0x7f   :  { %67 = vst.msk [vmem:[#allocation0] sm:$0xf] %vm66_vm6, %v65_v28   ;;  %69 = vst.msk [vmem:[#allocation0 + $0x4] sm:$0xf0] %vm66_vm6, %v65_v28  }
  0x80   :  { %79 = vst.msk [vmem:[#allocation0] sm:$0xf] %vm78_vm7, %v77_v29   ;;  %81 = vst.msk [vmem:[#allocation0 + $0x4] sm:$0xf0] %vm78_vm7, %v77_v29  }
  0x82   :  { %v89_v30 = vpop.permute.xlu0 %88  }
  0x83   :  { %91 = vst.msk [vmem:[#allocation0] sm:$0xf] %vm90_vm8, %v89_v30   ;;  %93 = vst.msk [vmem:[#allocation0 + $0x4] sm:$0xf0] %vm90_vm8, %v89_v30  }
  0x8a   :  { %v97_v31 = vld [vmem:[#allocation0] sm:$0xf]  ;;  %v101_v32 = vld [vmem:[#allocation0 + $0x8] sm:$0xf] }
  0x8b   :  { %99 = vst [vmem:[%s207_s1] sm:$0xf] %v97_v31  ;;  %119 = vst [vmem:[%s207_s1 + $0x4] sm:$0xf] %v101_v32 }

// kernel: fa_p4_dense_block_forward.1
= control target key start
LH: loop header
LB: loop body
LE: loop exit
PB: predicated region body
PF: predicated region fallthrough
CT: control target
= control target key end

     0   :  { %s4851_s12 = smov 0   ;;  %s6162_s0 = inlined_call_operand.vmem [shape: bf16[2,196,288], index: 0, kind: input, shape index: {}]   ;;  %s6163_s1 = inlined_call_operand.vmem [shape: bf16[2,4,196,288], index: 1, kind: input, shape index: {}]   ;;  %s6164_s2 = inlined_call_operand.vmem [shape: bf16[4,288,128], index: 2, kind: input, shape index: {}]   ;;  %s6165_s3 = inlined_call_operand.vmem [shape: f32[2,4,196,128], index: 3, kind: output, shape index: {}]  }
   0x1 LB: > { %s3399_s13 = sadd.s32 4294967295, %s4827_s12   ;;  %p3403_p0 = scmp.ge.s32.totalorder %s4827_s12, 1  ;;  %s4827_s12 = sphi %s4851_s12, %s13_s12  }
   0x2   : > { %p147_p1 = scmp.lt.s32.totalorder %s4827_s12, 3 }
   0x4   : > { %p148_p2 = pnand %p3403_p0, %p147_p1 }
   0x6   : > { %151 = sbr.rel (%p148_p2) target bundleno = 663 (0x297), region = 32 }
   0xd   : > { %v4699_v0 = vld [vmem:[%s6164_s2 + $0x40] sm:$0xff]   ;;  %v6169_v2 = vmov 0.0   ;;  %v4701_v3 = vld [vmem:[%s6164_s2 + $0x48] sm:$0xff]   ;;  %vm4830_vm0 = vmmov 0   ;;  %p176_p3 = scmp.lt.s32.totalorder %s3399_s13, 1  ;;  %v4704_v6 = vld [vmem:[%s6164_s2 + $0x50] sm:$0xff]  }
   0xe   : > { %v4700_v1 = vld [vmem:[%s6164_s2] sm:$0xff]   ;;  %4458 = vmatprep.subr.bf16.mxu1 %v6169_v2  ;;  %4022 = vmatprep.subr.bf16.mxu0 %v4699_v0  ;;  %v4702_v4 = vld [vmem:[%s6164_s2 + $0x8] sm:$0xff]   ;;  %v4705_v7 = vld [vmem:[%s6164_s2 + $0x10] sm:$0xff]   ;;  %vm676_vm1 = vcmask 261120  }
   0xf   : > { %4462 = vmatprep.mubr.msk.bf16.mxu1 %vm4830_vm0, %v6169_v2  ;;  %4023 = vmatpush3.bf16.msra.mxu0 %v4700_v1  ;;  %v4703_v5 = vld [vmem:[%s6164_s2 + $0x80] sm:$0xff]   ;;  %s6230_s13 = smov (!%p176_p3, %s3399_s13), 1  ;;  %v4706_v8 = vld [vmem:[%s6164_s2 + $0x88] sm:$0xff]   ;;  %v4707_v9 = vld [vmem:[%s6164_s2 + $0x58] sm:$0xff]  }
  0x10   : > { %4024 = vmatprep.subr.bf16.mxu0 %v4701_v3  ;;  %4459 = vmatpush3.bf16.msra.mxu1 %v4703_v5  ;;  %s4686_s28 = smul.u32 300, %s6230_s13  ;;  %v4708_v10 = vld [vmem:[%s6164_s2 + $0x18] sm:$0xff]   ;;  %v4709_v22 = vld [vmem:[%s6164_s2 + $0x60] sm:$0xff]   ;;  %v4711_v25 = vld [vmem:[%s6164_s2 + $0xd0] sm:$0xff]  }
  0x11   : > { %4460 = vmatprep.subr.bf16.mxu1 %v6169_v2  ;;  %s4687_s4 = smul.u32 1200, %s6230_s13  ;;  %v4710_v24 = vld [vmem:[%s6164_s2 + $0x20] sm:$0xff]   ;;  %v4712_v26 = vld [vmem:[%s6164_s2 + $0x90] sm:$0xff]   ;;  %v4713_v27 = vld [vmem:[%s6164_s2 + $0x68] sm:$0xff]  }
  0x12   : > { %s4897_s9 = scalar_lea.vmem %s6162_s0, %s4686_s28  ;;  %v4714_v28 = vld [vmem:[%s6164_s2 + $0x28] sm:$0xff]   ;;  %v4715_v35 = vld [vmem:[%s6164_s2 + $0x70] sm:$0xff]   ;;  %v4717_v38 = vld [vmem:[%s6164_s2 + $0x78] sm:$0xff]   ;;  %s4688_s15 = smul.u32 800, %s6230_s13 }
  0x13   : > { %4025 = vmatpush3.bf16.msra.mxu0 %v4702_v4  ;;  %s4905_s16 = scalar_lea.vmem %s6163_s1, %s4687_s4  ;;  %v4908_v11 = vld [vmem:[%s4897_s9 + $0x8] sm:$0xf]  ;;  %v4911_v12 = vld [vmem:[%s4897_s9 + $0x14] sm:$0xf]  ;;  %v4945_v29 = vld [vmem:[%s4897_s9 + $0x20] sm:$0xf] }
  0x14   : > { %4026 = vmatprep.subr.bf16.mxu0 %v4704_v6  ;;  %4461 = vmatpush3.bf16.msra.mxu1 %v4706_v8  ;;  %v243_v13 = vld [vmem:[%s4905_s16 + $0x8] sm:$0xf]  ;;  %v245_v14 = vld [vmem:[%s4905_s16 + $0x14] sm:$0xf]  ;;  %v3480_v17 = vld [vmem:[%s4905_s16 + $0x140] sm:$0xf]  ;;  %s5633_s22 = scalar_lea.vmem %s6165_s3, %s4688_s15 }
  0x15   : > { %v293_v15 = vmul.bf16 %v243_v13, %v4908_v11  ;;  %v3478_v16 = vld [vmem:[%s4905_s16 + $0x134] sm:$0xf]  ;;  %v295_v18 = vmul.bf16 %v245_v14, %v4911_v12  ;;  %v1067_v20 = vmul.bf16 %v3480_v17, %v4911_v12  ;;  %4131 = vmatprep.subr.bf16.mxu1 %v4711_v25  ;;  %v4948_v30 = vld [vmem:[%s4897_s9 + $0x2c] sm:$0xf]  ;;  %v247_v31 = vld [vmem:[%s4905_s16 + $0x20] sm:$0xf] }
  0x16   : > { %v1065_v19 = vmul.bf16 %v3478_v16, %v4908_v11  ;;  %v249_v32 = vld [vmem:[%s4905_s16 + $0x2c] sm:$0xf]  ;;  %v297_v33 = vmul.bf16 %v247_v31, %v4945_v29  ;;  %v4716_v37 = vld [vmem:[%s6164_s2 + $0x30] sm:$0xff]   ;;  %v4964_v39 = vld [vmem:[%s4897_s9 + $0x38] sm:$0xf] }
  0x17   : > { %4027 = vmatpush3.bf16.msra.mxu0 %v4705_v7  ;;  %v3409_v21 = vcombine.low %v293_v15, %v295_v18  ;;  %v299_v34 = vmul.bf16 %v249_v32, %v4948_v30  ;;  %v4718_v40 = vld [vmem:[%s6164_s2 + $0x38] sm:$0xff]   ;;  %v4971_v41 = vld [vmem:[%s4897_s9 + $0x44] sm:$0xf]  ;;  %v4983_v47 = vld [vmem:[%s4897_s9 + $0xc] sm:$0xff] }
  0x18   : > { %4028 = vmatprep.subr.bf16.mxu0 %v4707_v9  ;;  %v4924_v23 = vcombine.low %v1065_v19, %v1067_v20  ;;  %v251_v42 = vld [vmem:[%s4905_s16 + $0x38] sm:$0xf]  ;;  %v253_v43 = vld [vmem:[%s4905_s16 + $0x44] sm:$0xf]  ;;  %v244_v49 = vld [vmem:[%s4905_s16 + $0xc] sm:$0xff] }
  0x19   : > { %4463 = vmatmul.mubr.msk.bf16.vlgmr.msra.gmra.mrb[0].mxu1 %vm676_vm1, %v3409_v21  ;;  %v3412_v36 = vcombine.low %v297_v33, %v299_v34  ;;  %v301_v44 = vmul.bf16 %v251_v42, %v4964_v39  ;;  %v303_v45 = vmul.bf16 %v253_v43, %v4971_v41  ;;  %v4980_v46 = vld [vmem:[%s4897_s9] sm:$0xff]  ;;  %v294_v51 = vmul.bf16 %v244_v49, %v4983_v47  ;;  %v4719_v52 = vld [vmem:[%s6164_s2 + $0xd8] sm:$0xff]   ;;  %v4721_v57 = vld [vmem:[%s6164_s2 + $0x110] sm:$0xff]  }
  0x1a   : > { %4466 = vmatprep.mubr.msk.bf16.mxu1 %vm4830_vm0, %v6169_v2  ;;  %4132 = vmatpush3.bf16.msra.mxu1 %v4712_v26  ;;  %v242_v48 = vld [vmem:[%s4905_s16] sm:$0xff]  ;;  %v4720_v54 = vld [vmem:[%s6164_s2 + $0x98] sm:$0xff]   ;;  %v4999_v58 = vld [vmem:[%s4897_s9 + $0x50] sm:$0xf] }
  0x1b   : > { %4029 = vmatpush3.bf16.msra.mxu0 %v4708_v10  ;;  %v292_v50 = vmul.bf16 %v242_v48, %v4980_v46  ;;  %v3415_v53 = vcombine.low %v301_v44, %v303_v45  ;;  %4133 = vmatprep.subr.bf16.mxu1 %v4719_v52  ;;  %v5002_v59 = vld [vmem:[%s4897_s9 + $0x5c] sm:$0xf]  ;;  %v255_v60 = vld [vmem:[%s4905_s16 + $0x50] sm:$0xf]  ;;  %v5011_v63 = vld [vmem:[%s4897_s9 + $0x24] sm:$0xff] }
  0x1c   : > { %4030 = vmatprep.subr.bf16.mxu0 %v4709_v22  ;;  %v257_v61 = vld [vmem:[%s4905_s16 + $0x5c] sm:$0xf]  ;;  %v248_v1 = vld [vmem:[%s4905_s16 + $0x24] sm:$0xff]  ;;  %v305_v3 = vmul.bf16 %v255_v60, %v4999_v58  ;;  %v5029_v10 = vld [vmem:[%s4897_s9 + $0x30] sm:$0xff] }
  0x1d   : > { %v3408_v55 = vcombine.high %v292_v50, %v294_v51  ;;  %v3407_v56 = vcombine.low %v292_v50, %v294_v51  ;;  %v5007_v62 = vld [vmem:[%s4897_s9 + $0x18] sm:$0xff]  ;;  %v307_v4 = vmul.bf16 %v257_v61, %v5002_v59  ;;  %v298_v6 = vmul.bf16 %v248_v1, %v5011_v63  ;;  %v4722_v7 = vld [vmem:[%s6164_s2 + $0xe0] sm:$0xff]   ;;  %v5036_v15 = vld [vmem:[%s4897_s9 + $0x68] sm:$0xf] }
  0x1e   : > { %4134 = vmatpush3.bf16.msra.mxu1 %v4720_v54  ;;  %v246_v0 = vld [vmem:[%s4905_s16 + $0x18] sm:$0xff]  ;;  %v4723_v9 = vld [vmem:[%s6164_s2 + $0xa0] sm:$0xff]   ;;  %v250_v16 = vld [vmem:[%s4905_s16 + $0x30] sm:$0xff] }
  0x1f   : > { %4031 = vmatpush3.bf16.msra.mxu0 %v4710_v24  ;;  %748 = vmatprep.mubr.bf16.mxu0 %v3408_v55  ;;  %v296_v5 = vmul.bf16 %v246_v0, %v5007_v62  ;;  %v5032_v13 = vld [vmem:[%s4897_s9 + $0x3c] sm:$0xff]  ;;  %v3418_v14 = vcombine.low %v305_v3, %v307_v4  ;;  %v5041_v19 = vld [vmem:[%s4897_s9 + $0x74] sm:$0xf]  ;;  %v259_v20 = vld [vmem:[%s4905_s16 + $0x68] sm:$0xf]  ;;  %v300_v22 = vmul.bf16 %v250_v16, %v5029_v10 }
  0x20   : > { %4032 = vmatprep.subr.bf16.mxu0 %v4713_v27  ;;  %4135 = vmatprep.subr.bf16.mxu1 %v4722_v7  ;;  %v252_v17 = vld [vmem:[%s4905_s16 + $0x3c] sm:$0xff]  ;;  %v261_v21 = vld [vmem:[%s4905_s16 + $0x74] sm:$0xf]  ;;  %v5048_v25 = vld [vmem:[%s4897_s9 + $0x48] sm:$0xff]  ;;  %v309_v32 = vmul.bf16 %v259_v20, %v5036_v15 }
  0x21   : > { %4467 = vmatmul.mubr.msk.bf16.gmra.mrb[4].mxu1 %vm676_vm1, %v3412_v36  ;;  %v3411_v8 = vcombine.high %v296_v5, %v298_v6  ;;  %v3410_v18 = vcombine.low %v296_v5, %v298_v6  ;;  %v302_v24 = vmul.bf16 %v252_v17, %v5032_v13  ;;  %v5051_v26 = vld [vmem:[%s4897_s9 + $0x54] sm:$0xff]  ;;  %v254_v27 = vld [vmem:[%s4905_s16 + $0x48] sm:$0xff]  ;;  %v311_v33 = vmul.bf16 %v261_v21, %v5041_v19  ;;  %v263_v43 = vld [vmem:[%s4905_s16 + $0x80] sm:$0xf] }
  0x22   : > { %4470 = vmatprep.mubr.msk.bf16.mxu1 %vm4830_vm0, %v6169_v2  ;;  %4136 = vmatpush3.bf16.msra.mxu1 %v4723_v9  ;;  %v256_v31 = vld [vmem:[%s4905_s16 + $0x54] sm:$0xff]  ;;  %v4724_v34 = vld [vmem:[%s6164_s2 + $0xe8] sm:$0xff]   ;;  %v304_v36 = vmul.bf16 %v254_v27, %v5048_v25  ;;  %v5077_v49 = vld [vmem:[%s4897_s9 + $0x60] sm:$0xff] }
  0x23   : > { %4033 = vmatpush3.bf16.msra.mxu0 %v4714_v28  ;;  %v3414_v28 = vcombine.high %v300_v22, %v302_v24  ;;  %4137 = vmatprep.subr.bf16.mxu1 %v4724_v34  ;;  %v5072_v42 = vld [vmem:[%s4897_s9 + $0x8c] sm:$0xf]  ;;  %v3413_v44 = vcombine.low %v300_v22, %v302_v24  ;;  %v4726_v51 = vld [vmem:[%s6164_s2 + $0xf0] sm:$0xff]   ;;  %v258_v52 = vld [vmem:[%s4905_s16 + $0x60] sm:$0xff] }
  0x24   : > { %4034 = vmatprep.subr.bf16.mxu0 %v4715_v35  ;;  %v4725_v35 = vld [vmem:[%s6164_s2 + $0xa8] sm:$0xff]   ;;  %v5098_v61 = vld [vmem:[%s4897_s9 + $0x98] sm:$0xf]  ;;  %v5101_v0 = vld [vmem:[%s4897_s9 + $0xa4] sm:$0xf] }
  0x25   : > { %v265_v45 = vld [vmem:[%s4905_s16 + $0x8c] sm:$0xf]  ;;  %v267_v1 = vld [vmem:[%s4905_s16 + $0x98] sm:$0xf]  ;;  %v269_v6 = vld [vmem:[%s4905_s16 + $0xa4] sm:$0xf] }
  0x26   : > { %4138 = vmatpush3.bf16.msra.mxu1 %v4725_v35  ;;  %v5080_v50 = vld [vmem:[%s4897_s9 + $0x6c] sm:$0xff]  ;;  %v315_v55 = vmul.bf16 %v265_v45, %v5072_v42  ;;  %v4728_v4 = vld [vmem:[%s6164_s2 + $0xf8] sm:$0xff]   ;;  %v264_v17 = vld [vmem:[%s4905_s16 + $0x84] sm:$0xff]  ;;  %v317_v20 = vmul.bf16 %v267_v1, %v5098_v61  ;;  %v319_v21 = vmul.bf16 %v269_v6, %v5101_v0 }
  0x27   : > { %4035 = vmatpush3.bf16.msra.mxu0 %v4716_v37  ;;  %v306_v37 = vmul.bf16 %v256_v31, %v5051_v26  ;;  %4139 = vmatprep.subr.bf16.mxu1 %v4726_v51  ;;  %v5109_v7 = vld [vmem:[%s4897_s9 + $0x78] sm:$0xff]  ;;  %v5130_v27 = vld [vmem:[%s4897_s9 + $0xb0] sm:$0xf]  ;;  %v275_v1 = vld [vmem:[%s4905_s16 + $0xc8] sm:$0xf] }
  0x28   : > { %4036 = vmatprep.subr.bf16.mxu0 %v4717_v38  ;;  %v3421_v38 = vcombine.low %v309_v32, %v311_v33  ;;  %v262_v16 = vld [vmem:[%s4905_s16 + $0x78] sm:$0xff]  ;;  %v271_v31 = vld [vmem:[%s4905_s16 + $0xb0] sm:$0xf]  ;;  %v3427_v32 = vcombine.low %v317_v20, %v319_v21  ;;  %v4731_v33 = vld [vmem:[%s6164_s2 + $0x100] sm:$0xff]  }
  0x29   : > { %4471 = vmatmul.mubr.msk.bf16.gmra.mrb[8].mxu1 %vm676_vm1, %v3415_v53  ;;  %v3417_v48 = vcombine.high %v304_v36, %v306_v37  ;;  %v260_v53 = vld [vmem:[%s4905_s16 + $0x6c] sm:$0xff]  ;;  %v3416_v5 = vcombine.low %v304_v36, %v306_v37  ;;  %v312_v22 = vmul.bf16 %v262_v16, %v5109_v7  ;;  %v273_v35 = vld [vmem:[%s4905_s16 + $0xbc] sm:$0xf]  ;;  %v4732_v36 = vld [vmem:[%s6164_s2 + $0xc0] sm:$0xff]  }
  0x2a   : > { %4474 = vmatprep.mubr.msk.bf16.mxu1 %vm4830_vm0, %v6169_v2  ;;  %v310_v60 = vmul.bf16 %v260_v53, %v5080_v50  ;;  %v268_v45 = vld [vmem:[%s4905_s16 + $0x9c] sm:$0xff]  ;;  %v5177_v6 = vld [vmem:[%s4897_s9 + $0xb4] sm:$0xff] }
  0x2b   : > { %4037 = vmatpush3.bf16.msra.mxu0 %v4718_v40  ;;  %v5069_v40 = vld [vmem:[%s4897_s9 + $0x80] sm:$0xf]  ;;  %v272_v16 = vld [vmem:[%s4905_s16 + $0xb4] sm:$0xff] }
  0x2c   : > { %4514 = vmatprep.subr.bf16.mxu0 %v6169_v2  ;;  %v313_v54 = vmul.bf16 %v263_v43, %v5069_v40  ;;  %v5148_v43 = vld [vmem:[%s4897_s9 + $0x9c] sm:$0xff] }
  0x2d   : > { %v318_v53 = vmul.bf16 %v268_v45, %v5148_v43  ;;  %v274_v45 = vld [vmem:[%s4905_s16 + $0xc0] sm:$0xff] }
  0x2e   : > { %749 = vmatmul.mubr.bf16.vlgmr.msra.gmra.mrb[0].mxu0 %v3407_v56  ;;  %v4727_v56 = vld [vmem:[%s6164_s2 + $0xb0] sm:$0xff]   ;;  %v3424_v3 = vcombine.low %v313_v54, %v315_v55  ;;  %v4733_v54 = vld [vmem:[%s6164_s2 + $0x108] sm:$0xff]  }
  0x2f   : > { %4515 = vmatpush3.bf16.msra.mxu0 %v4721_v57  ;;  %756 = vmatprep.mubr.bf16.mxu0 %v3411_v8  ;;  %v308_v57 = vmul.bf16 %v258_v52, %v5077_v49  ;;  %v4729_v8 = vld [vmem:[%s6164_s2 + $0xb8] sm:$0xff]   ;;  %v4734_v55 = vld [vmem:[%s6164_s2 + $0xc8] sm:$0xff]  }
  0x30   : > { %4516 = vmatprep.subr.bf16.mxu0 %v6169_v2  ;;  %4140 = vmatpush3.bf16.msra.mxu1 %v4727_v56 }
  0x31   : > { %4475 = vmatmul.mubr.msk.bf16.gmra.mrb[12].mxu1 %vm676_vm1, %v3418_v14  ;;  %v3420_v9 = vcombine.high %v308_v57, %v310_v60  ;;  %v5115_v14 = vld [vmem:[%s4897_s9 + $0x84] sm:$0xff]  ;;  %4141 = vmatprep.subr.bf16.mxu1 %v4728_v4  ;;  %v3419_v34 = vcombine.low %v308_v57, %v310_v60  ;;  %v5169_v60 = vld [vmem:[%s4897_s9 + $0xd4] sm:$0xf] }
  0x32   : > { %4478 = vmatprep.mubr.msk.bf16.mxu1 %vm4830_vm0, %v6169_v2  ;;  %v314_v24 = vmul.bf16 %v264_v17, %v5115_v14  ;;  %v5166_v57 = vld [vmem:[%s4897_s9 + $0xc8] sm:$0xf]  ;;  %6189 = vst [vmem:[#allocation3_spill] sm:$0xff] %v5169_v60  ;;  %v277_v4 = vld [vmem:[%s4905_s16 + $0xd4] sm:$0xf]  ;;  %v4735_v17 = vld [vmem:[%s6164_s2 + $0x160] sm:$0xff]  }
  0x33   : > { %6188 = vst [vmem:[#allocation2_spill] sm:$0xff] %v5166_v57  ;;  %v327_v20 = vmul.bf16 %v277_v4, %v5169_v60  ;;  %v283_v4 = vld [vmem:[%s4905_s16 + $0xf8] sm:$0xf]  ;;  %v3483_v60 = vld [vmem:[%s4905_s16 + $0x150] sm:$0xff] }
  0x34   : > { %4142 = vmatpush3.bf16.msra.mxu1 %v4729_v8  ;;  %v3423_v37 = vcombine.high %v312_v22, %v314_v24 }
  0x35   : > { %4143 = vmatprep.subr.bf16.mxu1 %v4731_v33 }
  0x36   : > { %757 = vmatmul.mubr.bf16.gmra.mrb[4].mxu0 %v3410_v18  ;;  %v4730_v18 = vld [vmem:[%s6164_s2 + $0x118] sm:$0xff]  }
  0x37   : > { %764 = vmatprep.mubr.bf16.mxu0 %v3414_v28  ;;  %4517 = vmatpush3.bf16.msra.mxu0 %v4730_v18  ;;  %v5133_v28 = vld [vmem:[%s4897_s9 + $0xbc] sm:$0xf]  ;;  %v325_v18 = vmul.bf16 %v275_v1, %v5166_v57  ;;  %v5218_v1 = vld [vmem:[%s4897_s9 + $0x104] sm:$0xf] }
  0x38   : > { %4570 = vmatprep.subr.bf16.mxu0 %v6169_v2  ;;  %4144 = vmatpush3.bf16.msra.mxu1 %v4732_v36  ;;  %v323_v51 = vmul.bf16 %v273_v35, %v5133_v28  ;;  %v281_v35 = vld [vmem:[%s4905_s16 + $0xec] sm:$0xf]  ;;  %6193 = vst [vmem:[#allocation7_spill] sm:$0xff] %v5218_v1  ;;  %v5289_v57 = vld [vmem:[%s4897_s9 + $0x120] sm:$0x33] }
  0x39   : > { %4479 = vmatmul.mubr.msk.bf16.gmra.mrb[16].mxu1 %vm676_vm1, %v3421_v38  ;;  %v5145_v38 = vld [vmem:[%s4897_s9 + $0x90] sm:$0xff]  ;;  %4145 = vmatprep.subr.bf16.mxu1 %v4733_v54 }
  0x3a   : > { %4482 = vmatprep.mubr.msk.bf16.mxu1 %vm4830_vm0, %v6169_v2 }
  0x3c   : > { %4146 = vmatpush3.bf16.msra.mxu1 %v4734_v55  ;;  %v5215_v55 = vld [vmem:[%s4897_s9 + $0xf8] sm:$0xf] }
  0x3d   : > { %4240 = vmatprep.subr.bf16.mxu1 %v4735_v17  ;;  %6192 = vst [vmem:[#allocation6_spill] sm:$0xff] %v5215_v55  ;;  %v5226_v17 = vld [vmem:[%s4897_s9 + $0xe4] sm:$0xff] }
  0x3e   : > { %765 = vmatmul.mubr.bf16.gmra.mrb[8].mxu0 %v3413_v44  ;;  %v266_v44 = vld [vmem:[%s4905_s16 + $0x90] sm:$0xff] }
  0x3f   : > { %772 = vmatprep.mubr.bf16.mxu0 %v3417_v48  ;;  %v321_v48 = vmul.bf16 %v271_v31, %v5130_v27  ;;  %v316_v52 = vmul.bf16 %v266_v44, %v5145_v38  ;;  %v3433_v31 = vcombine.low %v325_v18, %v327_v20  ;;  %v5203_v44 = vld [vmem:[%s4897_s9 + $0xcc] sm:$0xff]  ;;  %v278_v18 = vld [vmem:[%s4905_s16 + $0xd8] sm:$0xff]  ;;  %v280_v20 = vld [vmem:[%s4905_s16 + $0xe4] sm:$0xff] }
  0x41   : > { %4483 = vmatmul.mubr.msk.bf16.gmra.mrb[20].mxu1 %vm676_vm1, %v3424_v3  ;;  %v3430_v56 = vcombine.low %v321_v48, %v323_v51  ;;  %v3422_v3 = vcombine.low %v312_v22, %v314_v24  ;;  %v3426_v8 = vcombine.high %v316_v52, %v318_v53  ;;  %v322_v22 = vmul.bf16 %v272_v16, %v5177_v6  ;;  %v5192_v24 = vld [vmem:[%s4897_s9 + $0xe0] sm:$0xf]  ;;  %v276_v48 = vld [vmem:[%s4905_s16 + $0xcc] sm:$0xff]  ;;  %v5223_v16 = vld [vmem:[%s4897_s9 + $0xd8] sm:$0xff] }
  0x42   : > { %4486 = vmatprep.mubr.msk.bf16.mxu1 %vm4830_vm0, %v6169_v2  ;;  %6190 = vst [vmem:[#allocation4_spill] sm:$0xff] %v5192_v24  ;;  %v3425_v33 = vcombine.low %v316_v52, %v318_v53  ;;  %v326_v54 = vmul.bf16 %v276_v48, %v5203_v44 }
  0x46   : > { %773 = vmatmul.mubr.bf16.gmra.mrb[12].mxu0 %v3416_v5  ;;  %v5174_v5 = vld [vmem:[%s4897_s9 + $0xa8] sm:$0xff] }
  0x47   : > { %780 = vmatprep.mubr.bf16.mxu0 %v3420_v9  ;;  %v270_v9 = vld [vmem:[%s4905_s16 + $0xa8] sm:$0xff] }
  0x48   : > { %v320_v21 = vmul.bf16 %v270_v9, %v5174_v5 }
  0x49   : > { %4487 = vmatmul.mubr.msk.bf16.gmra.mrb[24].mxu1 %vm676_vm1, %v3427_v32  ;;  %v5195_v32 = vld [vmem:[%s4897_s9 + $0xec] sm:$0xf] }
  0x4a   : > { %4490 = vmatprep.mubr.msk.bf16.mxu1 %vm4830_vm0, %v6169_v2  ;;  %6191 = vst [vmem:[#allocation5_spill] sm:$0xff] %v5195_v32  ;;  %v3429_v36 = vcombine.high %v320_v21, %v322_v22  ;;  %v331_v52 = vmul.bf16 %v281_v35, %v5195_v32 }
  0x4e   : > { %781 = vmatmul.mubr.bf16.gmra.mrb[16].mxu0 %v3419_v34  ;;  %v279_v34 = vld [vmem:[%s4905_s16 + $0xe0] sm:$0xf] }
  0x4f   : > { %788 = vmatprep.mubr.bf16.mxu0 %v3423_v37  ;;  %v5200_v37 = vld [vmem:[%s4897_s9 + $0xc0] sm:$0xff]  ;;  %v329_v51 = vmul.bf16 %v279_v34, %v5192_v24  ;;  %v5238_v34 = vld [vmem:[%s4897_s9 + $0x110] sm:$0xf] }
  0x50   : > { %v324_v53 = vmul.bf16 %v274_v45, %v5200_v37  ;;  %6194 = vst [vmem:[#allocation8_spill] sm:$0xff] %v5238_v34  ;;  %v287_v45 = vld [vmem:[%s4905_s16 + $0x110] sm:$0xf] }
  0x51   : > { %4491 = vmatmul.mubr.msk.bf16.gmra.mrb[28].mxu1 %vm676_vm1, %v3430_v56  ;;  %v3436_v56 = vcombine.low %v329_v51, %v331_v52  ;;  %v289_v51 = vld [vmem:[%s4905_s16 + $0x11c] sm:$0xf] }
  0x52   : > { %4494 = vmatprep.mubr.msk.bf16.mxu1 %vm4830_vm0, %v6169_v2  ;;  %v3432_v9 = vcombine.high %v324_v53, %v326_v54  ;;  %v3431_v48 = vcombine.low %v324_v53, %v326_v54 }
  0x56   : > { %789 = vmatmul.mubr.bf16.gmra.mrb[20].mxu0 %v3422_v3  ;;  %v3428_v3 = vcombine.low %v320_v21, %v322_v22  ;;  %v328_v22 = vmul.bf16 %v278_v18, %v5223_v16 }
  0x57   : > { %796 = vmatprep.mubr.bf16.mxu0 %v3426_v8  ;;  %v285_v8 = vld [vmem:[%s4905_s16 + $0x104] sm:$0xf] }
  0x58   : > { %v335_v21 = vmul.bf16 %v285_v8, %v5218_v1  ;;  %v284_v8 = vld [vmem:[%s4905_s16 + $0xfc] sm:$0xff]  ;;  %v286_v1 = vld [vmem:[%s4905_s16 + $0x108] sm:$0xff] }
  0x59   : > { %4495 = vmatmul.mubr.msk.bf16.gmra.mrb[32].mxu1 %vm676_vm1, %v3433_v31  ;;  %v333_v31 = vmul.bf16 %v283_v4, %v5215_v55  ;;  %v282_v4 = vld [vmem:[%s4905_s16 + $0xf0] sm:$0xff] }
  0x5a   : > { %4498 = vmatprep.mubr.msk.bf16.mxu1 %vm4830_vm0, %v6169_v2 }
  0x5b   : > { %v3439_v35 = vcombine.low %v333_v31, %v335_v21  ;;  %v5261_v31 = vld [vmem:[%s4897_s9 + $0x128] sm:$0x3] }
  0x5c   : > { %6196 = vst [vmem:[#allocation10_spill] sm:$0xff] %v5261_v31  ;;  %v291_v21 = vld [vmem:[%s4905_s16 + $0x128] sm:$0x3] }
  0x5e   : > { %797 = vmatmul.mubr.bf16.gmra.mrb[24].mxu0 %v3425_v33  ;;  %v330_v33 = vmul.bf16 %v280_v20, %v5226_v17 }
  0x5f   : > { %804 = vmatprep.mubr.bf16.mxu0 %v3429_v36  ;;  %v5241_v36 = vld [vmem:[%s4897_s9 + $0x11c] sm:$0xf] }
  0x60   : > { %6195 = vst [vmem:[#allocation9_spill] sm:$0xff] %v5241_v36  ;;  %v3435_v52 = vcombine.high %v328_v22, %v330_v33  ;;  %v339_v53 = vmul.bf16 %v289_v51, %v5241_v36  ;;  %v5267_v36 = vld [vmem:[%s4897_s9 + $0x108] sm:$0xff] }
  0x61   : > { %4499 = vmatmul.mubr.msk.bf16.gmra.mrb[36].mxu1 %vm676_vm1, %v3436_v56  ;;  %v5246_v56 = vld [vmem:[%s4897_s9 + $0xf0] sm:$0xff] }
  0x62   : > { %4502 = vmatprep.mubr.msk.bf16.mxu1 %vm4830_vm0, %v6169_v2  ;;  %v332_v54 = vmul.bf16 %v282_v4, %v5246_v56  ;;  %v341_v4 = vmul.bf16 %v291_v21, %v5261_v31 }
  0x64   : > { %v3445_v31 = vcombine.low %v341_v4, %v341_v4 }
  0x66   : > { %805 = vmatmul.mubr.bf16.gmra.mrb[28].mxu0 %v3428_v3  ;;  %v5249_v3 = vld [vmem:[%s4897_s9 + $0xfc] sm:$0xff] }
  0x67   : > { %812 = vmatprep.mubr.bf16.mxu0 %v3432_v9  ;;  %v337_v9 = vmul.bf16 %v287_v45, %v5238_v34  ;;  %v334_v18 = vmul.bf16 %v284_v8, %v5249_v3  ;;  %v3434_v45 = vcombine.low %v328_v22, %v330_v33  ;;  %v3479_v34 = vld [vmem:[%s4905_s16 + $0x138] sm:$0xff]  ;;  %v3661_v8 = vld [vmem:[%s4905_s16 + $0x26c] sm:$0xf]  ;;  %v6197_v22 = vmov 0.0  }
  0x68   : > { %v1840_v21 = vmul.bf16 %v3661_v8, %v4911_v12 }
  0x69   : > { %4503 = vmatmul.mubr.msk.bf16.gmra.mrb[40].mxu1 %vm676_vm1, %v3439_v35  ;;  %v3442_v20 = vcombine.low %v337_v9, %v339_v53  ;;  %v3477_v35 = vld [vmem:[%s4905_s16 + $0x12c] sm:$0xff]  ;;  %v3438_v51 = vcombine.high %v332_v54, %v334_v18  ;;  %v1066_v9 = vmul.bf16 %v3479_v34, %v4983_v47  ;;  %v336_v53 = vmul.bf16 %v286_v1, %v5267_v36  ;;  %v4736_v34 = vld [vmem:[%s6164_s2 + $0x120] sm:$0xff]  }
  0x6a   : > { %4506 = vmatprep.mubr.msk.bf16.mxu1 %vm4830_vm0, %v6169_v2  ;;  %v288_v2 = vld [vmem:[%s4905_s16 + $0x114] sm:$0xff]  ;;  %v1064_v33 = vmul.bf16 %v3477_v35, %v4980_v46  ;;  %v3437_v32 = vcombine.low %v332_v54, %v334_v18  ;;  %v290_v46 = vld [vmem:[%s4905_s16 + $0x120] sm:$0x33]  ;;  %v3487_v35 = vld [vmem:[%s4905_s16 + $0x168] sm:$0xff] }
  0x6b   : > { %v340_v12 = vmul.bf16 %v290_v46, %v5289_v57  ;;  %v3485_v18 = vld [vmem:[%s4905_s16 + $0x15c] sm:$0xff] }
  0x6c   : > { %v3564_v24 = vcombine.high %v1064_v33, %v1066_v9  ;;  %v3563_v54 = vcombine.low %v1064_v33, %v1066_v9  ;;  %v3489_v33 = vld [vmem:[%s4905_s16 + $0x174] sm:$0xff]  ;;  %v3491_v9 = vld [vmem:[%s4905_s16 + $0x180] sm:$0xff] }
  0x6d   : > { %v3443_v4 = vcombine.low %v340_v12, %v340_v12 }
  0x6e   : > { %813 = vmatmul.mubr.bf16.gmra.mrb[32].mxu0 %v3431_v48  ;;  %v5270_v48 = vld [vmem:[%s4897_s9 + $0x114] sm:$0xff] }
  0x6f   : > { %820 = vmatprep.mubr.bf16.mxu0 %v3435_v52  ;;  %v3659_v52 = vld [vmem:[%s4905_s16 + $0x260] sm:$0xf]  ;;  %v338_v55 = vmul.bf16 %v288_v2, %v5270_v48 }
  0x71   : > { %4507 = vmatmul.mubr.msk.bf16.gmra.mrb[44].mxu1 %vm676_vm1, %v3442_v20  ;;  %v1838_v20 = vmul.bf16 %v3659_v52, %v4908_v11  ;;  %v3441_v47 = vcombine.high %v336_v53, %v338_v55  ;;  %v1070_v11 = vmul.bf16 %v3483_v60, %v5011_v63  ;;  %v3444_v52 = vcombine.high %v340_v12, %v340_v12  ;;  %v3495_v12 = vld [vmem:[%s4905_s16 + $0x198] sm:$0xff] }
  0x72   : > { %4510 = vmatprep.mubr.msk.bf16.mxu1 %vm4830_vm0, %v6197_v22  ;;  %v1072_v63 = vmul.bf16 %v3485_v18, %v5029_v10  ;;  %v1074_v60 = vmul.bf16 %v3487_v35, %v5032_v13  ;;  %v4741_v10 = vld [vmem:[%s6164_s2 + $0x130] sm:$0xff]   ;;  %v4742_v13 = vld [vmem:[%s6164_s2 + $0x178] sm:$0xff]   ;;  %v4746_v18 = vld [vmem:[%s6164_s2 + $0x188] sm:$0xff]  }
  0x73   : > { %v5293_v1 = vcombine.low %v1838_v20, %v1840_v21  ;;  %v1078_v20 = vmul.bf16 %v3491_v9, %v5051_v26  ;;  %v4743_v21 = vld [vmem:[%s6164_s2 + $0x138] sm:$0xff]   ;;  %v3482_v26 = vld [vmem:[%s4905_s16 + $0x14c] sm:$0xf] }
  0x74   : > { %v3570_v8 = vcombine.high %v1072_v63, %v1074_v60  ;;  %v3569_v46 = vcombine.low %v1072_v63, %v1074_v60  ;;  %v3497_v63 = vld [vmem:[%s4905_s16 + $0x1a4] sm:$0xff]  ;;  %v3499_v60 = vld [vmem:[%s4905_s16 + $0x1b0] sm:$0xff] }
  0x75   : > { %v1086_v9 = vmul.bf16 %v3499_v60, %v5115_v14  ;;  %v3501_v14 = vld [vmem:[%s4905_s16 + $0x1bc] sm:$0xff]  ;;  %v3515_v60 = vld [vmem:[%s4905_s16 + $0x210] sm:$0xff] }
  0x76   : > { %821 = vmatmul.mubr.bf16.gmra.mrb[36].mxu0 %v3434_v45  ;;  %v3481_v45 = vld [vmem:[%s4905_s16 + $0x144] sm:$0xff] }
  0x77   : > { %828 = vmatprep.mubr.bf16.mxu0 %v3438_v51  ;;  %v1068_v2 = vmul.bf16 %v3481_v45, %v5007_v62  ;;  %v3440_v51 = vcombine.low %v336_v53, %v338_v55  ;;  %v4738_v62 = vld [vmem:[%s6164_s2 + $0x128] sm:$0xff]   ;;  %v1076_v53 = vmul.bf16 %v3489_v33, %v5048_v25  ;;  %v4744_v45 = vld [vmem:[%s6164_s2 + $0x180] sm:$0xff]   ;;  %v1084_v33 = vmul.bf16 %v3497_v63, %v5109_v7  ;;  %v3504_v63 = vld [vmem:[%s4905_s16 + $0x1d0] sm:$0xf] }
  0x78   : > { %v4739_v25 = vld [vmem:[%s6164_s2 + $0x1a0] sm:$0xff]   ;;  %v3492_v7 = vld [vmem:[%s4905_s16 + $0x188] sm:$0xf] }
  0x79   : > { %4511 = vmatmul.mubr.msk.bf16.gmra.mrb[48].mxu1 %vm676_vm1, %v3445_v31  ;;  %v3567_v31 = vcombine.high %v1068_v2, %v1070_v11  ;;  %v3566_v55 = vcombine.low %v1068_v2, %v1070_v11  ;;  %v3484_v2 = vld [vmem:[%s4905_s16 + $0x158] sm:$0xf]  ;;  %v3493_v11 = vld [vmem:[%s4905_s16 + $0x18c] sm:$0xff] }
  0x7a   : > { %1520 = vmatprep.mubr.bf16.mxu1 %v3564_v24  ;;  %v4737_v24 = vld [vmem:[%s6164_s2 + $0x168] sm:$0xff]   ;;  %v1071_v35 = vmul.bf16 %v3484_v2, %v4948_v30  ;;  %v3572_v30 = vcombine.low %v1076_v53, %v1078_v20 }
  0x7e   : > { %829 = vmatmul.mubr.bf16.gmra.mrb[40].mxu0 %v3437_v32  ;;  %v4740_v32 = vld [vmem:[%s6164_s2 + $0x170] sm:$0xff]  }
  0x7f   : > { %836 = vmatprep.mubr.bf16.mxu0 %v3441_v47  ;;  %v3573_v47 = vcombine.high %v1076_v53, %v1078_v20  ;;  %v3490_v20 = vld [vmem:[%s4905_s16 + $0x17c] sm:$0xf] }
  0x81   : > { %1521 = vmatmul.mubr.bf16.vlgmr.msra.gmra.mrb[52].mxu1 %v3563_v54  ;;  %v1069_v54 = vmul.bf16 %v3482_v26, %v4945_v29  ;;  %v4748_v29 = vld [vmem:[%s6164_s2 + $0x1a8] sm:$0xff]   ;;  %v3578_v26 = vcombine.low %v1084_v33, %v1086_v9 }
  0x82   : > { %4241 = vmatpush3.bf16.msra.mxu1 %v4736_v34  ;;  %1528 = vmatprep.mubr.bf16.mxu1 %v3567_v31  ;;  %v4745_v34 = vld [vmem:[%s6164_s2 + $0x140] sm:$0xff]   ;;  %v1082_v31 = vmul.bf16 %v3495_v12, %v5080_v50  ;;  %v3494_v12 = vld [vmem:[%s4905_s16 + $0x194] sm:$0xf] }
  0x83   : > { %4242 = vmatprep.subr.bf16.mxu1 %v4737_v24  ;;  %v3568_v50 = vcombine.low %v1069_v54, %v1071_v35  ;;  %v3486_v24 = vld [vmem:[%s4905_s16 + $0x164] sm:$0xf] }
  0x84   : > { %v3507_v54 = vld [vmem:[%s4905_s16 + $0x1e0] sm:$0xff] }
  0x86   : > { %837 = vmatmul.mubr.bf16.gmra.mrb[44].mxu0 %v3440_v51  ;;  %4243 = vmatpush3.bf16.msra.mxu1 %v4738_v62  ;;  %v1080_v51 = vmul.bf16 %v3493_v11, %v5077_v49  ;;  %v4749_v49 = vld [vmem:[%s6164_s2 + $0x190] sm:$0xff]  }
  0x87   : > { %844 = vmatprep.mubr.bf16.mxu0 %v3444_v52  ;;  %4244 = vmatprep.subr.bf16.mxu1 %v4740_v32  ;;  %v3488_v62 = vld [vmem:[%s4905_s16 + $0x170] sm:$0xf] }
  0x88   : > { %v3576_v52 = vcombine.high %v1080_v51, %v1082_v31  ;;  %v4750_v32 = vld [vmem:[%s6164_s2 + $0x150] sm:$0xff]  }
  0x89   : > { %1529 = vmatmul.mubr.bf16.gmra.mrb[56].mxu1 %v3566_v55  ;;  %v1073_v55 = vmul.bf16 %v3486_v24, %v4964_v39  ;;  %v4752_v39 = vld [vmem:[%s6164_s2 + $0x158] sm:$0xff]  }
  0x8a   : > { %1536 = vmatprep.mubr.bf16.mxu1 %v3570_v8  ;;  %4245 = vmatpush3.bf16.msra.mxu1 %v4741_v10  ;;  %v1075_v8 = vmul.bf16 %v3488_v62, %v4971_v41  ;;  %v3575_v10 = vcombine.low %v1080_v51, %v1082_v31  ;;  %v3579_v41 = vcombine.high %v1084_v33, %v1086_v9  ;;  %v3502_v62 = vld [vmem:[%s4905_s16 + $0x1c4] sm:$0xf]  ;;  %v3506_v33 = vld [vmem:[%s4905_s16 + $0x1dc] sm:$0xf]  ;;  %v3508_v9 = vld [vmem:[%s4905_s16 + $0x1e8] sm:$0xf] }
  0x8b   : > { %4246 = vmatprep.subr.bf16.mxu1 %v4742_v13  ;;  %v4753_v13 = vld [vmem:[%s6164_s2 + $0x1f0] sm:$0xff]  }
  0x8c   : > { %v3571_v53 = vcombine.low %v1073_v55, %v1075_v8 }
  0x8e   : > { %845 = vmatmul.mubr.bf16.gmra.mrb[48].mxu0 %v3443_v4  ;;  %4247 = vmatpush3.bf16.msra.mxu1 %v4743_v21  ;;  %v4751_v4 = vld [vmem:[%s6164_s2 + $0x198] sm:$0xff]   ;;  %v3503_v21 = vld [vmem:[%s4905_s16 + $0x1c8] sm:$0xff] }
  0x8f   : > { %4518 = vmatprep.mubr.msk.bf16.mxu0 %vm4830_vm0, %v6197_v22  ;;  %4248 = vmatprep.subr.bf16.mxu1 %v4744_v45  ;;  %v1077_v45 = vmul.bf16 %v3490_v20, %v4999_v58  ;;  %v3496_v58 = vld [vmem:[%s4905_s16 + $0x1a0] sm:$0xf]  ;;  %v3510_v20 = vld [vmem:[%s4905_s16 + $0x1f4] sm:$0xf] }
  0x91   : > { %1537 = vmatmul.mubr.bf16.gmra.mrb[60].mxu1 %v3569_v46  ;;  %v1079_v46 = vmul.bf16 %v3492_v7, %v5002_v59  ;;  %v1081_v59 = vmul.bf16 %v3494_v12, %v5036_v15  ;;  %v3509_v15 = vld [vmem:[%s4905_s16 + $0x1ec] sm:$0xff]  ;;  %v3512_v7 = vld [vmem:[%s4905_s16 + $0x200] sm:$0xf] }
  0x92   : > { %1544 = vmatprep.mubr.bf16.mxu1 %v3573_v47  ;;  %4249 = vmatpush3.bf16.msra.mxu1 %v4745_v34  ;;  %v1090_v47 = vmul.bf16 %v3503_v21, %v5148_v43  ;;  %v3505_v34 = vld [vmem:[%s4905_s16 + $0x1d4] sm:$0xff]  ;;  %v6198_v21 = vld [vmem:[#allocation2_spill] sm:$0xff]  ;;  %v3525_v12 = vld [vmem:[%s4905_s16 + $0x24c] sm:$0x33] }
  0x93   : > { %4250 = vmatprep.subr.bf16.mxu1 %v4746_v18  ;;  %v3574_v2 = vcombine.low %v1077_v45, %v1079_v46  ;;  %v1092_v43 = vmul.bf16 %v3505_v34, %v5174_v5  ;;  %v1094_v18 = vmul.bf16 %v3507_v54, %v5177_v6  ;;  %v1096_v6 = vmul.bf16 %v3509_v15, %v5200_v37 }
  0x94   : > { %v1091_v37 = vmul.bf16 %v3504_v63, %v5101_v0  ;;  %v1093_v0 = vmul.bf16 %v3506_v33, %v5130_v27  ;;  %v3521_v27 = vld [vmem:[%s4905_s16 + $0x234] sm:$0xff]  ;;  %v1112_v54 = vmul.bf16 %v3525_v12, %v5289_v57  ;;  %v6203_v57 = vld [vmem:[#allocation7_spill] sm:$0xff] }
  0x95   : > { %v3585_v31 = vcombine.high %v1092_v43, %v1094_v18  ;;  %v1108_v45 = vmul.bf16 %v3521_v27, %v5267_v36  ;;  %v6200_v36 = vld [vmem:[#allocation4_spill] sm:$0xff]  ;;  %v4773_v63 = vld [vmem:[%s4897_s9 + $0x8] sm:$0xf]  ;;  %v6205_v33 = vld [vmem:[#allocation9_spill] sm:$0xff] }
  0x96   : > { %4519 = vmatmul.mubr.msk.bf16.vlgmr.msra.gmra.mrb[52].mxu0 %vm676_vm1, %v4924_v23  ;;  %v4747_v23 = vld [vmem:[%s6164_s2 + $0x148] sm:$0xff]   ;;  %v3668_v27 = vld [vmem:[%s4905_s16 + $0x294] sm:$0xff] }
  0x97   : > { %4571 = vmatpush3.bf16.msra.mxu0 %v4739_v25  ;;  %4522 = vmatprep.mubr.msk.bf16.mxu0 %vm4830_vm0, %v6197_v22  ;;  %v1088_v25 = vmul.bf16 %v3501_v14, %v5145_v38  ;;  %v1083_v38 = vmul.bf16 %v3496_v58, %v5041_v19  ;;  %v3523_v14 = vld [vmem:[%s4905_s16 + $0x240] sm:$0xff] }
  0x98   : > { %4572 = vmatprep.subr.bf16.mxu0 %v6197_v22  ;;  %4251 = vmatpush3.bf16.msra.mxu1 %v4747_v23  ;;  %v3500_v23 = vld [vmem:[%s4905_s16 + $0x1b8] sm:$0xf]  ;;  %v1110_v46 = vmul.bf16 %v3523_v14, %v5270_v48 }
  0x99   : > { %1545 = vmatmul.mubr.bf16.gmra.mrb[64].mxu1 %v3572_v30  ;;  %4252 = vmatprep.subr.bf16.mxu1 %v4749_v49  ;;  %v3582_v11 = vcombine.high %v1088_v25, %v1090_v47  ;;  %v3581_v35 = vcombine.low %v1088_v25, %v1090_v47  ;;  %v3577_v51 = vcombine.low %v1081_v59, %v1083_v38  ;;  %v3511_v30 = vld [vmem:[%s4905_s16 + $0x1f8] sm:$0xff] }
  0x9a   : > { %1552 = vmatprep.mubr.bf16.mxu1 %v3576_v52  ;;  %v1087_v5 = vmul.bf16 %v3500_v23, %v5072_v42  ;;  %v1098_v49 = vmul.bf16 %v3511_v30, %v5203_v44  ;;  %v1089_v42 = vmul.bf16 %v3502_v62, %v5098_v61  ;;  %v3517_v61 = vld [vmem:[%s4905_s16 + $0x21c] sm:$0xff]  ;;  %v3596_v59 = vcombine.low %v1108_v45, %v1110_v46 }
  0x9b   : > { %4573 = vmatpush3.bf16.msra.mxu0 %v4748_v29  ;;  %v3498_v29 = vld [vmem:[%s4905_s16 + $0x1ac] sm:$0xf]  ;;  %v6201_v48 = vld [vmem:[#allocation5_spill] sm:$0xff]  ;;  %v5470_v30 = vld [vmem:[%s4897_s9] sm:$0xff] }
  0x9c   : > { %4626 = vmatprep.subr.bf16.mxu0 %v6197_v22  ;;  %4253 = vmatpush3.bf16.msra.mxu1 %v4750_v32  ;;  %v1085_v19 = vmul.bf16 %v3498_v29, %v5069_v40  ;;  %v3588_v24 = vcombine.high %v1096_v6, %v1098_v49  ;;  %v3513_v40 = vld [vmem:[%s4905_s16 + $0x204] sm:$0xff]  ;;  %v1102_v32 = vmul.bf16 %v3515_v60, %v5226_v17  ;;  %v4774_v60 = vld [vmem:[%s4897_s9 + $0x14] sm:$0xf]  ;;  %v4755_v14 = vld [vmem:[%s6164_s2 + $0x1f8] sm:$0xff]  }
  0x9d   : > { %4254 = vmatprep.subr.bf16.mxu1 %v4751_v4  ;;  %v1100_v44 = vmul.bf16 %v3513_v40, %v5223_v16  ;;  %v3587_v55 = vcombine.low %v1096_v6, %v1098_v49  ;;  %v3583_v4 = vcombine.low %v1089_v42, %v1091_v37  ;;  %v1095_v16 = vmul.bf16 %v3508_v9, %v5133_v28  ;;  %v6202_v29 = vld [vmem:[#allocation6_spill] sm:$0xff]  ;;  %v3840_v49 = vld [vmem:[%s4905_s16 + $0x38c] sm:$0xf]  ;;  %v3522_v37 = vld [vmem:[%s4905_s16 + $0x23c] sm:$0xf] }
  0x9e   : > { %4523 = vmatmul.mubr.msk.bf16.gmra.mrb[56].mxu0 %vm676_vm1, %v3568_v50  ;;  %v3584_v50 = vcombine.low %v1092_v43, %v1094_v18  ;;  %v3580_v52 = vcombine.low %v1085_v19, %v1087_v5  ;;  %v1104_v17 = vmul.bf16 %v3517_v61, %v5246_v56  ;;  %v1097_v28 = vmul.bf16 %v3510_v20, %v6198_v21  ;;  %v6199_v56 = vld [vmem:[#allocation3_spill] sm:$0xff]  ;;  %v3518_v18 = vld [vmem:[%s4905_s16 + $0x224] sm:$0xf]  ;;  %v5493_v61 = vld [vmem:[%s4897_s9 + $0x18] sm:$0xff] }
  0x9f   : > { %4526 = vmatprep.mubr.msk.bf16.mxu0 %vm4830_vm0, %v6197_v22  ;;  %v3591_v8 = vcombine.high %v1100_v44, %v1102_v32  ;;  %v3600_v43 = vcombine.high %v1112_v54, %v1112_v54  ;;  %v1105_v23 = vmul.bf16 %v3518_v18, %v6202_v29  ;;  %v5474_v5 = vld [vmem:[%s4897_s9 + $0xc] sm:$0xff]  ;;  %v2611_v40 = vmul.bf16 %v4773_v63, %v3840_v49  ;;  %v3526_v20 = vld [vmem:[%s4905_s16 + $0x254] sm:$0x3]  ;;  %v6206_v21 = vld [vmem:[#allocation10_spill] sm:$0xff] }
  0xa0   : > { %4255 = vmatpush3.bf16.msra.mxu1 %v4752_v39  ;;  %v3519_v39 = vld [vmem:[%s4905_s16 + $0x228] sm:$0xff] }
  0xa1   : > { %1553 = vmatmul.mubr.bf16.gmra.mrb[68].mxu1 %v3575_v10  ;;  %4349 = vmatprep.subr.bf16.mxu1 %v4753_v13  ;;  %v1106_v10 = vmul.bf16 %v3519_v39, %v5249_v3  ;;  %v3590_v13 = vcombine.low %v1100_v44, %v1102_v32  ;;  %v1099_v3 = vmul.bf16 %v3512_v7, %v6199_v56  ;;  %v3524_v44 = vld [vmem:[%s4905_s16 + $0x248] sm:$0xf]  ;;  %v3662_v32 = vld [vmem:[%s4905_s16 + $0x270] sm:$0xff] }
  0xa2   : > { %1560 = vmatprep.mubr.bf16.mxu1 %v3579_v41  ;;  %v1111_v9 = vmul.bf16 %v3524_v44, %v6205_v33  ;;  %v1841_v39 = vmul.bf16 %v5493_v61, %v3662_v32  ;;  %v3666_v7 = vld [vmem:[%s4905_s16 + $0x288] sm:$0xff]  ;;  %v5514_v56 = vld [vmem:[%s4897_s9 + $0x30] sm:$0xff] }
  0xa3   : > { %v3594_v41 = vcombine.high %v1104_v17, %v1106_v10  ;;  %v3593_v25 = vcombine.low %v1104_v17, %v1106_v10  ;;  %v3589_v47 = vcombine.low %v1097_v28, %v1099_v3  ;;  %v1113_v28 = vmul.bf16 %v3526_v20, %v6206_v21  ;;  %v3676_v63 = vld [vmem:[%s4905_s16 + $0x2c4] sm:$0xff]  ;;  %v5587_v44 = vld [vmem:[%s4897_s9 + $0x2c] sm:$0xf] }
  0xa4   : > { %v1845_v3 = vmul.bf16 %v5514_v56, %v3666_v7 }
  0xa6   : > { %4527 = vmatmul.mubr.msk.bf16.gmra.mrb[60].mxu0 %vm676_vm1, %v3571_v53  ;;  %v3586_v53 = vcombine.low %v1093_v0, %v1095_v16  ;;  %v5497_v0 = vld [vmem:[%s4897_s9 + $0x24] sm:$0xff] }
  0xa7   : > { %4530 = vmatprep.mubr.msk.bf16.mxu0 %vm4830_vm0, %v6197_v22 }
  0xa9   : > { %1561 = vmatmul.mubr.bf16.gmra.mrb[72].mxu1 %v3578_v26  ;;  %v3597_v26 = vcombine.high %v1108_v45, %v1110_v46  ;;  %v5518_v45 = vld [vmem:[%s4897_s9 + $0x3c] sm:$0xff] }
  0xaa   : > { %1568 = vmatprep.mubr.bf16.mxu1 %v3582_v11  ;;  %v3516_v11 = vld [vmem:[%s4905_s16 + $0x218] sm:$0xf]  ;;  %v1847_v46 = vmul.bf16 %v5518_v45, %v3668_v27 }
  0xab   : > { %v1103_v34 = vmul.bf16 %v3516_v11, %v6201_v48 }
  0xac   : > { %v3751_v48 = vcombine.high %v1845_v3, %v1847_v46 }
  0xae   : > { %4531 = vmatmul.mubr.msk.bf16.gmra.mrb[64].mxu0 %vm676_vm1, %v3574_v2  ;;  %v3514_v2 = vld [vmem:[%s4905_s16 + $0x20c] sm:$0xf] }
  0xaf   : > { %4534 = vmatprep.mubr.msk.bf16.mxu0 %vm4830_vm0, %v6197_v22  ;;  %v1101_v58 = vmul.bf16 %v3514_v2, %v6200_v36 }
  0xb1   : > { %1569 = vmatmul.mubr.bf16.gmra.mrb[76].mxu1 %v3581_v35  ;;  %v3592_v38 = vcombine.low %v1101_v58, %v1103_v34  ;;  %v3520_v35 = vld [vmem:[%s4905_s16 + $0x230] sm:$0xf]  ;;  %v3601_v58 = vcombine.low %v1113_v28, %v1113_v28  ;;  %v3670_v34 = vld [vmem:[%s4905_s16 + $0x2a0] sm:$0xff] }
  0xb2   : > { %1576 = vmatprep.mubr.bf16.mxu1 %v3585_v31  ;;  %v3660_v31 = vld [vmem:[%s4905_s16 + $0x264] sm:$0xff]  ;;  %v1107_v15 = vmul.bf16 %v3520_v35, %v6203_v57  ;;  %v5549_v35 = vld [vmem:[%s4897_s9 + $0x54] sm:$0xff] }
  0xb3   : > { %v1839_v6 = vmul.bf16 %v5474_v5, %v3660_v31  ;;  %v4761_v31 = vld [vmem:[%s6164_s2 + $0x1c8] sm:$0xff]  }
  0xb6   : > { %4535 = vmatmul.mubr.msk.bf16.gmra.mrb[68].mxu0 %vm676_vm1, %v3577_v51  ;;  %v3658_v51 = vld [vmem:[%s4905_s16 + $0x258] sm:$0xff] }
  0xb7   : > { %4538 = vmatprep.mubr.msk.bf16.mxu0 %vm4830_vm0, %v6197_v22  ;;  %v1837_v19 = vmul.bf16 %v5470_v30, %v3658_v51 }
  0xb9   : > { %1577 = vmatmul.mubr.bf16.gmra.mrb[80].mxu1 %v3584_v50  ;;  %v3842_v50 = vld [vmem:[%s4905_s16 + $0x398] sm:$0xf]  ;;  %v3745_v62 = vcombine.high %v1837_v19, %v1839_v6  ;;  %v3744_v10 = vcombine.low %v1837_v19, %v1839_v6  ;;  %v5567_v6 = vld [vmem:[%s6164_s2 + $0x230] sm:$0xff]  }
  0xba   : > { %1584 = vmatprep.mubr.bf16.mxu1 %v3588_v24  ;;  %v3595_v24 = vcombine.low %v1105_v23, %v1107_v15  ;;  %v2613_v42 = vmul.bf16 %v4774_v60, %v3842_v50  ;;  %v4762_v23 = vld [vmem:[%s6164_s2 + $0x210] sm:$0xff]   ;;  %v3750_v15 = vcombine.low %v1845_v3, %v1847_v46  ;;  %v3663_v50 = vld [vmem:[%s4905_s16 + $0x278] sm:$0xf]  ;;  %v5578_v60 = vld [vmem:[%s4897_s9 + $0x20] sm:$0xf] }
  0xbb   : > { %v3669_v46 = vld [vmem:[%s4905_s16 + $0x29c] sm:$0xf] }
  0xbc   : > { %v5500_v17 = vcombine.low %v2611_v40, %v2613_v42  ;;  %v4763_v40 = vld [vmem:[%s6164_s2 + $0x1d0] sm:$0xff]   ;;  %v1842_v42 = vmul.bf16 %v5578_v60, %v3663_v50 }
  0xbe   : > { %4539 = vmatmul.mubr.msk.bf16.gmra.mrb[72].mxu0 %vm676_vm1, %v3580_v52  ;;  %v3599_v52 = vcombine.low %v1112_v54, %v1112_v54  ;;  %v3672_v54 = vld [vmem:[%s4905_s16 + $0x2ac] sm:$0xff] }
  0xbf   : > { %4542 = vmatprep.mubr.msk.bf16.mxu0 %vm4830_vm0, %v6197_v22  ;;  %v1851_v51 = vmul.bf16 %v5549_v35, %v3672_v54  ;;  %v4769_v54 = vld [vmem:[%s6164_s2 + $0x228] sm:$0xff]  }
  0xc1   : > { %1585 = vmatmul.mubr.bf16.gmra.mrb[84].mxu1 %v3587_v55  ;;  %v3664_v55 = vld [vmem:[%s4905_s16 + $0x27c] sm:$0xff] }
  0xc2   : > { %1592 = vmatprep.mubr.bf16.mxu1 %v3591_v8  ;;  %v1843_v16 = vmul.bf16 %v5497_v0, %v3664_v55  ;;  %v5591_v55 = vld [vmem:[%s4897_s9 + $0x60] sm:$0xff] }
  0xc4   : > { %v3747_v12 = vcombine.low %v1841_v39, %v1843_v16 }
  0xc6   : > { %4543 = vmatmul.mubr.msk.bf16.gmra.mrb[76].mxu0 %vm676_vm1, %v3583_v4  ;;  %v6204_v4 = vld [vmem:[#allocation8_spill] sm:$0xff] }
  0xc7   : > { %4546 = vmatprep.mubr.msk.bf16.mxu0 %vm4830_vm0, %v6197_v22  ;;  %v1109_v8 = vmul.bf16 %v3522_v37, %v6204_v4  ;;  %v4764_v37 = vld [vmem:[%s6164_s2 + $0x218] sm:$0xff]  }
  0xc9   : > { %1593 = vmatmul.mubr.bf16.gmra.mrb[88].mxu1 %v3590_v13  ;;  %v3598_v13 = vcombine.low %v1109_v8, %v1111_v9  ;;  %v5597_v8 = vld [vmem:[%s4897_s9 + $0x6c] sm:$0xff] }
  0xca   : > { %1600 = vmatprep.mubr.bf16.mxu1 %v3594_v41  ;;  %v3748_v41 = vcombine.high %v1841_v39, %v1843_v16  ;;  %v5600_v33 = vmul.bf16 %v5597_v8, %v3676_v63  ;;  %v4765_v39 = vld [vmem:[%s6164_s2 + $0x1d8] sm:$0xff]  }
  0xce   : > { %4547 = vmatmul.mubr.msk.bf16.gmra.mrb[80].mxu0 %vm676_vm1, %v3586_v53  ;;  %v4754_v53 = vld [vmem:[%s6164_s2 + $0x1b0] sm:$0xff]  }
  0xcf   : > { %4550 = vmatprep.mubr.msk.bf16.mxu0 %vm4830_vm0, %v6197_v22 }
  0xd1   : > { %1601 = vmatmul.mubr.bf16.gmra.mrb[92].mxu1 %v3593_v25  ;;  %v4756_v25 = vld [vmem:[%s6164_s2 + $0x1b8] sm:$0xff]  }
  0xd2   : > { %1608 = vmatprep.mubr.bf16.mxu1 %v3597_v26  ;;  %v4758_v26 = vld [vmem:[%s6164_s2 + $0x200] sm:$0xff]  }
  0xd6   : > { %4551 = vmatmul.mubr.msk.bf16.gmra.mrb[84].mxu0 %vm676_vm1, %v3589_v47 }
  0xd7   : > { %4554 = vmatprep.mubr.msk.bf16.mxu0 %vm4830_vm0, %v6197_v22 }
  0xd9   : > { %1609 = vmatmul.mubr.bf16.gmra.mrb[96].mxu1 %v3596_v59  ;;  %v4759_v59 = vld [vmem:[%s6164_s2 + $0x1c0] sm:$0xff]  }
  0xda   : > { %1616 = vmatprep.mubr.bf16.mxu1 %v3600_v43  ;;  %v5543_v43 = vld [vmem:[%s4897_s9 + $0x48] sm:$0xff] }
  0xdb   : > { %v5546_v18 = vmul.bf16 %v5543_v43, %v3670_v34 }
  0xdd   : > { %v3754_v49 = vcombine.high %v5546_v18, %v1851_v51 }
  0xde   : > { %4555 = vmatmul.mubr.msk.bf16.gmra.mrb[88].mxu0 %vm676_vm1, %v3592_v38  ;;  %v4760_v38 = vld [vmem:[%s6164_s2 + $0x208] sm:$0xff]  }
  0xdf   : > { %4558 = vmatprep.mubr.msk.bf16.mxu0 %vm4830_vm0, %v6197_v22 }
  0xe1   : > { %1617 = vmatmul.mubr.bf16.gmra.mrb[100].mxu1 %v3599_v52 }
  0xe2   : > { %2293 = vmatprep.mubr.bf16.mxu1 %v3745_v62  ;;  %v3674_v62 = vld [vmem:[%s4905_s16 + $0x2b8] sm:$0xff] }
  0xe3   : > { %v5594_v4 = vmul.bf16 %v5591_v55, %v3674_v62 }
  0xe5   : > { %v3757_v27 = vcombine.high %v5594_v4, %v5600_v33 }
  0xe6   : > { %4559 = vmatmul.mubr.msk.bf16.gmra.mrb[92].mxu0 %vm676_vm1, %v3595_v24  ;;  %v3665_v24 = vld [vmem:[%s4905_s16 + $0x284] sm:$0xf] }
  0xe7   : > { %4562 = vmatprep.mubr.msk.bf16.mxu0 %vm4830_vm0, %v6197_v22  ;;  %v1844_v32 = vmul.bf16 %v5587_v44, %v3665_v24 }
  0xe9   : > { %2294 = vmatmul.mubr.bf16.vlgmr.msra.gmra.mrb[104].mxu1 %v3744_v10  ;;  %v3749_v7 = vcombine.low %v1842_v42, %v1844_v32 }
  0xea   : > { %4350 = vmatpush3.bf16.msra.mxu1 %v4754_v53  ;;  %2301 = vmatprep.mubr.bf16.mxu1 %v3748_v41  ;;  %v4767_v53 = vld [vmem:[%s6164_s2 + $0x220] sm:$0xff]  }
  0xeb   : > { %4351 = vmatprep.subr.bf16.mxu1 %v4755_v14  ;;  %v3667_v14 = vld [vmem:[%s4905_s16 + $0x290] sm:$0xf] }
  0xec   : > { %v5524_v47 = vpop.f32.mrb[0].mxu1 }
  0xed   : > { %v4464_v2 = vpop.f32.mrb[1].mxu1 }
  0xee   : > { %4563 = vmatmul.mubr.msk.bf16.gmra.mrb[96].mxu0 %vm676_vm1, %v3598_v13  ;;  %v5531_v11 = vpop.f32.mrb[2].mxu1  ;;  %4352 = vmatpush3.bf16.msra.mxu1 %v4756_v25  ;;  %v3753_v13 = vcombine.low %v5546_v18, %v1851_v51  ;;  %v3678_v25 = vld [vmem:[%s4905_s16 + $0x2d0] sm:$0xff]  ;;  %v5656_v51 = vld [vmem:[%s4897_s9 + $0x84] sm:$0xff] }
  0xef   : > { %4566 = vmatprep.mubr.msk.bf16.mxu0 %vm4830_vm0, %v6197_v22  ;;  %v4465_v36 = vpop.f32.mrb[3].mxu1  ;;  %4353 = vmatprep.subr.bf16.mxu1 %v4758_v26  ;;  %v3680_v26 = vld [vmem:[%s4905_s16 + $0x2dc] sm:$0xff] }
  0xf1   : > { %2302 = vmatmul.mubr.bf16.gmra.mrb[108].mxu1 %v3747_v12  ;;  %v4768_v12 = vld [vmem:[%s6164_s2 + $0x1e0] sm:$0xff]  }
  0xf2   : > { %2309 = vmatprep.mubr.bf16.mxu1 %v3751_v48  ;;  %4354 = vmatpush3.bf16.msra.mxu1 %v4759_v59  ;;  %v5640_v48 = vld [vmem:[%s4897_s9 + $0x38] sm:$0xf]  ;;  %v5648_v59 = vld [vmem:[%s4897_s9 + $0x44] sm:$0xf] }
  0xf3   : > { %4355 = vmatprep.subr.bf16.mxu1 %v4760_v38  ;;  %v1846_v34 = vmul.bf16 %v5640_v48, %v3667_v14  ;;  %v1848_v38 = vmul.bf16 %v5648_v59, %v3669_v46  ;;  %v5689_v14 = vld [vmem:[%s4897_s9 + $0x90] sm:$0xff] }
  0xf4   : > { %v5557_v29 = vpop.f32.mrb[4].mxu1 }
  0xf5   : > { %v4468_v57 = vpop.f32.mrb[5].mxu1  ;;  %v3752_v62 = vcombine.low %v1846_v34, %v1848_v38 }
  0xf6   : > { %4567 = vmatmul.mubr.msk.bf16.gmra.mrb[100].mxu0 %vm676_vm1, %v3601_v58  ;;  %v5562_v19 = vpop.f32.mrb[6].mxu1  ;;  %4356 = vmatpush3.bf16.msra.mxu1 %v4761_v31  ;;  %v1859_v31 = vmul.bf16 %v5656_v51, %v3680_v26 }
  0xf7   : > { %4574 = vmatprep.mubr.msk.bf16.mxu0 %vm4830_vm0, %v6197_v22  ;;  %v4469_v52 = vpop.f32.mrb[7].mxu1  ;;  %4357 = vmatprep.subr.bf16.mxu1 %v4762_v23 }
  0xf8   : > { %v3756_v52 = vcombine.low %v5594_v4, %v5600_v33 }
  0xf9   : > { %2310 = vmatmul.mubr.bf16.gmra.mrb[112].mxu1 %v3750_v15  ;;  %v4770_v15 = vld [vmem:[%s6164_s2 + $0x1e8] sm:$0xff]  }
  0xfa   : > { %2317 = vmatprep.mubr.bf16.mxu1 %v3754_v49  ;;  %4358 = vmatpush3.bf16.msra.mxu1 %v4763_v40  ;;  %v3671_v40 = vld [vmem:[%s4905_s16 + $0x2a8] sm:$0xf] }
  0xfb   : > { %4359 = vmatprep.subr.bf16.mxu1 %v4764_v37 }
  0xfc   : > { %v5610_v9 = vpop.f32.mrb[8].mxu1 }
  0xfd   : > { %v4472_v10 = vpop.f32.mrb[9].mxu1 }
  0xfe   : > { %4575 = vmatmul.mubr.msk.bf16.vlgmr.msra.gmra.mrb[104].mxu0 %vm676_vm1, %v5293_v1  ;;  %v5608_v1 = vld [vmem:[%s6164_s2 + $0x238] sm:$0xff]   ;;  %v5621_v20 = vpop.f32.mrb[10].mxu1  ;;  %4360 = vmatpush3.bf16.msra.mxu1 %v4765_v39  ;;  %v3673_v39 = vld [vmem:[%s4905_s16 + $0x2b4] sm:$0xf] }
  0xff   : > { %4627 = vmatpush3.bf16.msra.mxu0 %v5567_v6  ;;  %4578 = vmatprep.mubr.msk.bf16.mxu0 %vm4830_vm0, %v6197_v22  ;;  %v4473_v3 = vpop.f32.mrb[11].mxu1  ;;  %v3684_v10 = vld [vmem:[%s4905_s16 + $0x2f4] sm:$0xff] }
 0x100   : > { %4628 = vmatprep.subr.bf16.mxu0 %v6197_v22  ;;  %4361 = vmatprep.subr.bf16.mxu1 %v4767_v53  ;;  %v5679_v53 = vld [vmem:[%s4897_s9 + $0x50] sm:$0xf] }
 0x101   : > { %v4038_v16 = vpop.f32.mrb[0].mxu0  ;;  %2318 = vmatmul.mubr.bf16.gmra.mrb[116].mxu1 %v3753_v13 }
 0x102   : > { %v4039_v41 = vpop.f32.mrb[1].mxu0  ;;  %2325 = vmatprep.mubr.bf16.mxu1 %v3757_v27  ;;  %4362 = vmatpush3.bf16.msra.mxu1 %v4768_v12 }
 0x103   : > { %v4040_v21 = vadd.f32 %v4039_v41, %v4038_v16  ;;  %v4041_v28 = vpop.f32.mrb[2].mxu0  ;;  %4629 = vmatpush3.bf16.msra.mxu0 %v5608_v1  ;;  %4363 = vmatprep.subr.bf16.mxu1 %v4769_v54  ;;  %v3682_v16 = vld [vmem:[%s4905_s16 + $0x2e8] sm:$0xff]  ;;  %v1850_v41 = vmul.bf16 %v5679_v53, %v3671_v40  ;;  %v3675_v54 = vld [vmem:[%s4905_s16 + $0x2c0] sm:$0xf] }
 0x104   : > { %v4042_v2 = vpop.f32.mrb[3].mxu0  ;;  %v5663_v57 = vpop.f32.mrb[12].mxu1 }
 0x105   : > { %v887_v36 = vadd.f32 %v4040_v21, %v5524_v47  ;;  %v4043_v58 = vadd.f32 %v4042_v2, %v4041_v28  ;;  %v5652_v47 = vld [vmem:[%s4897_s9 + $0x78] sm:$0xff]  ;;  %v4476_v50 = vpop.f32.mrb[13].mxu1 }
 0x106   : > { %4579 = vmatmul.mubr.msk.bf16.gmra.mrb[108].mxu0 %vm676_vm1, %v3749_v7  ;;  %v1857_v18 = vmul.bf16 %v5652_v47, %v3678_v25  ;;  %v5671_v24 = vpop.f32.mrb[14].mxu1  ;;  %4364 = vmatpush3.bf16.msra.mxu1 %v4770_v15  ;;  %v5685_v7 = vld [vmem:[%s4897_s9 + $0x5c] sm:$0xf]  ;;  %v3677_v15 = vld [vmem:[%s4905_s16 + $0x2cc] sm:$0xf] }
 0x107   : > { %988 = vst [vmem:[%s5633_s22] sm:$0xff] %v887_v36  ;;  %v890_v23 = vadd.f32 %v4043_v58, %v5531_v11  ;;  %4582 = vmatprep.mubr.msk.bf16.mxu0 %vm4830_vm0, %v6197_v22  ;;  %v4477_v32 = vpop.f32.mrb[15].mxu1  ;;  %4682 = vmatprep.subr.bf16.mxu1 %v6197_v22  ;;  %v1852_v27 = vmul.bf16 %v5685_v7, %v3673_v39  ;;  %v5693_v21 = vld [vmem:[%s4897_s9 + $0x9c] sm:$0xff]  ;;  %v3688_v50 = vld [vmem:[%s4905_s16 + $0x30c] sm:$0xff] }
 0x108   : > { %v3760_v63 = vcombine.high %v1857_v18, %v1859_v31  ;;  %v1863_v28 = vmul.bf16 %v5693_v21, %v3684_v10  ;;  %v3759_v2 = vcombine.low %v1857_v18, %v1859_v31 }
 0x109   : > { %989 = vst [vmem:[%s5633_s22 + $0x8] sm:$0xff] %v890_v23  ;;  %v4044_v49 = vpop.f32.mrb[4].mxu0  ;;  %2326 = vmatmul.mubr.bf16.gmra.mrb[120].mxu1 %v3756_v52  ;;  %v3755_v58 = vcombine.low %v1850_v41, %v1852_v27 }
 0x10a   : > { %v4045_v11 = vpop.f32.mrb[5].mxu0  ;;  %2333 = vmatprep.mubr.bf16.mxu1 %v3760_v63  ;;  %v5716_v63 = vld [vmem:[%s4897_s9 + $0x74] sm:$0xf] }
 0x10b   : > { %v4046_v42 = vadd.f32 %v4045_v11, %v4044_v49  ;;  %v4047_v37 = vpop.f32.mrb[6].mxu0  ;;  %v3686_v49 = vld [vmem:[%s4905_s16 + $0x300] sm:$0xff]  ;;  %v5711_v11 = vld [vmem:[%s4897_s9 + $0x68] sm:$0xf]  ;;  %v1856_v40 = vmul.bf16 %v5716_v63, %v3677_v15 }
 0x10c   : > { %v4048_v13 = vpop.f32.mrb[7].mxu0  ;;  %v5700_v46 = vpop.f32.mrb[16].mxu1 }
 0x10d   : > { %v895_v4 = vadd.f32 %v4046_v42, %v5557_v29  ;;  %v4049_v33 = vadd.f32 %v4048_v13, %v4047_v37  ;;  %v1861_v29 = vmul.bf16 %v5689_v14, %v3682_v16  ;;  %v4480_v26 = vpop.f32.mrb[17].mxu1  ;;  %v5720_v42 = vld [vmem:[%s4897_s9 + $0xa8] sm:$0xff] }
 0x10e   : > { %4583 = vmatmul.mubr.msk.bf16.gmra.mrb[112].mxu0 %vm676_vm1, %v3752_v62  ;;  %v5703_v36 = vpop.f32.mrb[18].mxu1  ;;  %v1854_v62 = vmul.bf16 %v5711_v11, %v3675_v54  ;;  %v1865_v37 = vmul.bf16 %v5720_v42, %v3686_v49  ;;  %v5751_v49 = vld [vmem:[%s4897_s9 + $0xc0] sm:$0xff] }
 0x10f   : > { %990 = vst [vmem:[%s5633_s22 + $0x10] sm:$0xff] %v895_v4  ;;  %v898_v3 = vadd.f32 %v4049_v33, %v5562_v19  ;;  %4586 = vmatprep.mubr.msk.bf16.mxu0 %vm4830_vm0, %v6197_v22  ;;  %v3763_v34 = vcombine.high %v1861_v29, %v1863_v28  ;;  %v4481_v23 = vpop.f32.mrb[19].mxu1  ;;  %v3762_v4 = vcombine.low %v1861_v29, %v1863_v28 }
 0x110   : > { %v3758_v27 = vcombine.low %v1854_v62, %v1856_v40  ;;  %v5747_v23 = vld [vmem:[%s4897_s9 + $0x8c] sm:$0xf] }
 0x111   : > { %991 = vst [vmem:[%s5633_s22 + $0x18] sm:$0xff] %v898_v3  ;;  %v4050_v25 = vpop.f32.mrb[8].mxu0  ;;  %2334 = vmatmul.mubr.bf16.gmra.mrb[124].mxu1 %v3759_v2 }
 0x112   : > { %v4051_v12 = vpop.f32.mrb[9].mxu0  ;;  %2341 = vmatprep.mubr.bf16.mxu1 %v3763_v34  ;;  %v3692_v34 = vld [vmem:[%s4905_s16 + $0x324] sm:$0xff] }
 0x113   : > { %v4052_v19 = vadd.f32 %v4051_v12, %v4050_v25  ;;  %v4053_v38 = vpop.f32.mrb[10].mxu0  ;;  %v3679_v25 = vld [vmem:[%s4905_s16 + $0x2d8] sm:$0xf]  ;;  %v3681_v12 = vld [vmem:[%s4905_s16 + $0x2e4] sm:$0xf] }
 0x114   : > { %v4054_v52 = vpop.f32.mrb[11].mxu0  ;;  %v5731_v16 = vpop.f32.mrb[20].mxu1  ;;  %v1860_v15 = vmul.bf16 %v5747_v23, %v3681_v12 }
 0x115   : > { %v903_v18 = vadd.f32 %v4052_v19, %v5610_v9  ;;  %v4055_v31 = vadd.f32 %v4054_v52, %v4053_v38  ;;  %v5724_v9 = vld [vmem:[%s4897_s9 + $0xb4] sm:$0xff]  ;;  %v4484_v13 = vpop.f32.mrb[21].mxu1  ;;  %v5742_v19 = vld [vmem:[%s4897_s9 + $0x80] sm:$0xf] }
 0x116   : > { %4587 = vmatmul.mubr.msk.bf16.gmra.mrb[116].mxu0 %vm676_vm1, %v3755_v58  ;;  %v1867_v32 = vmul.bf16 %v5724_v9, %v3688_v50  ;;  %v5734_v41 = vpop.f32.mrb[22].mxu1  ;;  %v3690_v58 = vld [vmem:[%s4905_s16 + $0x318] sm:$0xff]  ;;  %v1858_v38 = vmul.bf16 %v5742_v19, %v3679_v25 }
 0x117   : > { %992 = vst [vmem:[%s5633_s22 + $0x20] sm:$0xff] %v903_v18  ;;  %v906_v39 = vadd.f32 %v4055_v31, %v5621_v20  ;;  %4590 = vmatprep.mubr.msk.bf16.mxu0 %vm4830_vm0, %v6197_v22  ;;  %v4485_v2 = vpop.f32.mrb[23].mxu1  ;;  %v1869_v50 = vmul.bf16 %v5751_v49, %v3690_v58  ;;  %v5773_v58 = vld [vmem:[%s4897_s9 + $0x98] sm:$0xf] }
 0x118   : > { %v3766_v3 = vcombine.high %v1865_v37, %v1867_v32  ;;  %v3696_v2 = vld [vmem:[%s4905_s16 + $0x33c] sm:$0xff] }
 0x119   : > { %993 = vst [vmem:[%s5633_s22 + $0x28] sm:$0xff] %v906_v39  ;;  %v4056_v10 = vpop.f32.mrb[12].mxu0  ;;  %2342 = vmatmul.mubr.bf16.gmra.mrb[128].mxu1 %v3762_v4  ;;  %v3765_v39 = vcombine.low %v1865_v37, %v1867_v32  ;;  %v3761_v4 = vcombine.low %v1858_v38, %v1860_v15 }
 0x11a   : > { %v4057_v33 = vpop.f32.mrb[13].mxu0  ;;  %2349 = vmatprep.mubr.bf16.mxu1 %v3766_v3 }
 0x11b   : > { %v4058_v20 = vadd.f32 %v4057_v33, %v4056_v10  ;;  %v4059_v26 = vpop.f32.mrb[14].mxu0 }
 0x11c   : > { %v4060_v54 = vpop.f32.mrb[15].mxu0  ;;  %v5762_v31 = vpop.f32.mrb[24].mxu1 }
 0x11d   : > { %v911_v29 = vadd.f32 %v4058_v20, %v5663_v57  ;;  %v4061_v28 = vadd.f32 %v4060_v54, %v4059_v26  ;;  %v5755_v57 = vld [vmem:[%s4897_s9 + $0xcc] sm:$0xff]  ;;  %v4488_v40 = vpop.f32.mrb[25].mxu1  ;;  %v3685_v20 = vld [vmem:[%s4905_s16 + $0x2fc] sm:$0xf]  ;;  %v5778_v54 = vld [vmem:[%s4897_s9 + $0xa4] sm:$0xf] }
 0x11e   : > { %4591 = vmatmul.mubr.msk.bf16.gmra.mrb[120].mxu0 %vm676_vm1, %v3758_v27  ;;  %v1871_v52 = vmul.bf16 %v5755_v57, %v3692_v34  ;;  %v5765_v13 = vpop.f32.mrb[26].mxu1  ;;  %v3683_v27 = vld [vmem:[%s4905_s16 + $0x2f0] sm:$0xf] }
 0x11f   : > { %994 = vst [vmem:[%s5633_s22 + $0x30] sm:$0xff] %v911_v29  ;;  %v914_v18 = vadd.f32 %v4061_v28, %v5671_v24  ;;  %4594 = vmatprep.mubr.msk.bf16.mxu0 %vm4830_vm0, %v6197_v22  ;;  %v4489_v25 = vpop.f32.mrb[27].mxu1  ;;  %v3694_v26 = vld [vmem:[%s4905_s16 + $0x330] sm:$0xff]  ;;  %v1862_v34 = vmul.bf16 %v5773_v58, %v3683_v27  ;;  %v1864_v29 = vmul.bf16 %v5778_v54, %v3685_v20  ;;  %v5782_v28 = vld [vmem:[%s4897_s9 + $0xd8] sm:$0xff] }
 0x120   : > { %v3769_v33 = vcombine.high %v1869_v50, %v1871_v52  ;;  %v1873_v38 = vmul.bf16 %v5782_v28, %v3694_v26  ;;  %v3689_v26 = vld [vmem:[%s4905_s16 + $0x314] sm:$0xf] }
 0x121   : > { %995 = vst [vmem:[%s5633_s22 + $0x38] sm:$0xff] %v914_v18  ;;  %v4062_v62 = vpop.f32.mrb[16].mxu0  ;;  %2350 = vmatmul.mubr.bf16.gmra.mrb[132].mxu1 %v3765_v39  ;;  %v3764_v27 = vcombine.low %v1862_v34, %v1864_v29  ;;  %v5809_v29 = vld [vmem:[%s4897_s9 + $0xbc] sm:$0xf] }
 0x122   : > { %v4063_v10 = vpop.f32.mrb[17].mxu0  ;;  %2357 = vmatprep.mubr.bf16.mxu1 %v3769_v33 }
 0x123   : > { %v4064_v24 = vadd.f32 %v4063_v10, %v4062_v62  ;;  %v4065_v3 = vpop.f32.mrb[18].mxu0  ;;  %v3768_v10 = vcombine.low %v1869_v50, %v1871_v52 }
 0x124   : > { %v4066_v12 = vpop.f32.mrb[19].mxu0  ;;  %v5793_v62 = vpop.f32.mrb[28].mxu1 }
 0x125   : > { %v919_v37 = vadd.f32 %v4064_v24, %v5700_v46  ;;  %v4067_v32 = vadd.f32 %v4066_v12, %v4065_v3  ;;  %v5786_v46 = vld [vmem:[%s4897_s9 + $0xe4] sm:$0xff]  ;;  %v4492_v39 = vpop.f32.mrb[29].mxu1  ;;  %v3700_v12 = vld [vmem:[%s4905_s16 + $0x354] sm:$0xff] }
 0x126   : > { %4595 = vmatmul.mubr.msk.bf16.gmra.mrb[124].mxu0 %vm676_vm1, %v3761_v4  ;;  %v1875_v15 = vmul.bf16 %v5786_v46, %v3696_v2  ;;  %v5796_v33 = vpop.f32.mrb[30].mxu1  ;;  %v3687_v3 = vld [vmem:[%s4905_s16 + $0x308] sm:$0xf] }
 0x127   : > { %996 = vst [vmem:[%s5633_s22 + $0x40] sm:$0xff] %v919_v37  ;;  %v922_v18 = vadd.f32 %v4067_v32, %v5703_v36  ;;  %4598 = vmatprep.mubr.msk.bf16.mxu0 %vm4830_vm0, %v6197_v22  ;;  %v4493_v20 = vpop.f32.mrb[31].mxu1  ;;  %v3698_v2 = vld [vmem:[%s4905_s16 + $0x348] sm:$0xff]  ;;  %v5804_v32 = vld [vmem:[%s4897_s9 + $0xb0] sm:$0xf] }
 0x128   : > { %v3772_v24 = vcombine.high %v1873_v38, %v1875_v15  ;;  %v1866_v34 = vmul.bf16 %v5804_v32, %v3687_v3 }
 0x129   : > { %997 = vst [vmem:[%s5633_s22 + $0x48] sm:$0xff] %v922_v18  ;;  %v4068_v40 = vpop.f32.mrb[20].mxu0  ;;  %2358 = vmatmul.mubr.bf16.gmra.mrb[136].mxu1 %v3768_v10  ;;  %v1868_v18 = vmul.bf16 %v5809_v29, %v3689_v26 }
 0x12a   : > { %v4069_v4 = vpop.f32.mrb[21].mxu0  ;;  %2365 = vmatprep.mubr.bf16.mxu1 %v3772_v24 }
 0x12b   : > { %v4070_v36 = vadd.f32 %v4069_v4, %v4068_v40  ;;  %v4071_v25 = vpop.f32.mrb[22].mxu0  ;;  %v5813_v40 = vld [vmem:[%s4897_s9 + $0xf0] sm:$0xff]  ;;  %v3767_v26 = vcombine.low %v1866_v34, %v1868_v18 }
 0x12c   : > { %v4072_v37 = vpop.f32.mrb[23].mxu0  ;;  %6207 = vst [vmem:[#allocation2_spill] sm:$0xff] %v5813_v40  ;;  %v1877_v39 = vmul.bf16 %v5813_v40, %v3698_v2  ;;  %v5840_v18 = vld [vmem:[%s4897_s9 + $0xd4] sm:$0xf] }
 0x12d   : > { %v927_v50 = vadd.f32 %v4070_v36, %v5731_v16  ;;  %v4073_v52 = vadd.f32 %v4072_v37, %v4071_v25  ;;  %v5817_v16 = vld [vmem:[%s4897_s9 + $0xfc] sm:$0xff]  ;;  %v3771_v36 = vcombine.low %v1873_v38, %v1875_v15  ;;  %6210 = vst [vmem:[#allocation5_spill] sm:$0xff] %v5840_v18 }
 0x12e   : > { %4599 = vmatmul.mubr.msk.bf16.gmra.mrb[128].mxu0 %vm676_vm1, %v3764_v27  ;;  %6208 = vst [vmem:[#allocation3_spill] sm:$0xff] %v5817_v16  ;;  %v1879_v10 = vmul.bf16 %v5817_v16, %v3700_v12  ;;  %v5824_v27 = vpop.f32.mrb[32].mxu1  ;;  %v3691_v12 = vld [vmem:[%s4905_s16 + $0x320] sm:$0xf] }
 0x12f   : > { %998 = vst [vmem:[%s5633_s22 + $0x50] sm:$0xff] %v927_v50  ;;  %v930_v4 = vadd.f32 %v4073_v52, %v5734_v41  ;;  %4602 = vmatprep.mubr.msk.bf16.mxu0 %vm4830_vm0, %v6197_v22  ;;  %v4496_v3 = vpop.f32.mrb[33].mxu1  ;;  %v3693_v52 = vld [vmem:[%s4905_s16 + $0x32c] sm:$0xf]  ;;  %v3702_v16 = vld [vmem:[%s4905_s16 + $0x360] sm:$0xff] }
 0x130   : > { %v5827_v20 = vpop.f32.mrb[34].mxu1  ;;  %v3775_v2 = vcombine.high %v1877_v39, %v1879_v10  ;;  %v5835_v3 = vld [vmem:[%s4897_s9 + $0xc8] sm:$0xf] }
 0x131   : > { %999 = vst [vmem:[%s5633_s22 + $0x58] sm:$0xff] %v930_v4  ;;  %v4074_v24 = vpop.f32.mrb[24].mxu0  ;;  %v4497_v50 = vpop.f32.mrb[35].mxu1  ;;  %v3704_v4 = vld [vmem:[%s4905_s16 + $0x36c] sm:$0xff]  ;;  %2366 = vmatmul.mubr.bf16.gmra.mrb[140].mxu1 %v3771_v36  ;;  %6209 = vst [vmem:[#allocation4_spill] sm:$0xff] %v5835_v3  ;;  %v1870_v34 = vmul.bf16 %v5835_v3, %v3691_v12 }
 0x132   : > { %v4075_v25 = vpop.f32.mrb[25].mxu0  ;;  %2373 = vmatprep.mubr.bf16.mxu1 %v3775_v2 }
 0x133   : > { %v4076_v41 = vadd.f32 %v4075_v25, %v4074_v24  ;;  %v4077_v37 = vpop.f32.mrb[26].mxu0  ;;  %v1872_v24 = vmul.bf16 %v5840_v18, %v3693_v52  ;;  %v5844_v25 = vld [vmem:[%s4897_s9 + $0x108] sm:$0xff]  ;;  %v3706_v18 = vld [vmem:[%s4905_s16 + $0x378] sm:$0x33] }
 0x134   : > { %v4078_v40 = vpop.f32.mrb[27].mxu0  ;;  %6211 = vst [vmem:[#allocation6_spill] sm:$0xff] %v5844_v25  ;;  %v1881_v50 = vmul.bf16 %v5844_v25, %v3702_v16  ;;  %v3697_v25 = vld [vmem:[%s4905_s16 + $0x344] sm:$0xf] }
 0x135   : > { %v935_v38 = vadd.f32 %v4076_v41, %v5762_v31  ;;  %v4079_v15 = vadd.f32 %v4078_v40, %v4077_v37  ;;  %v5848_v31 = vld [vmem:[%s4897_s9 + $0x114] sm:$0xff]  ;;  %v3774_v41 = vcombine.low %v1877_v39, %v1879_v10  ;;  %v3770_v52 = vcombine.low %v1870_v34, %v1872_v24  ;;  %v5866_v10 = vld [vmem:[%s4897_s9 + $0xe0] sm:$0xf]  ;;  %v5870_v24 = vld [vmem:[%s4897_s9 + $0xec] sm:$0xf] }
 0x136   : > { %4603 = vmatmul.mubr.msk.bf16.gmra.mrb[132].mxu0 %vm676_vm1, %v3767_v26  ;;  %6212 = vst [vmem:[#allocation7_spill] sm:$0xff] %v5848_v31  ;;  %v1883_v40 = vmul.bf16 %v5848_v31, %v3704_v4  ;;  %v5855_v26 = vpop.f32.mrb[36].mxu1  ;;  %6213 = vst [vmem:[#allocation8_spill] sm:$0xff] %v5866_v10 }
 0x137   : > { %1000 = vst [vmem:[%s5633_s22 + $0x60] sm:$0xff] %v935_v38  ;;  %v938_v36 = vadd.f32 %v4079_v15, %v5765_v13  ;;  %4606 = vmatprep.mubr.msk.bf16.mxu0 %vm4830_vm0, %v6197_v22  ;;  %v4500_v12 = vpop.f32.mrb[37].mxu1  ;;  %v3695_v38 = vld [vmem:[%s4905_s16 + $0x338] sm:$0xf]  ;;  %6214 = vst [vmem:[#allocation9_spill] sm:$0xff] %v5870_v24 }
 0x138   : > { %v5858_v16 = vpop.f32.mrb[38].mxu1  ;;  %v3778_v4 = vcombine.high %v1881_v50, %v1883_v40  ;;  %v1874_v34 = vmul.bf16 %v5866_v10, %v3695_v38 }
 0x139   : > { %1001 = vst [vmem:[%s5633_s22 + $0x68] sm:$0xff] %v938_v36  ;;  %v4080_v2 = vpop.f32.mrb[28].mxu0  ;;  %v4501_v31 = vpop.f32.mrb[39].mxu1  ;;  %2374 = vmatmul.mubr.bf16.gmra.mrb[144].mxu1 %v3774_v41 }
 0x13a   : > { %v4081_v37 = vpop.f32.mrb[29].mxu0  ;;  %2381 = vmatprep.mubr.bf16.mxu1 %v3778_v4  ;;  %v1876_v31 = vmul.bf16 %v5870_v24, %v3697_v25  ;;  %v3841_v24 = vld [vmem:[%s4905_s16 + $0x390] sm:$0xff] }
 0x13b   : > { %v4082_v13 = vadd.f32 %v4081_v37, %v4080_v2  ;;  %v4083_v15 = vpop.f32.mrb[30].mxu0  ;;  %v5874_v2 = vld [vmem:[%s4897_s9 + $0x120] sm:$0x33] }
 0x13c   : > { %v4084_v3 = vpop.f32.mrb[31].mxu0  ;;  %6215 = vst [vmem:[#allocation10_spill] sm:$0xff] %v5874_v2  ;;  %v1885_v12 = vmul.bf16 %v5874_v2, %v3706_v18  ;;  %v3773_v18 = vcombine.low %v1874_v34, %v1876_v31  ;;  %v3839_v2 = vld [vmem:[%s4905_s16 + $0x384] sm:$0xff] }
 0x13d   : > { %v943_v36 = vadd.f32 %v4082_v13, %v5793_v62  ;;  %v4085_v39 = vadd.f32 %v4084_v3, %v4083_v15  ;;  %v5881_v3 = vpop.f32.mrb[40].mxu1  ;;  %v3699_v13 = vld [vmem:[%s4905_s16 + $0x350] sm:$0xf]  ;;  %v5897_v31 = vld [vmem:[%s4897_s9 + $0x104] sm:$0xf] }
 0x13e   : > { %4607 = vmatmul.mubr.msk.bf16.gmra.mrb[136].mxu0 %vm676_vm1, %v3770_v52  ;;  %v4504_v37 = vpop.f32.mrb[41].mxu1  ;;  %v3777_v52 = vcombine.low %v1881_v50, %v1883_v40  ;;  %v3781_v38 = vcombine.high %v1885_v12, %v1885_v12  ;;  %v5892_v40 = vld [vmem:[%s4897_s9 + $0xf8] sm:$0xf] }
 0x13f   : > { %1002 = vst [vmem:[%s5633_s22 + $0x70] sm:$0xff] %v943_v36  ;;  %v946_v62 = vadd.f32 %v4085_v39, %v5796_v33  ;;  %4610 = vmatprep.mubr.msk.bf16.mxu0 %vm4830_vm0, %v6197_v22  ;;  %v5884_v4 = vpop.f32.mrb[42].mxu1  ;;  %v3701_v39 = vld [vmem:[%s4905_s16 + $0x35c] sm:$0xf]  ;;  %v1878_v34 = vmul.bf16 %v5892_v40, %v3699_v13  ;;  %v2610_v37 = vmul.bf16 %v5470_v30, %v3839_v2 }
 0x140   : > { %v4505_v36 = vpop.f32.mrb[43].mxu1 }
 0x141   : > { %1003 = vst [vmem:[%s5633_s22 + $0x78] sm:$0xff] %v946_v62  ;;  %v4086_v41 = vpop.f32.mrb[32].mxu0  ;;  %2382 = vmatmul.mubr.bf16.gmra.mrb[148].mxu1 %v3777_v52  ;;  %v3705_v36 = vld [vmem:[%s4905_s16 + $0x374] sm:$0xf] }
 0x142   : > { %v4087_v25 = vpop.f32.mrb[33].mxu0  ;;  %2389 = vmatprep.mubr.bf16.mxu1 %v3781_v38  ;;  %v3780_v38 = vcombine.low %v1885_v12, %v1885_v12 }
 0x143   : > { %v4088_v33 = vadd.f32 %v4087_v25, %v4086_v41  ;;  %v4089_v15 = vpop.f32.mrb[34].mxu0  ;;  %v1880_v41 = vmul.bf16 %v5897_v31, %v3701_v39  ;;  %v2612_v25 = vmul.bf16 %v5474_v5, %v3841_v24 }
 0x144   : > { %v4090_v10 = vpop.f32.mrb[35].mxu0 }
 0x145   : > { %v951_v62 = vadd.f32 %v4088_v33, %v5824_v27  ;;  %v4091_v50 = vadd.f32 %v4090_v10, %v4089_v15  ;;  %v5906_v10 = vpop.f32.mrb[44].mxu1  ;;  %v3776_v5 = vcombine.low %v1878_v34, %v1880_v41  ;;  %v3926_v24 = vcombine.high %v2610_v37, %v2612_v25  ;;  %v3703_v15 = vld [vmem:[%s4905_s16 + $0x368] sm:$0xf]  ;;  %v5918_v34 = vld [vmem:[%s4897_s9 + $0x110] sm:$0xf] }
 0x146   : > { %4611 = vmatmul.mubr.msk.bf16.gmra.mrb[140].mxu0 %vm676_vm1, %v3773_v18  ;;  %v4508_v18 = vpop.f32.mrb[45].mxu1  ;;  %6216 = vst [vmem:[#allocation11_spill] sm:$0xff] %v5918_v34  ;;  %v1882_v41 = vmul.bf16 %v5918_v34, %v3703_v15 }
 0x147   : > { %1004 = vst [vmem:[%s5633_s22 + $0x80] sm:$0xff] %v951_v62  ;;  %v954_v27 = vadd.f32 %v4091_v50, %v5827_v20  ;;  %4614 = vmatprep.mubr.msk.bf16.mxu0 %vm4830_vm0, %v6197_v22  ;;  %v5909_v30 = vpop.f32.mrb[46].mxu1  ;;  %v3843_v62 = vld [vmem:[%s4905_s16 + $0x39c] sm:$0xff]  ;;  %v3845_v50 = vld [vmem:[%s4905_s16 + $0x3a8] sm:$0xff] }
 0x148   : > { %v4509_v33 = vpop.f32.mrb[47].mxu1 }
 0x149   : > { %1005 = vst [vmem:[%s5633_s22 + $0x88] sm:$0xff] %v954_v27  ;;  %v4092_v52 = vpop.f32.mrb[36].mxu0  ;;  %2390 = vmatmul.mubr.bf16.gmra.mrb[152].mxu1 %v3780_v38  ;;  %v2616_v38 = vmul.bf16 %v5497_v0, %v3845_v50 }
 0x14a   : > { %v4093_v13 = vpop.f32.mrb[37].mxu0  ;;  %3066 = vmatprep.mubr.bf16.mxu1 %v3926_v24 }
 0x14b   : > { %v4094_v2 = vadd.f32 %v4093_v13, %v4092_v52  ;;  %v4095_v20 = vpop.f32.mrb[38].mxu0  ;;  %v5922_v52 = vld [vmem:[%s4897_s9 + $0x11c] sm:$0xf] }
 0x14c   : > { %v4096_v39 = vpop.f32.mrb[39].mxu0  ;;  %6217 = vst [vmem:[#allocation12_spill] sm:$0xff] %v5922_v52  ;;  %v1884_v18 = vmul.bf16 %v5922_v52, %v3705_v36  ;;  %v3707_v52 = vld [vmem:[%s4905_s16 + $0x380] sm:$0x3] }
 0x14d   : > { %v959_v27 = vadd.f32 %v4094_v2, %v5855_v26  ;;  %v4097_v12 = vadd.f32 %v4096_v39, %v4095_v20  ;;  %v2614_v26 = vmul.bf16 %v5493_v61, %v3843_v62  ;;  %v3925_v20 = vcombine.low %v2610_v37, %v2612_v25  ;;  %v3847_v61 = vld [vmem:[%s4905_s16 + $0x3b4] sm:$0xff]  ;;  %v3849_v62 = vld [vmem:[%s4905_s16 + $0x3c0] sm:$0xff]  ;;  %v5941_v37 = vld [vmem:[%s4897_s9 + $0x128] sm:$0x3] }
 0x14e   : > { %4615 = vmatmul.mubr.msk.bf16.gmra.mrb[144].mxu0 %vm676_vm1, %v3776_v5  ;;  %v5931_v5 = vpop.f32.mrb[48].mxu1  ;;  %v1886_v25 = vmul.bf16 %v5941_v37, %v3707_v52 }
 0x14f   : > { %1006 = vst [vmem:[%s5633_s22 + $0x90] sm:$0xff] %v959_v27  ;;  %v962_v13 = vadd.f32 %v4097_v12, %v5858_v16  ;;  %4618 = vmatprep.mubr.msk.bf16.mxu0 %vm4830_vm0, %v6197_v22  ;;  %v4512_v2 = vpop.f32.mrb[49].mxu1  ;;  %v3779_v16 = vcombine.low %v1882_v41, %v1884_v18  ;;  %v3929_v12 = vcombine.high %v2614_v26, %v2616_v38 }
 0x150   : > { %v985_v15 = vpop.f32.mrb[50].mxu1  ;;  %v2618_v41 = vmul.bf16 %v5514_v56, %v3847_v61  ;;  %v2620_v18 = vmul.bf16 %v5518_v45, %v3849_v62  ;;  %v3928_v52 = vcombine.low %v2614_v26, %v2616_v38  ;;  %v3782_v45 = vcombine.low %v1886_v25, %v1886_v25 }
 0x151   : > { %1007 = vst [vmem:[%s5633_s22 + $0x98] sm:$0xff] %v962_v13  ;;  %v4098_v24 = vpop.f32.mrb[40].mxu0  ;;  %v4513_v27 = vpop.f32.mrb[51].mxu1  ;;  %3067 = vmatmul.mubr.bf16.vlgmr.msra.gmra.mrb[156].mxu1 %v3925_v20 }
 0x152   : > { %v4099_v33 = vpop.f32.mrb[41].mxu0  ;;  %4684 = vmatpush3.bf16.msra.mxu1 %v5567_v6  ;;  %3074 = vmatprep.mubr.bf16.mxu1 %v3929_v12  ;;  %v3932_v20 = vcombine.high %v2618_v41, %v2620_v18 }
 0x153   : > { %v4100_v36 = vadd.f32 %v4099_v33, %v4098_v24  ;;  %v4101_v39 = vpop.f32.mrb[42].mxu0  ;;  %4683 = vmatprep.subr.bf16.mxu1 %v6197_v22 }
 0x154   : > { %v4102_v34 = vpop.f32.mrb[43].mxu0 }
 0x155   : > { %v967_v0 = vadd.f32 %v4100_v36, %v5881_v3  ;;  %v4103_v50 = vadd.f32 %v4102_v34, %v4101_v39  ;;  %v4147_v3 = vpop.f32.mrb[52].mxu1  ;;  %v3853_v36 = vld [vmem:[%s4905_s16 + $0x3d8] sm:$0xff] }
 0x156   : > { %4619 = vmatmul.mubr.msk.bf16.gmra.mrb[148].mxu0 %vm676_vm1, %v3779_v16  ;;  %v4148_v34 = vpop.f32.mrb[53].mxu1  ;;  %4685 = vmatpush3.bf16.msra.mxu1 %v5608_v1  ;;  %v3851_v16 = vld [vmem:[%s4905_s16 + $0x3cc] sm:$0xff]  ;;  %v2624_v1 = vmul.bf16 %v5549_v35, %v3853_v36 }
 0x157   : > { %1008 = vst [vmem:[%s5633_s22 + $0xa0] sm:$0xff] %v967_v0  ;;  %v970_v13 = vadd.f32 %v4103_v50, %v5884_v4  ;;  %4622 = vmatprep.mubr.msk.bf16.mxu0 %vm4830_vm0, %v6197_v22  ;;  %v4149_v56 = vadd.f32 %v4148_v34, %v4147_v3  ;;  %v4150_v2 = vpop.f32.mrb[54].mxu1  ;;  %v2622_v38 = vmul.bf16 %v5543_v43, %v3851_v16 }
 0x158   : > { %v4151_v15 = vpop.f32.mrb[55].mxu1  ;;  %v3931_v50 = vcombine.low %v2618_v41, %v2620_v18 }
 0x159   : > { %1009 = vst [vmem:[%s5633_s22 + $0xa8] sm:$0xff] %v970_v13  ;;  %v4104_v6 = vpop.f32.mrb[44].mxu0  ;;  %v4152_v27 = vadd.f32 %v4151_v15, %v4150_v2  ;;  %3075 = vmatmul.mubr.bf16.gmra.mrb[160].mxu1 %v3928_v52  ;;  %v3935_v43 = vcombine.high %v2622_v38, %v2624_v1  ;;  %v3857_v2 = vld [vmem:[%s4905_s16 + $0x3f0] sm:$0xff] }
 0x15a   : > { %v4105_v24 = vpop.f32.mrb[45].mxu0  ;;  %3082 = vmatprep.mubr.bf16.mxu1 %v3932_v20  ;;  %v2628_v15 = vmul.bf16 %v5597_v8, %v3857_v2  ;;  %v3848_v8 = vld [vmem:[%s4905_s16 + $0x3bc] sm:$0xf] }
 0x15b   : > { %v4106_v4 = vadd.f32 %v4105_v24, %v4104_v6  ;;  %v4107_v33 = vpop.f32.mrb[46].mxu0  ;;  %v3844_v6 = vld [vmem:[%s4905_s16 + $0x3a4] sm:$0xf] }
 0x15c   : > { %v4108_v39 = vpop.f32.mrb[47].mxu0  ;;  %v3855_v24 = vld [vmem:[%s4905_s16 + $0x3e4] sm:$0xff] }
 0x15d   : > { %v975_v12 = vadd.f32 %v4106_v4, %v5906_v10  ;;  %v4109_v26 = vadd.f32 %v4108_v39, %v4107_v33  ;;  %v4153_v10 = vpop.f32.mrb[56].mxu1  ;;  %v2615_v33 = vmul.bf16 %v5578_v60, %v3844_v6  ;;  %v2626_v18 = vmul.bf16 %v5591_v55, %v3855_v24 }
 0x15e   : > { %4623 = vmatmul.mubr.msk.bf16.gmra.mrb[152].mxu0 %vm676_vm1, %v3782_v45  ;;  %v4154_v0 = vpop.f32.mrb[57].mxu1 }
 0x15f   : > { %1010 = vst [vmem:[%s5633_s22 + $0xb0] sm:$0xff] %v975_v12  ;;  %v978_v61 = vadd.f32 %v4109_v26, %v5909_v30  ;;  %4630 = vmatprep.mubr.msk.bf16.mxu0 %vm4830_vm0, %v6197_v22  ;;  %v4155_v13 = vadd.f32 %v4154_v0, %v4153_v10  ;;  %v4156_v3 = vpop.f32.mrb[58].mxu1  ;;  %v3846_v30 = vld [vmem:[%s4905_s16 + $0x3b0] sm:$0xf]  ;;  %v3938_v26 = vcombine.high %v2626_v18, %v2628_v15  ;;  %v3859_v0 = vld [vmem:[%s4905_s16 + $0x3fc] sm:$0xff] }
 0x160   : > { %v4157_v52 = vpop.f32.mrb[59].mxu1  ;;  %v2617_v41 = vmul.bf16 %v5587_v44, %v3846_v30 }
 0x161   : > { %1011 = vst [vmem:[%s5633_s22 + $0xb8] sm:$0xff] %v978_v61  ;;  %v4110_v62 = vpop.f32.mrb[48].mxu0  ;;  %v4158_v20 = vadd.f32 %v4157_v52, %v4156_v3  ;;  %3083 = vmatmul.mubr.bf16.gmra.mrb[164].mxu1 %v3931_v50  ;;  %v3861_v50 = vld [vmem:[%s4905_s16 + $0x408] sm:$0xff] }
 0x162   : > { %v4111_v25 = vpop.f32.mrb[49].mxu0  ;;  %3090 = vmatprep.mubr.bf16.mxu1 %v3935_v43  ;;  %v3930_v55 = vcombine.low %v2615_v33, %v2617_v41  ;;  %v2632_v6 = vmul.bf16 %v5656_v51, %v3861_v50  ;;  %v3854_v33 = vld [vmem:[%s4905_s16 + $0x3e0] sm:$0xf]  ;;  %v3863_v41 = vld [vmem:[%s4905_s16 + $0x414] sm:$0xff]  ;;  %v3867_v50 = vld [vmem:[%s4905_s16 + $0x42c] sm:$0xff] }
 0x163   : > { %v4112_v35 = vadd.f32 %v4111_v25, %v4110_v62  ;;  %v4113_v34 = vpop.f32.mrb[50].mxu0  ;;  %v3850_v62 = vld [vmem:[%s4905_s16 + $0x3c8] sm:$0xf] }
 0x164   : > { %v4114_v45 = vpop.f32.mrb[51].mxu0  ;;  %v3937_v34 = vcombine.low %v2626_v18, %v2628_v15  ;;  %v2634_v15 = vmul.bf16 %v5689_v14, %v3863_v41 }
 0x165   : > { %v983_v4 = vadd.f32 %v4112_v35, %v5931_v5  ;;  %v4159_v5 = vpop.f32.mrb[60].mxu1  ;;  %v3852_v45 = vld [vmem:[%s4905_s16 + $0x3d4] sm:$0xf] }
 0x166   : > { %4631 = vmatmul.mubr.msk.bf16.vlgmr.msra.gmra.mrb[156].mxu0 %vm676_vm1, %v5500_v17  ;;  %v4160_v16 = vpop.f32.mrb[61].mxu1  ;;  %v3934_v17 = vcombine.low %v2622_v38, %v2624_v1  ;;  %v2619_v38 = vmul.bf16 %v5640_v48, %v3848_v8  ;;  %v2630_v1 = vmul.bf16 %v5652_v47, %v3859_v0  ;;  %v2623_v18 = vmul.bf16 %v5679_v53, %v3852_v45  ;;  %v3858_v0 = vld [vmem:[%s4905_s16 + $0x3f8] sm:$0xf]  ;;  %v3862_v45 = vld [vmem:[%s4905_s16 + $0x410] sm:$0xf] }
 0x167   : > { %1012 = vst [vmem:[%s5633_s22 + $0xc0] sm:$0xf] %v983_v4  ;;  %4634 = vmatprep.mubr.msk.bf16.mxu0 %vm4830_vm0, %v6197_v22  ;;  %v4161_v39 = vadd.f32 %v4160_v16, %v4159_v5  ;;  %v4162_v44 = vpop.f32.mrb[62].mxu1  ;;  %v3865_v5 = vld [vmem:[%s4905_s16 + $0x420] sm:$0xff] }
 0x168   : > { %v4163_v10 = vpop.f32.mrb[63].mxu1  ;;  %v3941_v47 = vcombine.high %v2630_v1, %v2632_v6 }
 0x169   : > { %v1658_v60 = vpop.f32.mrb[52].mxu0  ;;  %v4164_v3 = vadd.f32 %v4163_v10, %v4162_v44  ;;  %3091 = vmatmul.mubr.bf16.gmra.mrb[168].mxu1 %v3934_v17  ;;  %v3940_v44 = vcombine.low %v2630_v1, %v2632_v6  ;;  %v3856_v10 = vld [vmem:[%s4905_s16 + $0x3ec] sm:$0xf]  ;;  %v2638_v6 = vmul.bf16 %v5720_v42, %v3867_v50 }
 0x16a   : > { %v1659_v36 = vadd.f32 %v4149_v56, %v1658_v60  ;;  %v4520_v12 = vpop.f32.mrb[53].mxu0  ;;  %3098 = vmatprep.mubr.bf16.mxu1 %v3938_v26  ;;  %v2621_v56 = vmul.bf16 %v5648_v59, %v3850_v62  ;;  %v2627_v1 = vmul.bf16 %v5711_v11, %v3856_v10 }
 0x16b   : > { %v1661_v61 = vpop.f32.mrb[54].mxu0 }
 0x16c   : > { %3633 = vst [vmem:[%s5633_s22 + $0xc8] sm:$0xff] %v1659_v36  ;;  %v1662_v25 = vadd.f32 %v4152_v27, %v1661_v61  ;;  %v4521_v43 = vpop.f32.mrb[55].mxu0  ;;  %v4165_v27 = vpop.f32.mrb[64].mxu1  ;;  %v3933_v2 = vcombine.low %v2619_v38, %v2621_v56  ;;  %v2636_v36 = vmul.bf16 %v5693_v21, %v3865_v5 }
 0x16d   : > { %v4166_v35 = vpop.f32.mrb[65].mxu1 }
 0x16e   : > { %3634 = vst [vmem:[%s5633_s22 + $0xd0] sm:$0xff] %v1662_v25  ;;  %4635 = vmatmul.mubr.msk.bf16.gmra.mrb[160].mxu0 %vm676_vm1, %v3930_v55  ;;  %v4167_v30 = vadd.f32 %v4166_v35, %v4165_v27  ;;  %v4168_v59 = vpop.f32.mrb[66].mxu1  ;;  %v3944_v14 = vcombine.high %v2634_v15, %v2636_v36  ;;  %v3869_v25 = vld [vmem:[%s4905_s16 + $0x438] sm:$0xff]  ;;  %v3943_v35 = vcombine.low %v2634_v15, %v2636_v36 }
 0x16f   : > { %4638 = vmatprep.mubr.msk.bf16.mxu0 %vm4830_vm0, %v6197_v22  ;;  %v4169_v51 = vpop.f32.mrb[67].mxu1  ;;  %v2640_v27 = vmul.bf16 %v5724_v9, %v3869_v25 }
 0x170   : > { %v4170_v16 = vadd.f32 %v4169_v51, %v4168_v59  ;;  %v3873_v51 = vld [vmem:[%s4905_s16 + $0x450] sm:$0xff] }
 0x171   : > { %v1666_v48 = vpop.f32.mrb[56].mxu0  ;;  %3099 = vmatmul.mubr.bf16.gmra.mrb[172].mxu1 %v3937_v34  ;;  %v3947_v42 = vcombine.high %v2638_v6, %v2640_v27  ;;  %v3946_v15 = vcombine.low %v2638_v6, %v2640_v27  ;;  %v3868_v27 = vld [vmem:[%s4905_s16 + $0x434] sm:$0xf] }
 0x172   : > { %v1667_v52 = vadd.f32 %v4155_v13, %v1666_v48  ;;  %v4524_v24 = vpop.f32.mrb[57].mxu0  ;;  %3106 = vmatprep.mubr.bf16.mxu1 %v3941_v47  ;;  %v2625_v13 = vmul.bf16 %v5685_v7, %v3854_v33 }
 0x173   : > { %v1669_v4 = vpop.f32.mrb[58].mxu0 }
 0x174   : > { %3635 = vst [vmem:[%s5633_s22 + $0xd8] sm:$0xff] %v1667_v52  ;;  %v1670_v60 = vadd.f32 %v4158_v20, %v1669_v4  ;;  %v4525_v17 = vpop.f32.mrb[59].mxu0  ;;  %v4171_v20 = vpop.f32.mrb[68].mxu1  ;;  %v3936_v61 = vcombine.low %v2623_v18, %v2625_v13  ;;  %v3871_v4 = vld [vmem:[%s4905_s16 + $0x444] sm:$0xff]  ;;  %v2644_v18 = vmul.bf16 %v5755_v57, %v3873_v51 }
 0x175   : > { %v4172_v12 = vpop.f32.mrb[69].mxu1  ;;  %v2642_v17 = vmul.bf16 %v5751_v49, %v3871_v4 }
 0x176   : > { %3636 = vst [vmem:[%s5633_s22 + $0xe0] sm:$0xff] %v1670_v60  ;;  %4639 = vmatmul.mubr.msk.bf16.gmra.mrb[164].mxu0 %vm676_vm1, %v3933_v2  ;;  %v4173_v26 = vadd.f32 %v4172_v12, %v4171_v20  ;;  %v4174_v7 = vpop.f32.mrb[70].mxu1  ;;  %v3860_v2 = vld [vmem:[%s4905_s16 + $0x404] sm:$0xf] }
 0x177   : > { %4642 = vmatprep.mubr.msk.bf16.mxu0 %vm4830_vm0, %v6197_v22  ;;  %v4175_v21 = vpop.f32.mrb[71].mxu1  ;;  %v2631_v60 = vmul.bf16 %v5742_v19, %v3860_v2  ;;  %v3950_v49 = vcombine.high %v2642_v17, %v2644_v18 }
 0x178   : > { %v4176_v38 = vadd.f32 %v4175_v21, %v4174_v7  ;;  %v3875_v7 = vld [vmem:[%s4905_s16 + $0x45c] sm:$0xff] }
 0x179   : > { %v1674_v53 = vpop.f32.mrb[60].mxu0  ;;  %3107 = vmatmul.mubr.bf16.gmra.mrb[176].mxu1 %v3940_v44  ;;  %v3864_v44 = vld [vmem:[%s4905_s16 + $0x41c] sm:$0xf] }
 0x17a   : > { %v1675_v55 = vadd.f32 %v4161_v39, %v1674_v53  ;;  %v4528_v8 = vpop.f32.mrb[61].mxu0  ;;  %3114 = vmatprep.mubr.bf16.mxu1 %v3944_v14  ;;  %v2629_v39 = vmul.bf16 %v5716_v63, %v3858_v0  ;;  %v2635_v21 = vmul.bf16 %v5773_v58, %v3864_v44  ;;  %v2646_v0 = vmul.bf16 %v5782_v28, %v3875_v7 }
 0x17b   : > { %v1677_v62 = vpop.f32.mrb[62].mxu0  ;;  %v3866_v8 = vld [vmem:[%s4905_s16 + $0x428] sm:$0xf] }
 0x17c   : > { %3637 = vst [vmem:[%s5633_s22 + $0xe8] sm:$0xff] %v1675_v55  ;;  %v1678_v43 = vadd.f32 %v4164_v3, %v1677_v62  ;;  %v4529_v56 = vpop.f32.mrb[63].mxu0  ;;  %v4177_v3 = vpop.f32.mrb[72].mxu1  ;;  %v3939_v59 = vcombine.low %v2627_v1, %v2629_v39 }
 0x17d   : > { %v4178_v48 = vpop.f32.mrb[73].mxu1 }
 0x17e   : > { %3638 = vst [vmem:[%s5633_s22 + $0xf0] sm:$0xff] %v1678_v43  ;;  %4643 = vmatmul.mubr.msk.bf16.gmra.mrb[168].mxu0 %vm676_vm1, %v3936_v61  ;;  %v4179_v52 = vadd.f32 %v4178_v48, %v4177_v3  ;;  %v4180_v63 = vpop.f32.mrb[74].mxu1  ;;  %v3877_v61 = vld [vmem:[%s4905_s16 + $0x468] sm:$0xff]  ;;  %v3879_v48 = vld [vmem:[%s4905_s16 + $0x474] sm:$0xff] }
 0x17f   : > { %4646 = vmatprep.mubr.msk.bf16.mxu0 %vm4830_vm0, %v6197_v22  ;;  %v4181_v9 = vpop.f32.mrb[75].mxu1  ;;  %v2648_v50 = vmul.bf16 %v5786_v46, %v3877_v61 }
 0x180   : > { %v4182_v41 = vadd.f32 %v4181_v9, %v4180_v63 }
 0x181   : > { %v1682_v11 = vpop.f32.mrb[64].mxu0  ;;  %3115 = vmatmul.mubr.bf16.gmra.mrb[180].mxu1 %v3943_v35  ;;  %v3953_v28 = vcombine.high %v2646_v0, %v2648_v50  ;;  %v3881_v35 = vld [vmem:[%s4905_s16 + $0x480] sm:$0xff]  ;;  %v3952_v51 = vcombine.low %v2646_v0, %v2648_v50 }
 0x182   : > { %v1683_v34 = vadd.f32 %v4167_v30, %v1682_v11  ;;  %v4532_v24 = vpop.f32.mrb[65].mxu0  ;;  %3122 = vmatprep.mubr.bf16.mxu1 %v3947_v42  ;;  %v2633_v30 = vmul.bf16 %v5747_v23, %v3862_v45  ;;  %v3870_v11 = vld [vmem:[%s4905_s16 + $0x440] sm:$0xf] }
 0x183   : > { %v1685_v47 = vpop.f32.mrb[66].mxu0  ;;  %v6218_v42 = vld [vmem:[#allocation2_spill] sm:$0xff] }
 0x184   : > { %3639 = vst [vmem:[%s5633_s22 + $0xf8] sm:$0xff] %v1683_v34  ;;  %v1686_v33 = vadd.f32 %v4170_v16, %v1685_v47  ;;  %v4533_v5 = vpop.f32.mrb[67].mxu0  ;;  %v4183_v16 = vpop.f32.mrb[76].mxu1  ;;  %v3942_v12 = vcombine.low %v2631_v60, %v2633_v30  ;;  %v2650_v2 = vmul.bf16 %v6218_v42, %v3879_v48  ;;  %v6219_v47 = vld [vmem:[#allocation3_spill] sm:$0xff]  ;;  %v6226_v48 = vld [vmem:[#allocation10_spill] sm:$0xff] }
 0x185   : > { %v4184_v13 = vpop.f32.mrb[77].mxu1  ;;  %v2652_v9 = vmul.bf16 %v6219_v47, %v3881_v35 }
 0x186   : > { %3640 = vst [vmem:[%s5633_s22 + $0x100] sm:$0xff] %v1686_v33  ;;  %4647 = vmatmul.mubr.msk.bf16.gmra.mrb[172].mxu0 %vm676_vm1, %v3939_v59  ;;  %v4185_v20 = vadd.f32 %v4184_v13, %v4183_v16  ;;  %v4186_v23 = vpop.f32.mrb[78].mxu1  ;;  %v2639_v59 = vmul.bf16 %v5804_v32, %v3868_v27  ;;  %v3883_v13 = vld [vmem:[%s4905_s16 + $0x48c] sm:$0xff] }
 0x187   : > { %4650 = vmatprep.mubr.msk.bf16.mxu0 %vm4830_vm0, %v6197_v22  ;;  %v4187_v57 = vpop.f32.mrb[79].mxu1  ;;  %v3956_v30 = vcombine.high %v2650_v2, %v2652_v9 }
 0x188   : > { %v4188_v10 = vadd.f32 %v4187_v57, %v4186_v23 }
 0x189   : > { %v1690_v19 = vpop.f32.mrb[68].mxu0  ;;  %3123 = vmatmul.mubr.bf16.gmra.mrb[184].mxu1 %v3946_v15  ;;  %v3885_v15 = vld [vmem:[%s4905_s16 + $0x498] sm:$0xff] }
 0x18a   : > { %v1691_v36 = vadd.f32 %v4173_v26, %v1690_v19  ;;  %v4536_v53 = vpop.f32.mrb[69].mxu0  ;;  %3130 = vmatprep.mubr.bf16.mxu1 %v3950_v49  ;;  %v2637_v26 = vmul.bf16 %v5778_v54, %v3866_v8  ;;  %v3874_v19 = vld [vmem:[%s4905_s16 + $0x458] sm:$0xf]  ;;  %v6223_v8 = vld [vmem:[#allocation7_spill] sm:$0xff] }
 0x18b   : > { %v1693_v55 = vpop.f32.mrb[70].mxu0  ;;  %v2656_v7 = vmul.bf16 %v6223_v8, %v3885_v15 }
 0x18c   : > { %3641 = vst [vmem:[%s5633_s22 + $0x108] sm:$0xff] %v1691_v36  ;;  %v1694_v14 = vadd.f32 %v4176_v38, %v1693_v55  ;;  %v4537_v62 = vpop.f32.mrb[71].mxu0  ;;  %v4189_v25 = vpop.f32.mrb[80].mxu1  ;;  %v3949_v38 = vcombine.low %v2642_v17, %v2644_v18  ;;  %v3945_v6 = vcombine.low %v2635_v21, %v2637_v26  ;;  %v3872_v17 = vld [vmem:[%s4905_s16 + $0x44c] sm:$0xf]  ;;  %v6222_v55 = vld [vmem:[#allocation6_spill] sm:$0xff] }
 0x18d   : > { %v4190_v43 = vpop.f32.mrb[81].mxu1  ;;  %v2654_v57 = vmul.bf16 %v6222_v55, %v3883_v13  ;;  %v3955_v62 = vcombine.low %v2650_v2, %v2652_v9  ;;  %v3888_v13 = vld [vmem:[%s4905_s16 + $0x4ac] sm:$0x3] }
 0x18e   : > { %3642 = vst [vmem:[%s5633_s22 + $0x110] sm:$0xff] %v1694_v14  ;;  %4651 = vmatmul.mubr.msk.bf16.gmra.mrb[176].mxu0 %vm676_vm1, %v3942_v12  ;;  %v4191_v1 = vadd.f32 %v4190_v43, %v4189_v25  ;;  %v4192_v54 = vpop.f32.mrb[82].mxu1  ;;  %v6220_v12 = vld [vmem:[#allocation4_spill] sm:$0xff]  ;;  %v3876_v43 = vld [vmem:[%s4905_s16 + $0x464] sm:$0xf]  ;;  %v2659_v8 = vmul.bf16 %v5941_v37, %v3888_v13 }
 0x18f   : > { %4654 = vmatprep.mubr.msk.bf16.mxu0 %vm4830_vm0, %v6197_v22  ;;  %v4193_v46 = vpop.f32.mrb[83].mxu1  ;;  %v2643_v49 = vmul.bf16 %v6220_v12, %v3872_v17 }
 0x190   : > { %v4194_v24 = vadd.f32 %v4193_v46, %v4192_v54  ;;  %v3887_v54 = vld [vmem:[%s4905_s16 + $0x4a4] sm:$0x33]  ;;  %v6225_v46 = vld [vmem:[#allocation9_spill] sm:$0xff] }
 0x191   : > { %v1698_v58 = vpop.f32.mrb[72].mxu0  ;;  %3131 = vmatmul.mubr.bf16.gmra.mrb[188].mxu1 %v3949_v38  ;;  %v2658_v35 = vmul.bf16 %v6226_v48, %v3887_v54 }
 0x192   : > { %v1699_v56 = vadd.f32 %v4179_v52, %v1698_v58  ;;  %v4540_v39 = vpop.f32.mrb[73].mxu0  ;;  %3138 = vmatprep.mubr.bf16.mxu1 %v3953_v28  ;;  %v2641_v52 = vmul.bf16 %v5809_v29, %v3870_v11  ;;  %v3959_v58 = vcombine.high %v2654_v57, %v2656_v7 }
 0x193   : > { %v1701_v3 = vpop.f32.mrb[74].mxu0  ;;  %v3878_v39 = vld [vmem:[%s4905_s16 + $0x470] sm:$0xf] }
 0x194   : > { %3643 = vst [vmem:[%s5633_s22 + $0x118] sm:$0xff] %v1699_v56  ;;  %v1702_v34 = vadd.f32 %v4182_v41, %v1701_v3  ;;  %v4541_v63 = vpop.f32.mrb[75].mxu0  ;;  %v4195_v45 = vpop.f32.mrb[84].mxu1  ;;  %v3948_v60 = vcombine.low %v2639_v59, %v2641_v52  ;;  %v2649_v11 = vmul.bf16 %v6225_v46, %v3878_v39  ;;  %v3958_v59 = vcombine.low %v2654_v57, %v2656_v7  ;;  %v6227_v7 = vld [vmem:[#allocation11_spill] sm:$0xff] }
 0x195   : > { %v4196_v4 = vpop.f32.mrb[85].mxu1 }
 0x196   : > { %3644 = vst [vmem:[%s5633_s22 + $0x120] sm:$0xff] %v1702_v34  ;;  %4655 = vmatmul.mubr.msk.bf16.gmra.mrb[180].mxu0 %vm676_vm1, %v3945_v6  ;;  %v4197_v41 = vadd.f32 %v4196_v4, %v4195_v45  ;;  %v4198_v29 = vpop.f32.mrb[86].mxu1  ;;  %v3962_v45 = vcombine.high %v2658_v35, %v2658_v35 }
 0x197   : > { %4658 = vmatprep.mubr.msk.bf16.mxu0 %vm4830_vm0, %v6197_v22  ;;  %v4199_v16 = vpop.f32.mrb[87].mxu1 }
 0x198   : > { %v4200_v53 = vadd.f32 %v4199_v16, %v4198_v29 }
 0x199   : > { %v1706_v32 = vpop.f32.mrb[76].mxu0  ;;  %3139 = vmatmul.mubr.bf16.gmra.mrb[192].mxu1 %v3952_v51  ;;  %v3880_v51 = vld [vmem:[%s4905_s16 + $0x47c] sm:$0xf] }
 0x19a   : > { %v1707_v33 = vadd.f32 %v4185_v20, %v1706_v32  ;;  %v4544_v5 = vpop.f32.mrb[77].mxu0  ;;  %3146 = vmatprep.mubr.bf16.mxu1 %v3956_v30  ;;  %v6221_v20 = vld [vmem:[#allocation5_spill] sm:$0xff] }
 0x19b   : > { %v1709_v18 = vpop.f32.mrb[78].mxu0  ;;  %v2645_v44 = vmul.bf16 %v6221_v20, %v3874_v19  ;;  %v3961_v19 = vcombine.low %v2658_v35, %v2658_v35  ;;  %v3884_v20 = vld [vmem:[%s4905_s16 + $0x494] sm:$0xf] }
 0x19c   : > { %3645 = vst [vmem:[%s5633_s22 + $0x128] sm:$0xff] %v1707_v33  ;;  %v1710_v36 = vadd.f32 %v4188_v10, %v1709_v18  ;;  %v4545_v23 = vpop.f32.mrb[79].mxu0  ;;  %v4201_v61 = vpop.f32.mrb[88].mxu1  ;;  %v3882_v33 = vld [vmem:[%s4905_s16 + $0x488] sm:$0xf] }
 0x19d   : > { %v4202_v10 = vpop.f32.mrb[89].mxu1  ;;  %v3951_v25 = vcombine.low %v2643_v49, %v2645_v44  ;;  %v2653_v30 = vmul.bf16 %v5897_v31, %v3882_v33  ;;  %v3886_v44 = vld [vmem:[%s4905_s16 + $0x4a0] sm:$0xf] }
 0x19e   : > { %3646 = vst [vmem:[%s5633_s22 + $0x130] sm:$0xff] %v1710_v36  ;;  %4659 = vmatmul.mubr.msk.bf16.gmra.mrb[184].mxu0 %vm676_vm1, %v3948_v60  ;;  %v4203_v26 = vadd.f32 %v4202_v10, %v4201_v61  ;;  %v4204_v50 = vpop.f32.mrb[90].mxu1  ;;  %v2655_v61 = vmul.bf16 %v6227_v7, %v3884_v20 }
 0x19f   : > { %4662 = vmatprep.mubr.msk.bf16.mxu0 %vm4830_vm0, %v6197_v22  ;;  %v4205_v56 = vpop.f32.mrb[91].mxu1 }
 0x1a0   : > { %v4206_v28 = vadd.f32 %v4205_v56, %v4204_v50 }
 0x1a1   : > { %v1714_v14 = vpop.f32.mrb[80].mxu0  ;;  %3147 = vmatmul.mubr.bf16.gmra.mrb[196].mxu1 %v3955_v62 }
 0x1a2   : > { %v1715_v21 = vadd.f32 %v4191_v1, %v1714_v14  ;;  %v4548_v0 = vpop.f32.mrb[81].mxu0  ;;  %3154 = vmatprep.mubr.bf16.mxu1 %v3959_v58  ;;  %v6224_v1 = vld [vmem:[#allocation8_spill] sm:$0xff] }
 0x1a3   : > { %v1717_v38 = vpop.f32.mrb[82].mxu0  ;;  %v2647_v3 = vmul.bf16 %v6224_v1, %v3876_v43  ;;  %v6228_v14 = vld [vmem:[#allocation12_spill] sm:$0xff] }
 0x1a4   : > { %3647 = vst [vmem:[%s5633_s22 + $0x138] sm:$0xff] %v1715_v21  ;;  %v1718_v6 = vadd.f32 %v4194_v24, %v1717_v38  ;;  %v4549_v27 = vpop.f32.mrb[83].mxu0  ;;  %v4207_v34 = vpop.f32.mrb[92].mxu1  ;;  %v2657_v10 = vmul.bf16 %v6228_v14, %v3886_v44  ;;  %v3963_v21 = vcombine.low %v2659_v8, %v2659_v8 }
 0x1a5   : > { %v4208_v63 = vpop.f32.mrb[93].mxu1  ;;  %v3954_v9 = vcombine.low %v2647_v3, %v2649_v11 }
 0x1a6   : > { %3648 = vst [vmem:[%s5633_s22 + $0x140] sm:$0xff] %v1718_v6  ;;  %4663 = vmatmul.mubr.msk.bf16.gmra.mrb[188].mxu0 %vm676_vm1, %v3951_v25  ;;  %v4209_v42 = vadd.f32 %v4208_v63, %v4207_v34  ;;  %v4210_v47 = vpop.f32.mrb[94].mxu1  ;;  %v3960_v43 = vcombine.low %v2655_v61, %v2657_v10 }
 0x1a7   : > { %4666 = vmatprep.mubr.msk.bf16.mxu0 %vm4830_vm0, %v6197_v22  ;;  %v4211_v4 = vpop.f32.mrb[95].mxu1 }
 0x1a8   : > { %v4212_v29 = vadd.f32 %v4211_v4, %v4210_v47 }
 0x1a9   : > { %v1722_v24 = vpop.f32.mrb[84].mxu0  ;;  %3155 = vmatmul.mubr.bf16.gmra.mrb[200].mxu1 %v3958_v59 }
 0x1aa   : > { %v1723_v52 = vadd.f32 %v4197_v41, %v1722_v24  ;;  %v4552_v2 = vpop.f32.mrb[85].mxu0  ;;  %3162 = vmatprep.mubr.bf16.mxu1 %v3962_v45  ;;  %v2651_v41 = vmul.bf16 %v5892_v40, %v3880_v51 }
 0x1ab   : > { %v1725_v32 = vpop.f32.mrb[86].mxu0 }
 0x1ac   : > { %3649 = vst [vmem:[%s5633_s22 + $0x148] sm:$0xff] %v1723_v52  ;;  %v1726_v5 = vadd.f32 %v4200_v53, %v1725_v32  ;;  %v4553_v60 = vpop.f32.mrb[87].mxu0  ;;  %v4213_v17 = vpop.f32.mrb[96].mxu1  ;;  %v3957_v12 = vcombine.low %v2651_v41, %v2653_v30 }
 0x1ad   : > { %v4214_v16 = vpop.f32.mrb[97].mxu1 }
 0x1ae   : > { %3650 = vst [vmem:[%s5633_s22 + $0x150] sm:$0xff] %v1726_v5  ;;  %4667 = vmatmul.mubr.msk.bf16.gmra.mrb[192].mxu0 %vm676_vm1, %v3954_v9  ;;  %v4215_v36 = vadd.f32 %v4214_v16, %v4213_v17  ;;  %v4216_v23 = vpop.f32.mrb[98].mxu1 }
 0x1af   : > { %4670 = vmatprep.mubr.msk.bf16.mxu0 %vm4830_vm0, %v6197_v22  ;;  %v4217_v40 = vpop.f32.mrb[99].mxu1 }
 0x1b0   : > { %v4218_v55 = vadd.f32 %v4217_v40, %v4216_v23 }
 0x1b1   : > { %v1730_v18 = vpop.f32.mrb[88].mxu0  ;;  %3163 = vmatmul.mubr.bf16.gmra.mrb[204].mxu1 %v3961_v19 }
 0x1b2   : > { %v1731_v15 = vadd.f32 %v4203_v26, %v1730_v18  ;;  %v4556_v53 = vpop.f32.mrb[89].mxu0  ;;  %4678 = vmatprep.mubr.msk.bf16.mxu1 %vm4830_vm0, %v6197_v22 }
 0x1b3   : > { %v1733_v49 = vpop.f32.mrb[90].mxu0 }
 0x1b4   : > { %3651 = vst [vmem:[%s5633_s22 + $0x158] sm:$0xff] %v1731_v15  ;;  %v1734_v31 = vadd.f32 %v4206_v28, %v1733_v49  ;;  %v4557_v57 = vpop.f32.mrb[91].mxu0  ;;  %v4219_v62 = vpop.f32.mrb[100].mxu1 }
 0x1b5   : > { %v4220_v37 = vpop.f32.mrb[101].mxu1 }
 0x1b6   : > { %3652 = vst [vmem:[%s5633_s22 + $0x160] sm:$0xff] %v1734_v31  ;;  %4671 = vmatmul.mubr.msk.bf16.gmra.mrb[196].mxu0 %vm676_vm1, %v3957_v12  ;;  %v4221_v50 = vadd.f32 %v4220_v37, %v4219_v62  ;;  %v4222_v58 = vpop.f32.mrb[102].mxu1 }
 0x1b7   : > { %4674 = vmatprep.mubr.msk.bf16.mxu0 %vm4830_vm0, %v6197_v22  ;;  %v4223_v56 = vpop.f32.mrb[103].mxu1 }
 0x1b9   : > { %v1738_v26 = vpop.f32.mrb[92].mxu0  ;;  %4679 = vmatmul.mubr.msk.bf16.vlgmr.msra.gmra.mrb[208].mxu1 %vm676_vm1, %v3963_v21 }
 0x1ba   : > { %v1739_v0 = vadd.f32 %v4209_v42, %v1738_v26  ;;  %v4560_v25 = vpop.f32.mrb[93].mxu0 }
 0x1bb   : > { %v1741_v38 = vpop.f32.mrb[94].mxu0 }
 0x1bc   : > { %3653 = vst [vmem:[%s5633_s22 + $0x168] sm:$0xff] %v1739_v0  ;;  %v1742_v39 = vadd.f32 %v4212_v29, %v1741_v38  ;;  %v4561_v54 = vpop.f32.mrb[95].mxu0  ;;  %v4256_v22 = vpop.f32.mrb[104].mxu1 }
 0x1bd   : > { %v4257_v28 = vpop.f32.mrb[105].mxu1 }
 0x1be   : > { %3654 = vst [vmem:[%s5633_s22 + $0x170] sm:$0xff] %v1742_v39  ;;  %4675 = vmatmul.mubr.msk.bf16.gmra.mrb[200].mxu0 %vm676_vm1, %v3960_v43  ;;  %v4258_v3 = vadd.f32 %v4257_v28, %v4256_v22  ;;  %v4259_v46 = vpop.f32.mrb[106].mxu1 }
 0x1bf   : > { %v4260_v48 = vpop.f32.mrb[107].mxu1 }
 0x1c0   : > { %v4261_v24 = vadd.f32 %v4260_v48, %v4259_v46 }
 0x1c1   : > { %v1746_v6 = vpop.f32.mrb[96].mxu0 }
 0x1c2   : > { %v1747_v27 = vadd.f32 %v4215_v36, %v1746_v6  ;;  %v4564_v1 = vpop.f32.mrb[97].mxu0 }
 0x1c3   : > { %v1749_v11 = vpop.f32.mrb[98].mxu0 }
 0x1c4   : > { %3655 = vst [vmem:[%s5633_s22 + $0x178] sm:$0xff] %v1747_v27  ;;  %v1750_v35 = vadd.f32 %v4218_v55, %v1749_v11  ;;  %v4565_v34 = vpop.f32.mrb[99].mxu0  ;;  %v4262_v63 = vpop.f32.mrb[108].mxu1 }
 0x1c5   : > { %v4263_v52 = vpop.f32.mrb[109].mxu1 }
 0x1c6   : > { %3656 = vst [vmem:[%s5633_s22 + $0x180] sm:$0xff] %v1750_v35  ;;  %v4264_v47 = vadd.f32 %v4263_v52, %v4262_v63  ;;  %v4265_v9 = vpop.f32.mrb[110].mxu1 }
 0x1c7   : > { %v4266_v32 = vpop.f32.mrb[111].mxu1 }
 0x1c8   : > { %v4267_v51 = vadd.f32 %v4266_v32, %v4265_v9 }
 0x1c9   : > { %v1754_v59 = vpop.f32.mrb[100].mxu0 }
 0x1ca   : > { %v1755_v42 = vadd.f32 %v4221_v50, %v1754_v59  ;;  %v4568_v2 = vpop.f32.mrb[101].mxu0 }
 0x1cb   : > { %v1757_v45 = vpop.f32.mrb[102].mxu0 }
 0x1cc   : > { %3657 = vst [vmem:[%s5633_s22 + $0x188] sm:$0xf] %v1755_v42  ;;  %v4569_v4 = vpop.f32.mrb[103].mxu0  ;;  %v4268_v33 = vpop.f32.mrb[112].mxu1 }
 0x1cd   : > { %v4269_v29 = vpop.f32.mrb[113].mxu1 }
 0x1ce   : > { %v4270_v41 = vadd.f32 %v4269_v29, %v4268_v33  ;;  %v4271_v17 = vpop.f32.mrb[114].mxu1 }
 0x1cf   : > { %v4272_v16 = vpop.f32.mrb[115].mxu1 }
 0x1d0   : > { %v4273_v13 = vadd.f32 %v4272_v16, %v4271_v17 }
 0x1d1   : > { %v2431_v5 = vpop.f32.mrb[104].mxu0 }
 0x1d2   : > { %v2432_v60 = vadd.f32 %v4258_v3, %v2431_v5  ;;  %v4576_v30 = vpop.f32.mrb[105].mxu0 }
 0x1d3   : > { %v2434_v18 = vpop.f32.mrb[106].mxu0 }
 0x1d4   : > { %3814 = vst [vmem:[%s5633_s22 + $0x190] sm:$0xff] %v2432_v60  ;;  %v2435_v19 = vadd.f32 %v4261_v24, %v2434_v18  ;;  %v4577_v15 = vpop.f32.mrb[107].mxu0  ;;  %v4274_v36 = vpop.f32.mrb[116].mxu1 }
 0x1d5   : > { %v4275_v23 = vpop.f32.mrb[117].mxu1 }
 0x1d6   : > { %3815 = vst [vmem:[%s5633_s22 + $0x198] sm:$0xff] %v2435_v19  ;;  %v4276_v49 = vadd.f32 %v4275_v23, %v4274_v36  ;;  %v4277_v20 = vpop.f32.mrb[118].mxu1 }
 0x1d7   : > { %v4278_v31 = vpop.f32.mrb[119].mxu1 }
 0x1d8   : > { %v4279_v57 = vadd.f32 %v4278_v31, %v4277_v20 }
 0x1d9   : > { %v2439_v53 = vpop.f32.mrb[108].mxu0 }
 0x1da   : > { %v2440_v12 = vadd.f32 %v4264_v47, %v2439_v53  ;;  %v4580_v40 = vpop.f32.mrb[109].mxu0 }
 0x1db   : > { %v2442_v44 = vpop.f32.mrb[110].mxu0 }
 0x1dc   : > { %3816 = vst [vmem:[%s5633_s22 + $0x1a0] sm:$0xff] %v2440_v12  ;;  %v2443_v55 = vadd.f32 %v4267_v51, %v2442_v44  ;;  %v4581_v8 = vpop.f32.mrb[111].mxu0  ;;  %v4280_v7 = vpop.f32.mrb[120].mxu1 }
 0x1dd   : > { %v4281_v14 = vpop.f32.mrb[121].mxu1 }
 0x1de   : > { %3817 = vst [vmem:[%s5633_s22 + $0x1a8] sm:$0xff] %v2443_v55  ;;  %v4282_v62 = vadd.f32 %v4281_v14, %v4280_v7  ;;  %v4283_v26 = vpop.f32.mrb[122].mxu1 }
 0x1df   : > { %v4284_v0 = vpop.f32.mrb[123].mxu1 }
 0x1e0   : > { %v4285_v25 = vadd.f32 %v4284_v0, %v4283_v26 }
 0x1e1   : > { %v2447_v61 = vpop.f32.mrb[112].mxu0 }
 0x1e2   : > { %v2448_v10 = vadd.f32 %v4270_v41, %v2447_v61  ;;  %v4584_v21 = vpop.f32.mrb[113].mxu0 }
 0x1e3   : > { %v2450_v37 = vpop.f32.mrb[114].mxu0 }
 0x1e4   : > { %3818 = vst [vmem:[%s5633_s22 + $0x1b0] sm:$0xff] %v2448_v10  ;;  %v2451_v50 = vadd.f32 %v4273_v13, %v2450_v37  ;;  %v4585_v58 = vpop.f32.mrb[115].mxu0  ;;  %v4286_v43 = vpop.f32.mrb[124].mxu1 }
 0x1e5   : > { %v4287_v56 = vpop.f32.mrb[125].mxu1 }
 0x1e6   : > { %3819 = vst [vmem:[%s5633_s22 + $0x1b8] sm:$0xff] %v2451_v50  ;;  %v4288_v54 = vadd.f32 %v4287_v56, %v4286_v43  ;;  %v4289_v6 = vpop.f32.mrb[126].mxu1 }
 0x1e7   : > { %v4290_v27 = vpop.f32.mrb[127].mxu1 }
 0x1e8   : > { %v4291_v3 = vadd.f32 %v4290_v27, %v4289_v6 }
 0x1e9   : > { %v2455_v38 = vpop.f32.mrb[116].mxu0 }
 0x1ea   : > { %v2456_v39 = vadd.f32 %v4276_v49, %v2455_v38  ;;  %v4588_v22 = vpop.f32.mrb[117].mxu0 }
 0x1eb   : > { %v2458_v28 = vpop.f32.mrb[118].mxu0 }
 0x1ec   : > { %3820 = vst [vmem:[%s5633_s22 + $0x1c0] sm:$0xff] %v2456_v39  ;;  %v2459_v1 = vadd.f32 %v4279_v57, %v2458_v28  ;;  %v4589_v46 = vpop.f32.mrb[119].mxu0  ;;  %v4292_v11 = vpop.f32.mrb[128].mxu1 }
 0x1ed   : > { %v4293_v35 = vpop.f32.mrb[129].mxu1 }
 0x1ee   : > { %3821 = vst [vmem:[%s5633_s22 + $0x1c8] sm:$0xff] %v2459_v1  ;;  %v4294_v24 = vadd.f32 %v4293_v35, %v4292_v11  ;;  %v4295_v59 = vpop.f32.mrb[130].mxu1 }
 0x1ef   : > { %v4296_v42 = vpop.f32.mrb[131].mxu1 }
 0x1f0   : > { %v4297_v47 = vadd.f32 %v4296_v42, %v4295_v59 }
 0x1f1   : > { %v2463_v48 = vpop.f32.mrb[120].mxu0 }
 0x1f2   : > { %v2464_v34 = vadd.f32 %v4282_v62, %v2463_v48  ;;  %v4592_v63 = vpop.f32.mrb[121].mxu0 }
 0x1f3   : > { %v2466_v52 = vpop.f32.mrb[122].mxu0 }
 0x1f4   : > { %3822 = vst [vmem:[%s5633_s22 + $0x1d0] sm:$0xff] %v2464_v34  ;;  %v2467_v2 = vadd.f32 %v4285_v25, %v2466_v52  ;;  %v4593_v9 = vpop.f32.mrb[123].mxu0  ;;  %v4298_v45 = vpop.f32.mrb[132].mxu1 }
 0x1f5   : > { %v4299_v4 = vpop.f32.mrb[133].mxu1 }
 0x1f6   : > { %3823 = vst [vmem:[%s5633_s22 + $0x1d8] sm:$0xff] %v2467_v2  ;;  %v4300_v33 = vadd.f32 %v4299_v4, %v4298_v45  ;;  %v4301_v29 = vpop.f32.mrb[134].mxu1 }
 0x1f7   : > { %v4302_v41 = vpop.f32.mrb[135].mxu1 }
 0x1f8   : > { %v4303_v17 = vadd.f32 %v4302_v41, %v4301_v29 }
 0x1f9   : > { %v2471_v32 = vpop.f32.mrb[124].mxu0 }
 0x1fa   : > { %v2472_v51 = vadd.f32 %v4288_v54, %v2471_v32  ;;  %v4596_v5 = vpop.f32.mrb[125].mxu0 }
 0x1fb   : > { %v2474_v60 = vpop.f32.mrb[126].mxu0 }
 0x1fc   : > { %3824 = vst [vmem:[%s5633_s22 + $0x1e0] sm:$0xff] %v2472_v51  ;;  %v2475_v30 = vadd.f32 %v4291_v3, %v2474_v60  ;;  %v4597_v18 = vpop.f32.mrb[127].mxu0  ;;  %v4304_v16 = vpop.f32.mrb[136].mxu1 }
 0x1fd   : > { %v4305_v13 = vpop.f32.mrb[137].mxu1 }
 0x1fe   : > { %3825 = vst [vmem:[%s5633_s22 + $0x1e8] sm:$0xff] %v2475_v30  ;;  %v4306_v36 = vadd.f32 %v4305_v13, %v4304_v16  ;;  %v4307_v23 = vpop.f32.mrb[138].mxu1 }
 0x1ff   : > { %v4308_v49 = vpop.f32.mrb[139].mxu1 }
 0x200   : > { %v4309_v20 = vadd.f32 %v4308_v49, %v4307_v23 }
 0x201   : > { %v2479_v19 = vpop.f32.mrb[128].mxu0 }
 0x202   : > { %v2480_v15 = vadd.f32 %v4294_v24, %v2479_v19  ;;  %v4600_v53 = vpop.f32.mrb[129].mxu0 }
 0x203   : > { %v2482_v12 = vpop.f32.mrb[130].mxu0 }
 0x204   : > { %3826 = vst [vmem:[%s5633_s22 + $0x1f0] sm:$0xff] %v2480_v15  ;;  %v2483_v40 = vadd.f32 %v4297_v47, %v2482_v12  ;;  %v4601_v44 = vpop.f32.mrb[131].mxu0  ;;  %v4310_v31 = vpop.f32.mrb[140].mxu1 }
 0x205   : > { %v4311_v57 = vpop.f32.mrb[141].mxu1 }
 0x206   : > { %3827 = vst [vmem:[%s5633_s22 + $0x1f8] sm:$0xff] %v2483_v40  ;;  %v4312_v7 = vadd.f32 %v4311_v57, %v4310_v31  ;;  %v4313_v14 = vpop.f32.mrb[142].mxu1 }
 0x207   : > { %v4314_v62 = vpop.f32.mrb[143].mxu1 }
 0x208   : > { %v4315_v26 = vadd.f32 %v4314_v62, %v4313_v14 }
 0x209   : > { %v2487_v55 = vpop.f32.mrb[132].mxu0 }
 0x20a   : > { %v2488_v8 = vadd.f32 %v4300_v33, %v2487_v55  ;;  %v4604_v61 = vpop.f32.mrb[133].mxu0 }
 0x20b   : > { %v2490_v10 = vpop.f32.mrb[134].mxu0 }
 0x20c   : > { %3828 = vst [vmem:[%s5633_s22 + $0x200] sm:$0xff] %v2488_v8  ;;  %v2491_v21 = vadd.f32 %v4303_v17, %v2490_v10  ;;  %v4605_v37 = vpop.f32.mrb[135].mxu0  ;;  %v4316_v0 = vpop.f32.mrb[144].mxu1 }
 0x20d   : > { %v4317_v25 = vpop.f32.mrb[145].mxu1 }
 0x20e   : > { %3829 = vst [vmem:[%s5633_s22 + $0x208] sm:$0xff] %v2491_v21  ;;  %v4318_v43 = vadd.f32 %v4317_v25, %v4316_v0  ;;  %v4319_v56 = vpop.f32.mrb[146].mxu1 }
 0x20f   : > { %v4320_v54 = vpop.f32.mrb[147].mxu1 }
 0x210   : > { %v4321_v6 = vadd.f32 %v4320_v54, %v4319_v56 }
 0x211   : > { %v2495_v50 = vpop.f32.mrb[136].mxu0 }
 0x212   : > { %v2496_v58 = vadd.f32 %v4306_v36, %v2495_v50  ;;  %v4608_v38 = vpop.f32.mrb[137].mxu0 }
 0x213   : > { %v2498_v39 = vpop.f32.mrb[138].mxu0 }
 0x214   : > { %3830 = vst [vmem:[%s5633_s22 + $0x210] sm:$0xff] %v2496_v58  ;;  %v2499_v22 = vadd.f32 %v4309_v20, %v2498_v39  ;;  %v4609_v28 = vpop.f32.mrb[139].mxu0  ;;  %v4322_v27 = vpop.f32.mrb[148].mxu1 }
 0x215   : > { %v4323_v3 = vpop.f32.mrb[149].mxu1 }
 0x216   : > { %3831 = vst [vmem:[%s5633_s22 + $0x218] sm:$0xff] %v2499_v22  ;;  %v4324_v11 = vadd.f32 %v4323_v3, %v4322_v27  ;;  %v4325_v35 = vpop.f32.mrb[150].mxu1 }
 0x217   : > { %v4326_v24 = vpop.f32.mrb[151].mxu1 }
 0x218   : > { %v4327_v59 = vadd.f32 %v4326_v24, %v4325_v35 }
 0x219   : > { %v2503_v1 = vpop.f32.mrb[140].mxu0 }
 0x21a   : > { %v2504_v46 = vadd.f32 %v4312_v7, %v2503_v1  ;;  %v4612_v48 = vpop.f32.mrb[141].mxu0 }
 0x21b   : > { %v2506_v34 = vpop.f32.mrb[142].mxu0 }
 0x21c   : > { %3832 = vst [vmem:[%s5633_s22 + $0x220] sm:$0xff] %v2504_v46  ;;  %v2507_v63 = vadd.f32 %v4315_v26, %v2506_v34  ;;  %v4613_v52 = vpop.f32.mrb[143].mxu0  ;;  %v4328_v42 = vpop.f32.mrb[152].mxu1 }
 0x21d   : > { %v4329_v47 = vpop.f32.mrb[153].mxu1 }
 0x21e   : > { %3833 = vst [vmem:[%s5633_s22 + $0x228] sm:$0xff] %v2507_v63  ;;  %v4330_v45 = vadd.f32 %v4329_v47, %v4328_v42  ;;  %v4331_v4 = vpop.f32.mrb[154].mxu1 }
 0x21f   : > { %v4332_v33 = vpop.f32.mrb[155].mxu1 }
 0x221   : > { %v2511_v2 = vpop.f32.mrb[144].mxu0 }
 0x222   : > { %v2512_v9 = vadd.f32 %v4318_v43, %v2511_v2  ;;  %v4616_v32 = vpop.f32.mrb[145].mxu0 }
 0x223   : > { %v2514_v51 = vpop.f32.mrb[146].mxu0 }
 0x224   : > { %3834 = vst [vmem:[%s5633_s22 + $0x230] sm:$0xff] %v2512_v9  ;;  %v2515_v5 = vadd.f32 %v4321_v6, %v2514_v51  ;;  %v4617_v29 = vpop.f32.mrb[147].mxu0  ;;  %v4365_v60 = vpop.f32.mrb[156].mxu1 }
 0x225   : > { %v4366_v30 = vpop.f32.mrb[157].mxu1 }
 0x226   : > { %3835 = vst [vmem:[%s5633_s22 + $0x238] sm:$0xff] %v2515_v5  ;;  %v4367_v16 = vadd.f32 %v4366_v30, %v4365_v60  ;;  %v4368_v19 = vpop.f32.mrb[158].mxu1 }
 0x227   : > { %v4369_v15 = vpop.f32.mrb[159].mxu1 }
 0x228   : > { %v4370_v23 = vadd.f32 %v4369_v15, %v4368_v19 }
 0x229   : > { %v2519_v41 = vpop.f32.mrb[148].mxu0 }
 0x22a   : > { %v2520_v17 = vadd.f32 %v4324_v11, %v2519_v41  ;;  %v4620_v18 = vpop.f32.mrb[149].mxu0 }
 0x22b   : > { %v2522_v13 = vpop.f32.mrb[150].mxu0 }
 0x22c   : > { %3836 = vst [vmem:[%s5633_s22 + $0x240] sm:$0xff] %v2520_v17  ;;  %v2523_v36 = vadd.f32 %v4327_v59, %v2522_v13  ;;  %v4621_v53 = vpop.f32.mrb[151].mxu0  ;;  %v4371_v12 = vpop.f32.mrb[160].mxu1 }
 0x22d   : > { %v4372_v40 = vpop.f32.mrb[161].mxu1 }
 0x22e   : > { %3837 = vst [vmem:[%s5633_s22 + $0x248] sm:$0xff] %v2523_v36  ;;  %v4373_v31 = vadd.f32 %v4372_v40, %v4371_v12  ;;  %v4374_v55 = vpop.f32.mrb[162].mxu1 }
 0x22f   : > { %v4375_v8 = vpop.f32.mrb[163].mxu1 }
 0x230   : > { %v4376_v61 = vadd.f32 %v4375_v8, %v4374_v55 }
 0x231   : > { %v2527_v49 = vpop.f32.mrb[152].mxu0 }
 0x232   : > { %v2528_v20 = vadd.f32 %v4330_v45, %v2527_v49  ;;  %v4624_v44 = vpop.f32.mrb[153].mxu0 }
 0x233   : > { %v2530_v57 = vpop.f32.mrb[154].mxu0 }
 0x234   : > { %3838 = vst [vmem:[%s5633_s22 + $0x250] sm:$0xf] %v2528_v20  ;;  %v4625_v7 = vpop.f32.mrb[155].mxu0  ;;  %v4377_v14 = vpop.f32.mrb[164].mxu1 }
 0x235   : > { %v4378_v62 = vpop.f32.mrb[165].mxu1 }
 0x236   : > { %v4379_v26 = vadd.f32 %v4378_v62, %v4377_v14  ;;  %v4380_v0 = vpop.f32.mrb[166].mxu1 }
 0x237   : > { %v4381_v25 = vpop.f32.mrb[167].mxu1 }
 0x238   : > { %v4382_v43 = vadd.f32 %v4381_v25, %v4380_v0 }
 0x239   : > { %v3204_v10 = vpop.f32.mrb[156].mxu0 }
 0x23a   : > { %v3205_v21 = vadd.f32 %v4367_v16, %v3204_v10  ;;  %v4632_v37 = vpop.f32.mrb[157].mxu0 }
 0x23b   : > { %v3207_v50 = vpop.f32.mrb[158].mxu0 }
 0x23c   : > { %3995 = vst [vmem:[%s5633_s22 + $0x258] sm:$0xff] %v3205_v21  ;;  %v3208_v58 = vadd.f32 %v4370_v23, %v3207_v50  ;;  %v4633_v38 = vpop.f32.mrb[159].mxu0  ;;  %v4383_v56 = vpop.f32.mrb[168].mxu1 }
 0x23d   : > { %v4384_v54 = vpop.f32.mrb[169].mxu1 }
 0x23e   : > { %3996 = vst [vmem:[%s5633_s22 + $0x260] sm:$0xff] %v3208_v58  ;;  %v4385_v6 = vadd.f32 %v4384_v54, %v4383_v56  ;;  %v4386_v27 = vpop.f32.mrb[170].mxu1 }
 0x23f   : > { %v4387_v3 = vpop.f32.mrb[171].mxu1 }
 0x240   : > { %v4388_v11 = vadd.f32 %v4387_v3, %v4386_v27 }
 0x241   : > { %v3212_v39 = vpop.f32.mrb[160].mxu0 }
 0x242   : > { %v3213_v22 = vadd.f32 %v4373_v31, %v3212_v39  ;;  %v4636_v28 = vpop.f32.mrb[161].mxu0 }
 0x243   : > { %v3215_v1 = vpop.f32.mrb[162].mxu0 }
 0x244   : > { %3997 = vst [vmem:[%s5633_s22 + $0x268] sm:$0xff] %v3213_v22  ;;  %v3216_v46 = vadd.f32 %v4376_v61, %v3215_v1  ;;  %v4637_v48 = vpop.f32.mrb[163].mxu0  ;;  %v4389_v35 = vpop.f32.mrb[172].mxu1 }
 0x245   : > { %v4390_v24 = vpop.f32.mrb[173].mxu1 }
 0x246   : > { %3998 = vst [vmem:[%s5633_s22 + $0x270] sm:$0xff] %v3216_v46  ;;  %v4391_v59 = vadd.f32 %v4390_v24, %v4389_v35  ;;  %v4392_v42 = vpop.f32.mrb[174].mxu1 }
 0x247   : > { %v4393_v47 = vpop.f32.mrb[175].mxu1 }
 0x248   : > { %v4394_v45 = vadd.f32 %v4393_v47, %v4392_v42 }
 0x249   : > { %v3220_v34 = vpop.f32.mrb[164].mxu0 }
 0x24a   : > { %v3221_v63 = vadd.f32 %v4379_v26, %v3220_v34  ;;  %v4640_v52 = vpop.f32.mrb[165].mxu0 }
 0x24b   : > { %v3223_v2 = vpop.f32.mrb[166].mxu0 }
 0x24c   : > { %3999 = vst [vmem:[%s5633_s22 + $0x278] sm:$0xff] %v3221_v63  ;;  %v3224_v9 = vadd.f32 %v4382_v43, %v3223_v2  ;;  %v4641_v32 = vpop.f32.mrb[167].mxu0  ;;  %v4395_v4 = vpop.f32.mrb[176].mxu1 }
 0x24d   : > { %v4396_v33 = vpop.f32.mrb[177].mxu1 }
 0x24e   : > { %4000 = vst [vmem:[%s5633_s22 + $0x280] sm:$0xff] %v3224_v9  ;;  %v4397_v29 = vadd.f32 %v4396_v33, %v4395_v4  ;;  %v4398_v41 = vpop.f32.mrb[178].mxu1 }
 0x24f   : > { %v4399_v17 = vpop.f32.mrb[179].mxu1 }
 0x250   : > { %v4400_v16 = vadd.f32 %v4399_v17, %v4398_v41 }
 0x251   : > { %v3228_v51 = vpop.f32.mrb[168].mxu0 }
 0x252   : > { %v3229_v5 = vadd.f32 %v4385_v6, %v3228_v51  ;;  %v4644_v60 = vpop.f32.mrb[169].mxu0 }
 0x253   : > { %v3231_v30 = vpop.f32.mrb[170].mxu0 }
 0x254   : > { %4001 = vst [vmem:[%s5633_s22 + $0x288] sm:$0xff] %v3229_v5  ;;  %v3232_v18 = vadd.f32 %v4388_v11, %v3231_v30  ;;  %v4645_v19 = vpop.f32.mrb[171].mxu0  ;;  %v4401_v13 = vpop.f32.mrb[180].mxu1 }
 0x255   : > { %v4402_v36 = vpop.f32.mrb[181].mxu1 }
 0x256   : > { %4002 = vst [vmem:[%s5633_s22 + $0x290] sm:$0xff] %v3232_v18  ;;  %v4403_v23 = vadd.f32 %v4402_v36, %v4401_v13  ;;  %v4404_v49 = vpop.f32.mrb[182].mxu1 }
 0x257   : > { %v4405_v20 = vpop.f32.mrb[183].mxu1 }
 0x258   : > { %v4406_v31 = vadd.f32 %v4405_v20, %v4404_v49 }
 0x259   : > { %v3236_v15 = vpop.f32.mrb[172].mxu0 }
 0x25a   : > { %v3237_v53 = vadd.f32 %v4391_v59, %v3236_v15  ;;  %v4648_v12 = vpop.f32.mrb[173].mxu0 }
 0x25b   : > { %v3239_v40 = vpop.f32.mrb[174].mxu0 }
 0x25c   : > { %4003 = vst [vmem:[%s5633_s22 + $0x298] sm:$0xff] %v3237_v53  ;;  %v3240_v44 = vadd.f32 %v4394_v45, %v3239_v40  ;;  %v4649_v55 = vpop.f32.mrb[175].mxu0  ;;  %v4407_v57 = vpop.f32.mrb[184].mxu1 }
 0x25d   : > { %v4408_v7 = vpop.f32.mrb[185].mxu1 }
 0x25e   : > { %4004 = vst [vmem:[%s5633_s22 + $0x2a0] sm:$0xff] %v3240_v44  ;;  %v4409_v14 = vadd.f32 %v4408_v7, %v4407_v57  ;;  %v4410_v62 = vpop.f32.mrb[186].mxu1 }
 0x25f   : > { %v4411_v26 = vpop.f32.mrb[187].mxu1 }
 0x260   : > { %v4412_v0 = vadd.f32 %v4411_v26, %v4410_v62 }
 0x261   : > { %v3244_v8 = vpop.f32.mrb[176].mxu0 }
 0x262   : > { %v3245_v61 = vadd.f32 %v4397_v29, %v3244_v8  ;;  %v4652_v10 = vpop.f32.mrb[177].mxu0 }
 0x263   : > { %v3247_v21 = vpop.f32.mrb[178].mxu0 }
 0x264   : > { %4005 = vst [vmem:[%s5633_s22 + $0x2a8] sm:$0xff] %v3245_v61  ;;  %v3248_v37 = vadd.f32 %v4400_v16, %v3247_v21  ;;  %v4653_v50 = vpop.f32.mrb[179].mxu0  ;;  %v4413_v25 = vpop.f32.mrb[188].mxu1 }
 0x265   : > { %v4414_v43 = vpop.f32.mrb[189].mxu1 }
 0x266   : > { %4006 = vst [vmem:[%s5633_s22 + $0x2b0] sm:$0xff] %v3248_v37  ;;  %v4415_v56 = vadd.f32 %v4414_v43, %v4413_v25  ;;  %v4416_v54 = vpop.f32.mrb[190].mxu1 }
 0x267   : > { %v4417_v6 = vpop.f32.mrb[191].mxu1 }
 0x268   : > { %v4418_v27 = vadd.f32 %v4417_v6, %v4416_v54 }
 0x269   : > { %v3252_v58 = vpop.f32.mrb[180].mxu0 }
 0x26a   : > { %v3253_v38 = vadd.f32 %v4403_v23, %v3252_v58  ;;  %v4656_v39 = vpop.f32.mrb[181].mxu0 }
 0x26b   : > { %v3255_v22 = vpop.f32.mrb[182].mxu0 }
 0x26c   : > { %4007 = vst [vmem:[%s5633_s22 + $0x2b8] sm:$0xff] %v3253_v38  ;;  %v3256_v28 = vadd.f32 %v4406_v31, %v3255_v22  ;;  %v4657_v1 = vpop.f32.mrb[183].mxu0  ;;  %v4419_v3 = vpop.f32.mrb[192].mxu1 }
 0x26d   : > { %v4420_v11 = vpop.f32.mrb[193].mxu1 }
 0x26e   : > { %4008 = vst [vmem:[%s5633_s22 + $0x2c0] sm:$0xff] %v3256_v28  ;;  %v4421_v35 = vadd.f32 %v4420_v11, %v4419_v3  ;;  %v4422_v24 = vpop.f32.mrb[194].mxu1 }
 0x26f   : > { %v4423_v59 = vpop.f32.mrb[195].mxu1 }
 0x270   : > { %v4424_v42 = vadd.f32 %v4423_v59, %v4422_v24 }
 0x271   : > { %v3260_v46 = vpop.f32.mrb[184].mxu0 }
 0x272   : > { %v3261_v48 = vadd.f32 %v4409_v14, %v3260_v46  ;;  %v4660_v34 = vpop.f32.mrb[185].mxu0 }
 0x273   : > { %v3263_v63 = vpop.f32.mrb[186].mxu0 }
 0x274   : > { %4009 = vst [vmem:[%s5633_s22 + $0x2c8] sm:$0xff] %v3261_v48  ;;  %v3264_v52 = vadd.f32 %v4412_v0, %v3263_v63  ;;  %v4661_v2 = vpop.f32.mrb[187].mxu0  ;;  %v4425_v47 = vpop.f32.mrb[196].mxu1 }
 0x275   : > { %v4426_v45 = vpop.f32.mrb[197].mxu1 }
 0x276   : > { %4010 = vst [vmem:[%s5633_s22 + $0x2d0] sm:$0xff] %v3264_v52  ;;  %v4427_v4 = vadd.f32 %v4426_v45, %v4425_v47  ;;  %v4428_v33 = vpop.f32.mrb[198].mxu1 }
 0x277   : > { %v4429_v29 = vpop.f32.mrb[199].mxu1 }
 0x278   : > { %v4430_v41 = vadd.f32 %v4429_v29, %v4428_v33 }
 0x279   : > { %v3268_v9 = vpop.f32.mrb[188].mxu0 }
 0x27a   : > { %v3269_v32 = vadd.f32 %v4415_v56, %v3268_v9  ;;  %v4664_v51 = vpop.f32.mrb[189].mxu0 }
 0x27b   : > { %v3271_v5 = vpop.f32.mrb[190].mxu0 }
 0x27c   : > { %4011 = vst [vmem:[%s5633_s22 + $0x2d8] sm:$0xff] %v3269_v32  ;;  %v3272_v60 = vadd.f32 %v4418_v27, %v3271_v5  ;;  %v4665_v30 = vpop.f32.mrb[191].mxu0  ;;  %v4431_v17 = vpop.f32.mrb[200].mxu1 }
 0x27d   : > { %v4432_v16 = vpop.f32.mrb[201].mxu1 }
 0x27e   : > { %4012 = vst [vmem:[%s5633_s22 + $0x2e0] sm:$0xff] %v3272_v60  ;;  %v4433_v13 = vadd.f32 %v4432_v16, %v4431_v17  ;;  %v4434_v36 = vpop.f32.mrb[202].mxu1 }
 0x27f   : > { %v4435_v23 = vpop.f32.mrb[203].mxu1 }
 0x280   : > { %v4436_v49 = vadd.f32 %v4435_v23, %v4434_v36 }
 0x281   : > { %v3276_v18 = vpop.f32.mrb[192].mxu0 }
 0x282   : > { %v3277_v19 = vadd.f32 %v4421_v35, %v3276_v18  ;;  %v4668_v15 = vpop.f32.mrb[193].mxu0 }
 0x283   : > { %v3279_v53 = vpop.f32.mrb[194].mxu0 }
 0x284   : > { %4013 = vst [vmem:[%s5633_s22 + $0x2e8] sm:$0xff] %v3277_v19  ;;  %v3280_v12 = vadd.f32 %v4424_v42, %v3279_v53  ;;  %v4669_v40 = vpop.f32.mrb[195].mxu0  ;;  %v4437_v20 = vpop.f32.mrb[204].mxu1 }
 0x285   : > { %v4438_v31 = vpop.f32.mrb[205].mxu1 }
 0x286   : > { %4014 = vst [vmem:[%s5633_s22 + $0x2f0] sm:$0xff] %v3280_v12  ;;  %v4439_v57 = vadd.f32 %v4438_v31, %v4437_v20  ;;  %v4440_v7 = vpop.f32.mrb[206].mxu1 }
 0x287   : > { %v4441_v14 = vpop.f32.mrb[207].mxu1 }
 0x289   : > { %v3284_v44 = vpop.f32.mrb[196].mxu0 }
 0x28a   : > { %v3285_v55 = vadd.f32 %v4427_v4, %v3284_v44  ;;  %v4672_v8 = vpop.f32.mrb[197].mxu0 }
 0x28b   : > { %v3287_v61 = vpop.f32.mrb[198].mxu0 }
 0x28c   : > { %4015 = vst [vmem:[%s5633_s22 + $0x2f8] sm:$0xff] %v3285_v55  ;;  %v3288_v10 = vadd.f32 %v4430_v41, %v3287_v61  ;;  %v4673_v62 = vpop.f32.mrb[199].mxu0  ;;  %v3300_v21 = vpop.f32.mrb[208].mxu1 }
 0x28d   : > { %v3301_v26 = vadd.f32 %v4439_v57, %v3300_v21  ;;  %v4680_v0 = vpop.f32.mrb[209].mxu1 }
 0x28e   : > { %4016 = vst [vmem:[%s5633_s22 + $0x300] sm:$0xff] %v3288_v10  ;;  %v3303_v58 = vpop.f32.mrb[210].mxu1 }
 0x28f   : > { %4019 = vst [vmem:[%s5633_s22 + $0x318] sm:$0xf] %v3301_v26  ;;  %v4681_v38 = vpop.f32.mrb[211].mxu1 }
 0x291   : > { %v3292_v37 = vpop.f32.mrb[200].mxu0 }
 0x292   : > { %v3293_v50 = vadd.f32 %v4433_v13, %v3292_v37  ;;  %v4676_v25 = vpop.f32.mrb[201].mxu0 }
 0x293   : > { %v3295_v43 = vpop.f32.mrb[202].mxu0 }
 0x294   : > { %4017 = vst [vmem:[%s5633_s22 + $0x308] sm:$0xff] %v3293_v50  ;;  %v3296_v56 = vadd.f32 %v4436_v49, %v3295_v43  ;;  %v4677_v39 = vpop.f32.mrb[203].mxu0 }
 0x296   : > { %4018 = vst [vmem:[%s5633_s22 + $0x310] sm:$0xff] %v3296_v56 }
 0x297 PF: > { %s13_s12 = sadd.s32 1, %s4827_s12  }
 0x298   : > { %p10_p4 = scmp.ge.s32.totalorder %s13_s12, 4  }
 0x29a   :  { %12 = sbr.rel (!%p10_p4) target bundleno = 1 (0x1), region = 74 }

</bundles_post_ra>
